<compile_context>
chip_gen: v6e
topology: v6e:2x2x1
jax: 0.10.0
libtpu: 0.0.40
codegen_flags: <defaults>
</compile_context>

<pallas_src>
import functools

import jax
import jax.numpy as jnp
from jax.experimental import pallas as pl
from jax.experimental.pallas import tpu as pltpu


# ------------------------------ config ------------------------------------
class Config:
    n_mels = 16
    d_model = 32
    n_heads = 4
    d_ff = 64
    n_blocks = 2
    post_channels = 32
    post_kernel = 5
    seq_len = 8
    batch = 2


CFG = Config()
OUT_W = 128  # lane-dense packed output: cols [0:n_mels]=mel(+postnet), [n_mels]=stop


# ------------------------------ fused kernel -------------------------------
def talkgpt_kernel(x_ref, pe_ref, melw_ref, lnp_ref,
                   wqkv_ref, bqkv_ref, wo_ref, bo_ref,
                   w1_ref, b1_ref, w2_ref, b2_ref,
                   headw_ref, headb_ref,
                   pw1_ref, pb1_ref, pw2_ref, pb2_ref,
                   out_ref,
                   *, batch, seq, n_blocks, n_heads, d_model, n_mels, ksize):
    BS = batch * seq
    Dh = d_model // n_heads
    scale = 1.0 / (Dh ** 0.5)
    pad = ksize // 2

    def layer_norm(x, g, b):
        mu = jnp.mean(x, axis=-1, keepdims=True)
        var = jnp.mean((x - mu) ** 2, axis=-1, keepdims=True)
        return (x - mu) * jax.lax.rsqrt(var + 1e-5) * g + b

    # ---- mel embedding (no bias) + additive sinusoidal pos-encoding ----
    # All B*S rows processed at once (batch folded into the sublane axis).
    h = jnp.dot(x_ref[...], melw_ref[...],
                preferred_element_type=jnp.float32) + pe_ref[...]

    # Per-batch causal mask [S, S], reused by every block / batch / head.
    row_s = jax.lax.broadcasted_iota(jnp.int32, (seq, seq), 0)
    col_s = jax.lax.broadcasted_iota(jnp.int32, (seq, seq), 1)
    causal = col_s > row_s

    # ---- decoder blocks (pre-LN, causal MHSA + ReLU FFN) ----
    for blk in range(n_blocks):
        hn = layer_norm(h, lnp_ref[blk, 0], lnp_ref[blk, 1])

        # Three aligned [BS,d]x[d,d] matmuls instead of one [d,3d] + lane slices.
        q = jnp.dot(hn, wqkv_ref[blk, 0],
                    preferred_element_type=jnp.float32) + bqkv_ref[blk, 0]
        k = jnp.dot(hn, wqkv_ref[blk, 1],
                    preferred_element_type=jnp.float32) + bqkv_ref[blk, 1]
        v = jnp.dot(hn, wqkv_ref[blk, 2],
                    preferred_element_type=jnp.float32) + bqkv_ref[blk, 2]
        wo_b = wo_ref[blk]                                   # [d, d]

        o_rows = []
        for b in range(batch):                               # static unroll
            r0 = b * seq
            o_b = jnp.zeros((seq, d_model), jnp.float32)
            for hh in range(n_heads):                        # static unroll
                c0 = hh * Dh
                qh = q[r0:r0 + seq, c0:c0 + Dh]
                kh = k[r0:r0 + seq, c0:c0 + Dh]
                vh = v[r0:r0 + seq, c0:c0 + Dh]
                s = jnp.dot(qh, kh.T,
                            preferred_element_type=jnp.float32) * scale
                s = jnp.where(causal, jnp.float32(-1e9), s)
                s = s - jnp.max(s, axis=-1, keepdims=True)
                p = jnp.exp(s)
                p = p / jnp.sum(p, axis=-1, keepdims=True)   # exact softmax
                av = jnp.dot(p, vh, preferred_element_type=jnp.float32)
                # sublane-aligned row slice of W_o (no lane-axis concat)
                o_b = o_b + jnp.dot(av, wo_b[c0:c0 + Dh, :],
                                    preferred_element_type=jnp.float32)
            o_rows.append(o_b)
        o = jnp.concatenate(o_rows, axis=0)                  # sublane-aligned
        h = h + o + bo_ref[blk]

        hn2 = layer_norm(h, lnp_ref[blk, 2], lnp_ref[blk, 3])
        f = jnp.dot(hn2, w1_ref[blk],
                    preferred_element_type=jnp.float32) + b1_ref[blk]
        f = jnp.maximum(f, 0.0)
        f = jnp.dot(f, w2_ref[blk],
                    preferred_element_type=jnp.float32) + b2_ref[blk]
        h = h + f

    # ---- fused, lane-dense output heads: [0:n_mels]=mel, [n_mels]=stop ----
    head = jnp.dot(h, headw_ref[...],
                   preferred_element_type=jnp.float32) + headb_ref[...]
    mel = head[:, :n_mels]                                   # [BS, n_mels]

    # ---- post-net: conv1d -> tanh -> conv1d, register-resident ----
    # Each conv tap dk is (S_dk @ x) @ w[dk], where S_dk[r, r'] = 1 iff
    # r' = r + dk - pad AND that position is inside the same batch's [0, S)
    # window (this both realizes the "same" zero padding and prevents taps
    # from crossing the folded batch boundary).  No VMEM scratch, no
    # unaligned stores/loads.
    row_f = jax.lax.broadcasted_iota(jnp.int32, (BS, BS), 0)
    col_f = jax.lax.broadcasted_iota(jnp.int32, (BS, BS), 1)
    t_in_batch = row_f % seq
    shift_mats = []
    for dk in range(ksize):
        off = dk - pad
        valid = ((col_f == row_f + off)
                 & (t_in_batch + off >= 0)
                 & (t_in_batch + off < seq))
        shift_mats.append(valid.astype(jnp.float32))         # [BS, BS]

    acc1 = None
    for dk in range(ksize):
        xk = jnp.dot(shift_mats[dk], mel,
                     preferred_element_type=jnp.float32)     # shifted mel
        term = jnp.dot(xk, pw1_ref[dk],
                       preferred_element_type=jnp.float32)   # [BS, post_ch]
        acc1 = term if acc1 is None else acc1 + term
    h1 = jnp.tanh(acc1 + pb1_ref[...])

    acc2 = None
    for dk in range(ksize):
        xk = jnp.dot(shift_mats[dk], h1,
                     preferred_element_type=jnp.float32)     # shifted h1
        term = jnp.dot(xk, pw2_ref[dk],
                       preferred_element_type=jnp.float32)   # [BS, OUT_W]
        acc2 = term if acc2 is None else acc2 + term
    post = acc2 + pb2_ref[...]                               # zero outside mel cols

    # Single unmasked lane-dense store: mel+postnet residual in cols [0:n_mels],
    # stop logit in col n_mels, zeros elsewhere.
    out_ref[...] = head + post


# ------------------------------ wrapper -------------------------------------
def _full_spec(shape):
    nd = len(shape)
    return pl.BlockSpec(shape, lambda i, _nd=nd: (0,) * _nd)


def sinusoidal_encoding(seq_len, d_model):
    pos = jnp.arange(seq_len, dtype=jnp.float32)[:, None]
    i = jnp.arange(d_model // 2, dtype=jnp.float32)[None, :]
    angle = pos / jnp.power(10000.0, 2.0 * i / d_model)
    pe = jnp.zeros((seq_len, d_model), jnp.float32)
    pe = pe.at[:, 0::2].set(jnp.sin(angle))
    pe = pe.at[:, 1::2].set(jnp.cos(angle))
    return pe


def talkgpt_forward(params, x, cfg):
    B, S, _ = x.shape
    d = cfg.d_model
    BS = B * S

    # Host-side layout plumbing only (free XLA reshapes / tiles).
    x2 = x.reshape(BS, cfg.n_mels)
    pe = jnp.tile(sinusoidal_encoding(S, d), (B, 1))          # [BS, d]

    weights = (
        pe,
        params["mel_embedding"],
        params["lnp"],
        params["wqkv"], params["bqkv"],
        params["wo"], params["bo"],
        params["w1"], params["b1"],
        params["w2"], params["b2"],
        params["head_w"], params["head_b"],
        params["post_w1"], params["post_b1"],
        params["post_w2"], params["post_b2"],
    )

    kern = functools.partial(
        talkgpt_kernel,
        batch=B, seq=S, n_blocks=cfg.n_blocks, n_heads=cfg.n_heads,
        d_model=d, n_mels=cfg.n_mels, ksize=cfg.post_kernel)

    in_specs = [_full_spec(x2.shape)] + [_full_spec(w.shape) for w in weights]

    out = pl.pallas_call(
        kern,
        grid=(1,),                                            # single grid step
        in_specs=in_specs,
        out_specs=pl.BlockSpec((BS, OUT_W), lambda i: (0, 0)),
        out_shape=jax.ShapeDtypeStruct((BS, OUT_W), jnp.float32),
        compiler_params=pltpu.CompilerParams(
            dimension_semantics=("arbitrary",)),
    )(x2, *weights)

    out = out.reshape(B, S, OUT_W)
    mel_spec = out[:, :, :cfg.n_mels]
    stop_label = out[:, :, cfg.n_mels:cfg.n_mels + 1]
    return mel_spec, stop_label


# ------------------------------ params --------------------------------------
def init_params(key, cfg):
    keys = iter(jax.random.split(key, 16))

    def nrm(shape, scale=0.02):
        return (scale * jax.random.normal(next(keys), shape)).astype(jnp.float32)

    d, nb = cfg.d_model, cfg.n_blocks
    nm, pc, k = cfg.n_mels, cfg.post_channels, cfg.post_kernel

    # Fused, lane-dense output head: melspec_linear (bias) + stop (no bias).
    melspec_w = nrm((d, nm))
    melspec_b = nrm((nm,))
    stop_w = nrm((d, 1))
    head_w = jnp.concatenate(
        [melspec_w, stop_w, jnp.zeros((d, OUT_W - nm - 1), jnp.float32)], axis=1)
    head_b = jnp.concatenate(
        [melspec_b, jnp.zeros((OUT_W - nm,), jnp.float32)])[None, :]

    # Post-net conv weights in [k, C_in, C_out] im2col layout; conv2's output
    # dim zero-padded to OUT_W so the kernel's final store is a single
    # unmasked lane-dense write.
    post_w1 = nrm((k, nm, pc))
    post_b1 = nrm((1, pc))
    post_w2_core = nrm((k, pc, nm))
    post_w2 = jnp.concatenate(
        [post_w2_core, jnp.zeros((k, pc, OUT_W - nm), jnp.float32)], axis=2)
    post_b2 = jnp.concatenate(
        [nrm((nm,)), jnp.zeros((OUT_W - nm,), jnp.float32)])[None, :]

    # LayerNorm params stacked: [nb, 4, 1, d] = (ln1_g, ln1_b, ln2_g, ln2_b)
    lnp = jnp.stack(
        [jnp.ones((nb, 1, d)), jnp.zeros((nb, 1, d)),
         jnp.ones((nb, 1, d)), jnp.zeros((nb, 1, d))], axis=1).astype(jnp.float32)

    params = {
        "mel_embedding": nrm((nm, d)),       # Linear(n_mels, d, bias=False)
        "lnp": lnp,
        "wqkv": nrm((nb, 3, d, d)),          # Q/K/V as three aligned [d,d] mats
        "bqkv": jnp.zeros((nb, 3, 1, d), jnp.float32),
        "wo": nrm((nb, d, d)),
        "bo": jnp.zeros((nb, 1, d), jnp.float32),
        "w1": nrm((nb, d, cfg.d_ff)),
        "b1": jnp.zeros((nb, 1, cfg.d_ff), jnp.float32),
        "w2": nrm((nb, cfg.d_ff, d)),
        "b2": jnp.zeros((nb, 1, d), jnp.float32),
        "head_w": head_w,
        "head_b": head_b,
        "post_w1": post_w1,
        "post_b1": post_b1,
        "post_w2": post_w2,
        "post_b2": post_b2,
    }
    return params


# ------------------------------ main ----------------------------------------
if __name__ == "__main__":
    key = jax.random.PRNGKey(0)
    pkey, xkey = jax.random.split(key)
    params = init_params(pkey, CFG)
    x = jax.random.normal(xkey, (CFG.batch, CFG.seq_len, CFG.n_mels),
                          jnp.float32)

    mel_spec, stop_label = talkgpt_forward(params, x, CFG)
    jax.block_until_ready((mel_spec, stop_label))

    assert mel_spec.shape == (CFG.batch, CFG.seq_len, CFG.n_mels)
    assert stop_label.shape == (CFG.batch, CFG.seq_len, 1)
    assert bool(jnp.all(jnp.isfinite(mel_spec)))
    assert bool(jnp.all(jnp.isfinite(stop_label)))
    print("KERNEL_OK")
</pallas_src>

<mosaic_0001>
module attributes {stable_mosaic.version = 11 : i64} {
  func.func @talkgpt_kernel(%arg0: i32, %arg1: memref<16x16xf32, #tpu.memory_space<vmem>>, %arg2: memref<16x32xf32, #tpu.memory_space<vmem>>, %arg3: memref<16x32xf32, #tpu.memory_space<vmem>>, %arg4: memref<2x4x1x32xf32, #tpu.memory_space<vmem>>, %arg5: memref<2x3x32x32xf32, #tpu.memory_space<vmem>>, %arg6: memref<2x3x1x32xf32, #tpu.memory_space<vmem>>, %arg7: memref<2x32x32xf32, #tpu.memory_space<vmem>>, %arg8: memref<2x1x32xf32, #tpu.memory_space<vmem>>, %arg9: memref<2x32x64xf32, #tpu.memory_space<vmem>>, %arg10: memref<2x1x64xf32, #tpu.memory_space<vmem>>, %arg11: memref<2x64x32xf32, #tpu.memory_space<vmem>>, %arg12: memref<2x1x32xf32, #tpu.memory_space<vmem>>, %arg13: memref<32x128xf32, #tpu.memory_space<vmem>>, %arg14: memref<1x128xf32, #tpu.memory_space<vmem>>, %arg15: memref<5x16x32xf32, #tpu.memory_space<vmem>>, %arg16: memref<1x32xf32, #tpu.memory_space<vmem>>, %arg17: memref<5x32x128xf32, #tpu.memory_space<vmem>>, %arg18: memref<1x128xf32, #tpu.memory_space<vmem>>, %arg19: memref<16x128xf32, #tpu.memory_space<vmem>>) attributes {dimension_semantics = [#tpu.dimension_semantics<arbitrary>], iteration_bounds = array<i64: 1>, scalar_prefetch = 0 : i64, scratch_operands = 0 : i64, tpu.core_type = #tpu.core_type<tc>, window_params = [{pipeline_mode = #tpu.pipeline_mode<synchronous>, transform_indices = @transform_0, window_bounds = array<i64: 16, 16>}, {pipeline_mode = #tpu.pipeline_mode<synchronous>, transform_indices = @transform_1, window_bounds = array<i64: 16, 32>}, {pipeline_mode = #tpu.pipeline_mode<synchronous>, transform_indices = @transform_2, window_bounds = array<i64: 16, 32>}, {pipeline_mode = #tpu.pipeline_mode<synchronous>, transform_indices = @transform_3, window_bounds = array<i64: 2, 4, 1, 32>}, {pipeline_mode = #tpu.pipeline_mode<synchronous>, transform_indices = @transform_4, window_bounds = array<i64: 2, 3, 32, 32>}, {pipeline_mode = #tpu.pipeline_mode<synchronous>, transform_indices = @transform_5, window_bounds = array<i64: 2, 3, 1, 32>}, {pipeline_mode = #tpu.pipeline_mode<synchronous>, transform_indices = @transform_6, window_bounds = array<i64: 2, 32, 32>}, {pipeline_mode = #tpu.pipeline_mode<synchronous>, transform_indices = @transform_7, window_bounds = array<i64: 2, 1, 32>}, {pipeline_mode = #tpu.pipeline_mode<synchronous>, transform_indices = @transform_8, window_bounds = array<i64: 2, 32, 64>}, {pipeline_mode = #tpu.pipeline_mode<synchronous>, transform_indices = @transform_9, window_bounds = array<i64: 2, 1, 64>}, {pipeline_mode = #tpu.pipeline_mode<synchronous>, transform_indices = @transform_10, window_bounds = array<i64: 2, 64, 32>}, {pipeline_mode = #tpu.pipeline_mode<synchronous>, transform_indices = @transform_11, window_bounds = array<i64: 2, 1, 32>}, {pipeline_mode = #tpu.pipeline_mode<synchronous>, transform_indices = @transform_12, window_bounds = array<i64: 32, 128>}, {pipeline_mode = #tpu.pipeline_mode<synchronous>, transform_indices = @transform_13, window_bounds = array<i64: 1, 128>}, {pipeline_mode = #tpu.pipeline_mode<synchronous>, transform_indices = @transform_14, window_bounds = array<i64: 5, 16, 32>}, {pipeline_mode = #tpu.pipeline_mode<synchronous>, transform_indices = @transform_15, window_bounds = array<i64: 1, 32>}, {pipeline_mode = #tpu.pipeline_mode<synchronous>, transform_indices = @transform_16, window_bounds = array<i64: 5, 32, 128>}, {pipeline_mode = #tpu.pipeline_mode<synchronous>, transform_indices = @transform_17, window_bounds = array<i64: 1, 128>}, {pipeline_mode = #tpu.pipeline_mode<synchronous>, transform_indices = @transform_18, window_bounds = array<i64: 16, 128>}]} {
    %c0 = arith.constant 0 : index
    %c0_0 = arith.constant 0 : index
    %0 = vector.load %arg1[%c0, %c0_0] : memref<16x16xf32, #tpu.memory_space<vmem>>, vector<16x16xf32>
    %c0_1 = arith.constant 0 : index
    %c0_2 = arith.constant 0 : index
    %1 = vector.load %arg3[%c0_1, %c0_2] : memref<16x32xf32, #tpu.memory_space<vmem>>, vector<16x32xf32>
    %cst = arith.constant dense<0.000000e+00> : vector<16x32xf32>
    %2 = tpu.matmul %0, %1, %cst {dimension_numbers = #tpu.dot_dimension_numbers<[1], [0], [0], [1], [0, 0, 1, 1], [], []>} : vector<16x16xf32>, vector<16x32xf32>, vector<16x32xf32> -> vector<16x32xf32>
    %c0_3 = arith.constant 0 : index
    %c0_4 = arith.constant 0 : index
    %3 = vector.load %arg2[%c0_3, %c0_4] : memref<16x32xf32, #tpu.memory_space<vmem>>, vector<16x32xf32>
    %4 = arith.addf %2, %3 : vector<16x32xf32>
    %5 = tpu.iota {dimensions = array<i32: 0>} : vector<8x8xi32>
    %6 = tpu.iota {dimensions = array<i32: 1>} : vector<8x8xi32>
    %7 = arith.cmpi sgt, %6, %5 : vector<8x8xi32>
    %c0_5 = arith.constant 0 : index
    %c0_6 = arith.constant 0 : index
    %c0_7 = arith.constant 0 : index
    %c0_8 = arith.constant 0 : index
    %8 = vector.load %arg4[%c0_5, %c0_6, %c0_7, %c0_8] : memref<2x4x1x32xf32, #tpu.memory_space<vmem>>, vector<1x1x1x32xf32>
    %9 = vector.shape_cast %8 : vector<1x1x1x32xf32> to vector<1x32xf32>
    %c0_9 = arith.constant 0 : index
    %c1 = arith.constant 1 : index
    %c0_10 = arith.constant 0 : index
    %c0_11 = arith.constant 0 : index
    %10 = vector.load %arg4[%c0_9, %c1, %c0_10, %c0_11] : memref<2x4x1x32xf32, #tpu.memory_space<vmem>>, vector<1x1x1x32xf32>
    %11 = vector.shape_cast %10 : vector<1x1x1x32xf32> to vector<1x32xf32>
    %cst_12 = arith.constant dense<0.000000e+00> : vector<16xf32>
    %12 = vector.multi_reduction <add>, %4, %cst_12 [1] : vector<16x32xf32> to vector<16xf32>
    %13 = vector.shape_cast %12 : vector<16xf32> to vector<16x1xf32>
    %cst_13 = arith.constant 3.200000e+01 : f32
    %14 = vector.broadcast %cst_13 : f32 to vector<16x1xf32>
    %15 = arith.divf %13, %14 : vector<16x1xf32>
    %16 = vector.broadcast %15 : vector<16x1xf32> to vector<16x32xf32>
    %17 = arith.subf %4, %16 : vector<16x32xf32>
    %18 = arith.mulf %17, %17 : vector<16x32xf32>
    %cst_14 = arith.constant dense<0.000000e+00> : vector<16xf32>
    %19 = vector.multi_reduction <add>, %18, %cst_14 [1] : vector<16x32xf32> to vector<16xf32>
    %20 = vector.shape_cast %19 : vector<16xf32> to vector<16x1xf32>
    %cst_15 = arith.constant 3.200000e+01 : f32
    %21 = vector.broadcast %cst_15 : f32 to vector<16x1xf32>
    %22 = arith.divf %20, %21 : vector<16x1xf32>
    %23 = vector.broadcast %15 : vector<16x1xf32> to vector<16x32xf32>
    %24 = arith.subf %4, %23 : vector<16x32xf32>
    %cst_16 = arith.constant 9.99999974E-6 : f32
    %25 = vector.broadcast %cst_16 : f32 to vector<16x1xf32>
    %26 = arith.addf %22, %25 : vector<16x1xf32>
    %27 = math.rsqrt %26 : vector<16x1xf32>
    %28 = vector.broadcast %27 : vector<16x1xf32> to vector<16x32xf32>
    %29 = arith.mulf %24, %28 : vector<16x32xf32>
    %30 = vector.broadcast %9 : vector<1x32xf32> to vector<16x32xf32>
    %31 = arith.mulf %29, %30 : vector<16x32xf32>
    %32 = vector.broadcast %11 : vector<1x32xf32> to vector<16x32xf32>
    %33 = arith.addf %31, %32 : vector<16x32xf32>
    %c0_17 = arith.constant 0 : index
    %c0_18 = arith.constant 0 : index
    %c0_19 = arith.constant 0 : index
    %c0_20 = arith.constant 0 : index
    %34 = vector.load %arg5[%c0_17, %c0_18, %c0_19, %c0_20] : memref<2x3x32x32xf32, #tpu.memory_space<vmem>>, vector<1x1x32x32xf32>
    %35 = vector.shape_cast %34 : vector<1x1x32x32xf32> to vector<32x32xf32>
    %cst_21 = arith.constant dense<0.000000e+00> : vector<16x32xf32>
    %36 = tpu.matmul %33, %35, %cst_21 {dimension_numbers = #tpu.dot_dimension_numbers<[1], [0], [0], [1], [0, 0, 1, 1], [], []>} : vector<16x32xf32>, vector<32x32xf32>, vector<16x32xf32> -> vector<16x32xf32>
    %c0_22 = arith.constant 0 : index
    %c0_23 = arith.constant 0 : index
    %c0_24 = arith.constant 0 : index
    %c0_25 = arith.constant 0 : index
    %37 = vector.load %arg6[%c0_22, %c0_23, %c0_24, %c0_25] : memref<2x3x1x32xf32, #tpu.memory_space<vmem>>, vector<1x1x1x32xf32>
    %38 = vector.shape_cast %37 : vector<1x1x1x32xf32> to vector<1x32xf32>
    %39 = vector.broadcast %38 : vector<1x32xf32> to vector<16x32xf32>
    %40 = arith.addf %36, %39 : vector<16x32xf32>
    %c0_26 = arith.constant 0 : index
    %c1_27 = arith.constant 1 : index
    %c0_28 = arith.constant 0 : index
    %c0_29 = arith.constant 0 : index
    %41 = vector.load %arg5[%c0_26, %c1_27, %c0_28, %c0_29] : memref<2x3x32x32xf32, #tpu.memory_space<vmem>>, vector<1x1x32x32xf32>
    %42 = vector.shape_cast %41 : vector<1x1x32x32xf32> to vector<32x32xf32>
    %cst_30 = arith.constant dense<0.000000e+00> : vector<16x32xf32>
    %43 = tpu.matmul %33, %42, %cst_30 {dimension_numbers = #tpu.dot_dimension_numbers<[1], [0], [0], [1], [0, 0, 1, 1], [], []>} : vector<16x32xf32>, vector<32x32xf32>, vector<16x32xf32> -> vector<16x32xf32>
    %c0_31 = arith.constant 0 : index
    %c1_32 = arith.constant 1 : index
    %c0_33 = arith.constant 0 : index
    %c0_34 = arith.constant 0 : index
    %44 = vector.load %arg6[%c0_31, %c1_32, %c0_33, %c0_34] : memref<2x3x1x32xf32, #tpu.memory_space<vmem>>, vector<1x1x1x32xf32>
    %45 = vector.shape_cast %44 : vector<1x1x1x32xf32> to vector<1x32xf32>
    %46 = vector.broadcast %45 : vector<1x32xf32> to vector<16x32xf32>
    %47 = arith.addf %43, %46 : vector<16x32xf32>
    %c0_35 = arith.constant 0 : index
    %c2 = arith.constant 2 : index
    %c0_36 = arith.constant 0 : index
    %c0_37 = arith.constant 0 : index
    %48 = vector.load %arg5[%c0_35, %c2, %c0_36, %c0_37] : memref<2x3x32x32xf32, #tpu.memory_space<vmem>>, vector<1x1x32x32xf32>
    %49 = vector.shape_cast %48 : vector<1x1x32x32xf32> to vector<32x32xf32>
    %cst_38 = arith.constant dense<0.000000e+00> : vector<16x32xf32>
    %50 = tpu.matmul %33, %49, %cst_38 {dimension_numbers = #tpu.dot_dimension_numbers<[1], [0], [0], [1], [0, 0, 1, 1], [], []>} : vector<16x32xf32>, vector<32x32xf32>, vector<16x32xf32> -> vector<16x32xf32>
    %c0_39 = arith.constant 0 : index
    %c2_40 = arith.constant 2 : index
    %c0_41 = arith.constant 0 : index
    %c0_42 = arith.constant 0 : index
    %51 = vector.load %arg6[%c0_39, %c2_40, %c0_41, %c0_42] : memref<2x3x1x32xf32, #tpu.memory_space<vmem>>, vector<1x1x1x32xf32>
    %52 = vector.shape_cast %51 : vector<1x1x1x32xf32> to vector<1x32xf32>
    %53 = vector.broadcast %52 : vector<1x32xf32> to vector<16x32xf32>
    %54 = arith.addf %50, %53 : vector<16x32xf32>
    %c0_43 = arith.constant 0 : index
    %c0_44 = arith.constant 0 : index
    %c0_45 = arith.constant 0 : index
    %55 = vector.load %arg7[%c0_43, %c0_44, %c0_45] : memref<2x32x32xf32, #tpu.memory_space<vmem>>, vector<1x32x32xf32>
    %56 = vector.shape_cast %55 : vector<1x32x32xf32> to vector<32x32xf32>
    %cst_46 = arith.constant 0.000000e+00 : f32
    %57 = vector.broadcast %cst_46 : f32 to vector<8x32xf32>
    %58 = vector.extract_strided_slice %40 {offsets = [0, 0], sizes = [8, 8], strides = [1, 1]} : vector<16x32xf32> to vector<8x8xf32>
    %59 = vector.extract_strided_slice %47 {offsets = [0, 0], sizes = [8, 8], strides = [1, 1]} : vector<16x32xf32> to vector<8x8xf32>
    %60 = vector.extract_strided_slice %54 {offsets = [0, 0], sizes = [8, 8], strides = [1, 1]} : vector<16x32xf32> to vector<8x8xf32>
    %61 = tpu.transpose %59, [1, 0] : vector<8x8xf32> -> vector<8x8xf32>
    %cst_47 = arith.constant dense<0.000000e+00> : vector<8x8xf32>
    %62 = tpu.matmul %58, %61, %cst_47 {dimension_numbers = #tpu.dot_dimension_numbers<[1], [0], [0], [1], [0, 0, 1, 1], [], []>} : vector<8x8xf32>, vector<8x8xf32>, vector<8x8xf32> -> vector<8x8xf32>
    %cst_48 = arith.constant 0.353553385 : f32
    %63 = vector.broadcast %cst_48 : f32 to vector<8x8xf32>
    %64 = arith.mulf %62, %63 : vector<8x8xf32>
    %cst_49 = arith.constant -1.000000e+09 : f32
    %65 = vector.broadcast %cst_49 : f32 to vector<8x8xf32>
    %66 = arith.select %7, %65, %64 : vector<8x8xi1>, vector<8x8xf32>
    %cst_50 = arith.constant dense<0xFF800000> : vector<8xf32>
    %67 = vector.multi_reduction <maximumf>, %66, %cst_50 [1] : vector<8x8xf32> to vector<8xf32>
    %68 = vector.shape_cast %67 : vector<8xf32> to vector<8x1xf32>
    %69 = vector.broadcast %68 : vector<8x1xf32> to vector<8x8xf32>
    %70 = arith.subf %66, %69 : vector<8x8xf32>
    %71 = math.exp %70 : vector<8x8xf32>
    %cst_51 = arith.constant dense<0.000000e+00> : vector<8xf32>
    %72 = vector.multi_reduction <add>, %71, %cst_51 [1] : vector<8x8xf32> to vector<8xf32>
    %73 = vector.shape_cast %72 : vector<8xf32> to vector<8x1xf32>
    %74 = vector.broadcast %73 : vector<8x1xf32> to vector<8x8xf32>
    %75 = arith.divf %71, %74 : vector<8x8xf32>
    %cst_52 = arith.constant dense<0.000000e+00> : vector<8x8xf32>
    %76 = tpu.matmul %75, %60, %cst_52 {dimension_numbers = #tpu.dot_dimension_numbers<[1], [0], [0], [1], [0, 0, 1, 1], [], []>} : vector<8x8xf32>, vector<8x8xf32>, vector<8x8xf32> -> vector<8x8xf32>
    %77 = vector.extract_strided_slice %56 {offsets = [0, 0], sizes = [8, 32], strides = [1, 1]} : vector<32x32xf32> to vector<8x32xf32>
    %cst_53 = arith.constant dense<0.000000e+00> : vector<8x32xf32>
    %78 = tpu.matmul %76, %77, %cst_53 {dimension_numbers = #tpu.dot_dimension_numbers<[1], [0], [0], [1], [0, 0, 1, 1], [], []>} : vector<8x8xf32>, vector<8x32xf32>, vector<8x32xf32> -> vector<8x32xf32>
    %79 = arith.addf %57, %78 : vector<8x32xf32>
    %80 = vector.extract_strided_slice %40 {offsets = [0, 8], sizes = [8, 8], strides = [1, 1]} : vector<16x32xf32> to vector<8x8xf32>
    %81 = vector.extract_strided_slice %47 {offsets = [0, 8], sizes = [8, 8], strides = [1, 1]} : vector<16x32xf32> to vector<8x8xf32>
    %82 = vector.extract_strided_slice %54 {offsets = [0, 8], sizes = [8, 8], strides = [1, 1]} : vector<16x32xf32> to vector<8x8xf32>
    %83 = tpu.transpose %81, [1, 0] : vector<8x8xf32> -> vector<8x8xf32>
    %cst_54 = arith.constant dense<0.000000e+00> : vector<8x8xf32>
    %84 = tpu.matmul %80, %83, %cst_54 {dimension_numbers = #tpu.dot_dimension_numbers<[1], [0], [0], [1], [0, 0, 1, 1], [], []>} : vector<8x8xf32>, vector<8x8xf32>, vector<8x8xf32> -> vector<8x8xf32>
    %cst_55 = arith.constant 0.353553385 : f32
    %85 = vector.broadcast %cst_55 : f32 to vector<8x8xf32>
    %86 = arith.mulf %84, %85 : vector<8x8xf32>
    %cst_56 = arith.constant -1.000000e+09 : f32
    %87 = vector.broadcast %cst_56 : f32 to vector<8x8xf32>
    %88 = arith.select %7, %87, %86 : vector<8x8xi1>, vector<8x8xf32>
    %cst_57 = arith.constant dense<0xFF800000> : vector<8xf32>
    %89 = vector.multi_reduction <maximumf>, %88, %cst_57 [1] : vector<8x8xf32> to vector<8xf32>
    %90 = vector.shape_cast %89 : vector<8xf32> to vector<8x1xf32>
    %91 = vector.broadcast %90 : vector<8x1xf32> to vector<8x8xf32>
    %92 = arith.subf %88, %91 : vector<8x8xf32>
    %93 = math.exp %92 : vector<8x8xf32>
    %cst_58 = arith.constant dense<0.000000e+00> : vector<8xf32>
    %94 = vector.multi_reduction <add>, %93, %cst_58 [1] : vector<8x8xf32> to vector<8xf32>
    %95 = vector.shape_cast %94 : vector<8xf32> to vector<8x1xf32>
    %96 = vector.broadcast %95 : vector<8x1xf32> to vector<8x8xf32>
    %97 = arith.divf %93, %96 : vector<8x8xf32>
    %cst_59 = arith.constant dense<0.000000e+00> : vector<8x8xf32>
    %98 = tpu.matmul %97, %82, %cst_59 {dimension_numbers = #tpu.dot_dimension_numbers<[1], [0], [0], [1], [0, 0, 1, 1], [], []>} : vector<8x8xf32>, vector<8x8xf32>, vector<8x8xf32> -> vector<8x8xf32>
    %99 = vector.extract_strided_slice %56 {offsets = [8, 0], sizes = [8, 32], strides = [1, 1]} : vector<32x32xf32> to vector<8x32xf32>
    %cst_60 = arith.constant dense<0.000000e+00> : vector<8x32xf32>
    %100 = tpu.matmul %98, %99, %cst_60 {dimension_numbers = #tpu.dot_dimension_numbers<[1], [0], [0], [1], [0, 0, 1, 1], [], []>} : vector<8x8xf32>, vector<8x32xf32>, vector<8x32xf32> -> vector<8x32xf32>
    %101 = arith.addf %79, %100 : vector<8x32xf32>
    %102 = vector.extract_strided_slice %40 {offsets = [0, 16], sizes = [8, 8], strides = [1, 1]} : vector<16x32xf32> to vector<8x8xf32>
    %103 = vector.extract_strided_slice %47 {offsets = [0, 16], sizes = [8, 8], strides = [1, 1]} : vector<16x32xf32> to vector<8x8xf32>
    %104 = vector.extract_strided_slice %54 {offsets = [0, 16], sizes = [8, 8], strides = [1, 1]} : vector<16x32xf32> to vector<8x8xf32>
    %105 = tpu.transpose %103, [1, 0] : vector<8x8xf32> -> vector<8x8xf32>
    %cst_61 = arith.constant dense<0.000000e+00> : vector<8x8xf32>
    %106 = tpu.matmul %102, %105, %cst_61 {dimension_numbers = #tpu.dot_dimension_numbers<[1], [0], [0], [1], [0, 0, 1, 1], [], []>} : vector<8x8xf32>, vector<8x8xf32>, vector<8x8xf32> -> vector<8x8xf32>
    %cst_62 = arith.constant 0.353553385 : f32
    %107 = vector.broadcast %cst_62 : f32 to vector<8x8xf32>
    %108 = arith.mulf %106, %107 : vector<8x8xf32>
    %cst_63 = arith.constant -1.000000e+09 : f32
    %109 = vector.broadcast %cst_63 : f32 to vector<8x8xf32>
    %110 = arith.select %7, %109, %108 : vector<8x8xi1>, vector<8x8xf32>
    %cst_64 = arith.constant dense<0xFF800000> : vector<8xf32>
    %111 = vector.multi_reduction <maximumf>, %110, %cst_64 [1] : vector<8x8xf32> to vector<8xf32>
    %112 = vector.shape_cast %111 : vector<8xf32> to vector<8x1xf32>
    %113 = vector.broadcast %112 : vector<8x1xf32> to vector<8x8xf32>
    %114 = arith.subf %110, %113 : vector<8x8xf32>
    %115 = math.exp %114 : vector<8x8xf32>
    %cst_65 = arith.constant dense<0.000000e+00> : vector<8xf32>
    %116 = vector.multi_reduction <add>, %115, %cst_65 [1] : vector<8x8xf32> to vector<8xf32>
    %117 = vector.shape_cast %116 : vector<8xf32> to vector<8x1xf32>
    %118 = vector.broadcast %117 : vector<8x1xf32> to vector<8x8xf32>
    %119 = arith.divf %115, %118 : vector<8x8xf32>
    %cst_66 = arith.constant dense<0.000000e+00> : vector<8x8xf32>
    %120 = tpu.matmul %119, %104, %cst_66 {dimension_numbers = #tpu.dot_dimension_numbers<[1], [0], [0], [1], [0, 0, 1, 1], [], []>} : vector<8x8xf32>, vector<8x8xf32>, vector<8x8xf32> -> vector<8x8xf32>
    %121 = vector.extract_strided_slice %56 {offsets = [16, 0], sizes = [8, 32], strides = [1, 1]} : vector<32x32xf32> to vector<8x32xf32>
    %cst_67 = arith.constant dense<0.000000e+00> : vector<8x32xf32>
    %122 = tpu.matmul %120, %121, %cst_67 {dimension_numbers = #tpu.dot_dimension_numbers<[1], [0], [0], [1], [0, 0, 1, 1], [], []>} : vector<8x8xf32>, vector<8x32xf32>, vector<8x32xf32> -> vector<8x32xf32>
    %123 = arith.addf %101, %122 : vector<8x32xf32>
    %124 = vector.extract_strided_slice %40 {offsets = [0, 24], sizes = [8, 8], strides = [1, 1]} : vector<16x32xf32> to vector<8x8xf32>
    %125 = vector.extract_strided_slice %47 {offsets = [0, 24], sizes = [8, 8], strides = [1, 1]} : vector<16x32xf32> to vector<8x8xf32>
    %126 = vector.extract_strided_slice %54 {offsets = [0, 24], sizes = [8, 8], strides = [1, 1]} : vector<16x32xf32> to vector<8x8xf32>
    %127 = tpu.transpose %125, [1, 0] : vector<8x8xf32> -> vector<8x8xf32>
    %cst_68 = arith.constant dense<0.000000e+00> : vector<8x8xf32>
    %128 = tpu.matmul %124, %127, %cst_68 {dimension_numbers = #tpu.dot_dimension_numbers<[1], [0], [0], [1], [0, 0, 1, 1], [], []>} : vector<8x8xf32>, vector<8x8xf32>, vector<8x8xf32> -> vector<8x8xf32>
    %cst_69 = arith.constant 0.353553385 : f32
    %129 = vector.broadcast %cst_69 : f32 to vector<8x8xf32>
    %130 = arith.mulf %128, %129 : vector<8x8xf32>
    %cst_70 = arith.constant -1.000000e+09 : f32
    %131 = vector.broadcast %cst_70 : f32 to vector<8x8xf32>
    %132 = arith.select %7, %131, %130 : vector<8x8xi1>, vector<8x8xf32>
    %cst_71 = arith.constant dense<0xFF800000> : vector<8xf32>
    %133 = vector.multi_reduction <maximumf>, %132, %cst_71 [1] : vector<8x8xf32> to vector<8xf32>
    %134 = vector.shape_cast %133 : vector<8xf32> to vector<8x1xf32>
    %135 = vector.broadcast %134 : vector<8x1xf32> to vector<8x8xf32>
    %136 = arith.subf %132, %135 : vector<8x8xf32>
    %137 = math.exp %136 : vector<8x8xf32>
    %cst_72 = arith.constant dense<0.000000e+00> : vector<8xf32>
    %138 = vector.multi_reduction <add>, %137, %cst_72 [1] : vector<8x8xf32> to vector<8xf32>
    %139 = vector.shape_cast %138 : vector<8xf32> to vector<8x1xf32>
    %140 = vector.broadcast %139 : vector<8x1xf32> to vector<8x8xf32>
    %141 = arith.divf %137, %140 : vector<8x8xf32>
    %cst_73 = arith.constant dense<0.000000e+00> : vector<8x8xf32>
    %142 = tpu.matmul %141, %126, %cst_73 {dimension_numbers = #tpu.dot_dimension_numbers<[1], [0], [0], [1], [0, 0, 1, 1], [], []>} : vector<8x8xf32>, vector<8x8xf32>, vector<8x8xf32> -> vector<8x8xf32>
    %143 = vector.extract_strided_slice %56 {offsets = [24, 0], sizes = [8, 32], strides = [1, 1]} : vector<32x32xf32> to vector<8x32xf32>
    %cst_74 = arith.constant dense<0.000000e+00> : vector<8x32xf32>
    %144 = tpu.matmul %142, %143, %cst_74 {dimension_numbers = #tpu.dot_dimension_numbers<[1], [0], [0], [1], [0, 0, 1, 1], [], []>} : vector<8x8xf32>, vector<8x32xf32>, vector<8x32xf32> -> vector<8x32xf32>
    %145 = arith.addf %123, %144 : vector<8x32xf32>
    %cst_75 = arith.constant 0.000000e+00 : f32
    %146 = vector.broadcast %cst_75 : f32 to vector<8x32xf32>
    %147 = vector.extract_strided_slice %40 {offsets = [8, 0], sizes = [8, 8], strides = [1, 1]} : vector<16x32xf32> to vector<8x8xf32>
    %148 = vector.extract_strided_slice %47 {offsets = [8, 0], sizes = [8, 8], strides = [1, 1]} : vector<16x32xf32> to vector<8x8xf32>
    %149 = vector.extract_strided_slice %54 {offsets = [8, 0], sizes = [8, 8], strides = [1, 1]} : vector<16x32xf32> to vector<8x8xf32>
    %150 = tpu.transpose %148, [1, 0] : vector<8x8xf32> -> vector<8x8xf32>
    %cst_76 = arith.constant dense<0.000000e+00> : vector<8x8xf32>
    %151 = tpu.matmul %147, %150, %cst_76 {dimension_numbers = #tpu.dot_dimension_numbers<[1], [0], [0], [1], [0, 0, 1, 1], [], []>} : vector<8x8xf32>, vector<8x8xf32>, vector<8x8xf32> -> vector<8x8xf32>
    %cst_77 = arith.constant 0.353553385 : f32
    %152 = vector.broadcast %cst_77 : f32 to vector<8x8xf32>
    %153 = arith.mulf %151, %152 : vector<8x8xf32>
    %cst_78 = arith.constant -1.000000e+09 : f32
    %154 = vector.broadcast %cst_78 : f32 to vector<8x8xf32>
    %155 = arith.select %7, %154, %153 : vector<8x8xi1>, vector<8x8xf32>
    %cst_79 = arith.constant dense<0xFF800000> : vector<8xf32>
    %156 = vector.multi_reduction <maximumf>, %155, %cst_79 [1] : vector<8x8xf32> to vector<8xf32>
    %157 = vector.shape_cast %156 : vector<8xf32> to vector<8x1xf32>
    %158 = vector.broadcast %157 : vector<8x1xf32> to vector<8x8xf32>
    %159 = arith.subf %155, %158 : vector<8x8xf32>
    %160 = math.exp %159 : vector<8x8xf32>
    %cst_80 = arith.constant dense<0.000000e+00> : vector<8xf32>
    %161 = vector.multi_reduction <add>, %160, %cst_80 [1] : vector<8x8xf32> to vector<8xf32>
    %162 = vector.shape_cast %161 : vector<8xf32> to vector<8x1xf32>
    %163 = vector.broadcast %162 : vector<8x1xf32> to vector<8x8xf32>
    %164 = arith.divf %160, %163 : vector<8x8xf32>
    %cst_81 = arith.constant dense<0.000000e+00> : vector<8x8xf32>
    %165 = tpu.matmul %164, %149, %cst_81 {dimension_numbers = #tpu.dot_dimension_numbers<[1], [0], [0], [1], [0, 0, 1, 1], [], []>} : vector<8x8xf32>, vector<8x8xf32>, vector<8x8xf32> -> vector<8x8xf32>
    %166 = vector.extract_strided_slice %56 {offsets = [0, 0], sizes = [8, 32], strides = [1, 1]} : vector<32x32xf32> to vector<8x32xf32>
    %cst_82 = arith.constant dense<0.000000e+00> : vector<8x32xf32>
    %167 = tpu.matmul %165, %166, %cst_82 {dimension_numbers = #tpu.dot_dimension_numbers<[1], [0], [0], [1], [0, 0, 1, 1], [], []>} : vector<8x8xf32>, vector<8x32xf32>, vector<8x32xf32> -> vector<8x32xf32>
    %168 = arith.addf %146, %167 : vector<8x32xf32>
    %169 = vector.extract_strided_slice %40 {offsets = [8, 8], sizes = [8, 8], strides = [1, 1]} : vector<16x32xf32> to vector<8x8xf32>
    %170 = vector.extract_strided_slice %47 {offsets = [8, 8], sizes = [8, 8], strides = [1, 1]} : vector<16x32xf32> to vector<8x8xf32>
    %171 = vector.extract_strided_slice %54 {offsets = [8, 8], sizes = [8, 8], strides = [1, 1]} : vector<16x32xf32> to vector<8x8xf32>
    %172 = tpu.transpose %170, [1, 0] : vector<8x8xf32> -> vector<8x8xf32>
    %cst_83 = arith.constant dense<0.000000e+00> : vector<8x8xf32>
    %173 = tpu.matmul %169, %172, %cst_83 {dimension_numbers = #tpu.dot_dimension_numbers<[1], [0], [0], [1], [0, 0, 1, 1], [], []>} : vector<8x8xf32>, vector<8x8xf32>, vector<8x8xf32> -> vector<8x8xf32>
    %cst_84 = arith.constant 0.353553385 : f32
    %174 = vector.broadcast %cst_84 : f32 to vector<8x8xf32>
    %175 = arith.mulf %173, %174 : vector<8x8xf32>
    %cst_85 = arith.constant -1.000000e+09 : f32
    %176 = vector.broadcast %cst_85 : f32 to vector<8x8xf32>
    %177 = arith.select %7, %176, %175 : vector<8x8xi1>, vector<8x8xf32>
    %cst_86 = arith.constant dense<0xFF800000> : vector<8xf32>
    %178 = vector.multi_reduction <maximumf>, %177, %cst_86 [1] : vector<8x8xf32> to vector<8xf32>
    %179 = vector.shape_cast %178 : vector<8xf32> to vector<8x1xf32>
    %180 = vector.broadcast %179 : vector<8x1xf32> to vector<8x8xf32>
    %181 = arith.subf %177, %180 : vector<8x8xf32>
    %182 = math.exp %181 : vector<8x8xf32>
    %cst_87 = arith.constant dense<0.000000e+00> : vector<8xf32>
    %183 = vector.multi_reduction <add>, %182, %cst_87 [1] : vector<8x8xf32> to vector<8xf32>
    %184 = vector.shape_cast %183 : vector<8xf32> to vector<8x1xf32>
    %185 = vector.broadcast %184 : vector<8x1xf32> to vector<8x8xf32>
    %186 = arith.divf %182, %185 : vector<8x8xf32>
    %cst_88 = arith.constant dense<0.000000e+00> : vector<8x8xf32>
    %187 = tpu.matmul %186, %171, %cst_88 {dimension_numbers = #tpu.dot_dimension_numbers<[1], [0], [0], [1], [0, 0, 1, 1], [], []>} : vector<8x8xf32>, vector<8x8xf32>, vector<8x8xf32> -> vector<8x8xf32>
    %188 = vector.extract_strided_slice %56 {offsets = [8, 0], sizes = [8, 32], strides = [1, 1]} : vector<32x32xf32> to vector<8x32xf32>
    %cst_89 = arith.constant dense<0.000000e+00> : vector<8x32xf32>
    %189 = tpu.matmul %187, %188, %cst_89 {dimension_numbers = #tpu.dot_dimension_numbers<[1], [0], [0], [1], [0, 0, 1, 1], [], []>} : vector<8x8xf32>, vector<8x32xf32>, vector<8x32xf32> -> vector<8x32xf32>
    %190 = arith.addf %168, %189 : vector<8x32xf32>
    %191 = vector.extract_strided_slice %40 {offsets = [8, 16], sizes = [8, 8], strides = [1, 1]} : vector<16x32xf32> to vector<8x8xf32>
    %192 = vector.extract_strided_slice %47 {offsets = [8, 16], sizes = [8, 8], strides = [1, 1]} : vector<16x32xf32> to vector<8x8xf32>
    %193 = vector.extract_strided_slice %54 {offsets = [8, 16], sizes = [8, 8], strides = [1, 1]} : vector<16x32xf32> to vector<8x8xf32>
    %194 = tpu.transpose %192, [1, 0] : vector<8x8xf32> -> vector<8x8xf32>
    %cst_90 = arith.constant dense<0.000000e+00> : vector<8x8xf32>
    %195 = tpu.matmul %191, %194, %cst_90 {dimension_numbers = #tpu.dot_dimension_numbers<[1], [0], [0], [1], [0, 0, 1, 1], [], []>} : vector<8x8xf32>, vector<8x8xf32>, vector<8x8xf32> -> vector<8x8xf32>
    %cst_91 = arith.constant 0.353553385 : f32
    %196 = vector.broadcast %cst_91 : f32 to vector<8x8xf32>
    %197 = arith.mulf %195, %196 : vector<8x8xf32>
    %cst_92 = arith.constant -1.000000e+09 : f32
    %198 = vector.broadcast %cst_92 : f32 to vector<8x8xf32>
    %199 = arith.select %7, %198, %197 : vector<8x8xi1>, vector<8x8xf32>
    %cst_93 = arith.constant dense<0xFF800000> : vector<8xf32>
    %200 = vector.multi_reduction <maximumf>, %199, %cst_93 [1] : vector<8x8xf32> to vector<8xf32>
    %201 = vector.shape_cast %200 : vector<8xf32> to vector<8x1xf32>
    %202 = vector.broadcast %201 : vector<8x1xf32> to vector<8x8xf32>
    %203 = arith.subf %199, %202 : vector<8x8xf32>
    %204 = math.exp %203 : vector<8x8xf32>
    %cst_94 = arith.constant dense<0.000000e+00> : vector<8xf32>
    %205 = vector.multi_reduction <add>, %204, %cst_94 [1] : vector<8x8xf32> to vector<8xf32>
    %206 = vector.shape_cast %205 : vector<8xf32> to vector<8x1xf32>
    %207 = vector.broadcast %206 : vector<8x1xf32> to vector<8x8xf32>
    %208 = arith.divf %204, %207 : vector<8x8xf32>
    %cst_95 = arith.constant dense<0.000000e+00> : vector<8x8xf32>
    %209 = tpu.matmul %208, %193, %cst_95 {dimension_numbers = #tpu.dot_dimension_numbers<[1], [0], [0], [1], [0, 0, 1, 1], [], []>} : vector<8x8xf32>, vector<8x8xf32>, vector<8x8xf32> -> vector<8x8xf32>
    %210 = vector.extract_strided_slice %56 {offsets = [16, 0], sizes = [8, 32], strides = [1, 1]} : vector<32x32xf32> to vector<8x32xf32>
    %cst_96 = arith.constant dense<0.000000e+00> : vector<8x32xf32>
    %211 = tpu.matmul %209, %210, %cst_96 {dimension_numbers = #tpu.dot_dimension_numbers<[1], [0], [0], [1], [0, 0, 1, 1], [], []>} : vector<8x8xf32>, vector<8x32xf32>, vector<8x32xf32> -> vector<8x32xf32>
    %212 = arith.addf %190, %211 : vector<8x32xf32>
    %213 = vector.extract_strided_slice %40 {offsets = [8, 24], sizes = [8, 8], strides = [1, 1]} : vector<16x32xf32> to vector<8x8xf32>
    %214 = vector.extract_strided_slice %47 {offsets = [8, 24], sizes = [8, 8], strides = [1, 1]} : vector<16x32xf32> to vector<8x8xf32>
    %215 = vector.extract_strided_slice %54 {offsets = [8, 24], sizes = [8, 8], strides = [1, 1]} : vector<16x32xf32> to vector<8x8xf32>
    %216 = tpu.transpose %214, [1, 0] : vector<8x8xf32> -> vector<8x8xf32>
    %cst_97 = arith.constant dense<0.000000e+00> : vector<8x8xf32>
    %217 = tpu.matmul %213, %216, %cst_97 {dimension_numbers = #tpu.dot_dimension_numbers<[1], [0], [0], [1], [0, 0, 1, 1], [], []>} : vector<8x8xf32>, vector<8x8xf32>, vector<8x8xf32> -> vector<8x8xf32>
    %cst_98 = arith.constant 0.353553385 : f32
    %218 = vector.broadcast %cst_98 : f32 to vector<8x8xf32>
    %219 = arith.mulf %217, %218 : vector<8x8xf32>
    %cst_99 = arith.constant -1.000000e+09 : f32
    %220 = vector.broadcast %cst_99 : f32 to vector<8x8xf32>
    %221 = arith.select %7, %220, %219 : vector<8x8xi1>, vector<8x8xf32>
    %cst_100 = arith.constant dense<0xFF800000> : vector<8xf32>
    %222 = vector.multi_reduction <maximumf>, %221, %cst_100 [1] : vector<8x8xf32> to vector<8xf32>
    %223 = vector.shape_cast %222 : vector<8xf32> to vector<8x1xf32>
    %224 = vector.broadcast %223 : vector<8x1xf32> to vector<8x8xf32>
    %225 = arith.subf %221, %224 : vector<8x8xf32>
    %226 = math.exp %225 : vector<8x8xf32>
    %cst_101 = arith.constant dense<0.000000e+00> : vector<8xf32>
    %227 = vector.multi_reduction <add>, %226, %cst_101 [1] : vector<8x8xf32> to vector<8xf32>
    %228 = vector.shape_cast %227 : vector<8xf32> to vector<8x1xf32>
    %229 = vector.broadcast %228 : vector<8x1xf32> to vector<8x8xf32>
    %230 = arith.divf %226, %229 : vector<8x8xf32>
    %cst_102 = arith.constant dense<0.000000e+00> : vector<8x8xf32>
    %231 = tpu.matmul %230, %215, %cst_102 {dimension_numbers = #tpu.dot_dimension_numbers<[1], [0], [0], [1], [0, 0, 1, 1], [], []>} : vector<8x8xf32>, vector<8x8xf32>, vector<8x8xf32> -> vector<8x8xf32>
    %232 = vector.extract_strided_slice %56 {offsets = [24, 0], sizes = [8, 32], strides = [1, 1]} : vector<32x32xf32> to vector<8x32xf32>
    %cst_103 = arith.constant dense<0.000000e+00> : vector<8x32xf32>
    %233 = tpu.matmul %231, %232, %cst_103 {dimension_numbers = #tpu.dot_dimension_numbers<[1], [0], [0], [1], [0, 0, 1, 1], [], []>} : vector<8x8xf32>, vector<8x32xf32>, vector<8x32xf32> -> vector<8x32xf32>
    %234 = arith.addf %212, %233 : vector<8x32xf32>
    %235 = tpu.concatenate %145, %234 in 0 : vector<8x32xf32>, vector<8x32xf32> -> vector<16x32xf32>
    %236 = arith.addf %4, %235 : vector<16x32xf32>
    %c0_104 = arith.constant 0 : index
    %c0_105 = arith.constant 0 : index
    %c0_106 = arith.constant 0 : index
    %237 = vector.load %arg8[%c0_104, %c0_105, %c0_106] : memref<2x1x32xf32, #tpu.memory_space<vmem>>, vector<1x1x32xf32>
    %238 = vector.shape_cast %237 : vector<1x1x32xf32> to vector<1x32xf32>
    %239 = vector.broadcast %238 : vector<1x32xf32> to vector<16x32xf32>
    %240 = arith.addf %236, %239 : vector<16x32xf32>
    %c0_107 = arith.constant 0 : index
    %c2_108 = arith.constant 2 : index
    %c0_109 = arith.constant 0 : index
    %c0_110 = arith.constant 0 : index
    %241 = vector.load %arg4[%c0_107, %c2_108, %c0_109, %c0_110] : memref<2x4x1x32xf32, #tpu.memory_space<vmem>>, vector<1x1x1x32xf32>
    %242 = vector.shape_cast %241 : vector<1x1x1x32xf32> to vector<1x32xf32>
    %c0_111 = arith.constant 0 : index
    %c3 = arith.constant 3 : index
    %c0_112 = arith.constant 0 : index
    %c0_113 = arith.constant 0 : index
    %243 = vector.load %arg4[%c0_111, %c3, %c0_112, %c0_113] : memref<2x4x1x32xf32, #tpu.memory_space<vmem>>, vector<1x1x1x32xf32>
    %244 = vector.shape_cast %243 : vector<1x1x1x32xf32> to vector<1x32xf32>
    %cst_114 = arith.constant dense<0.000000e+00> : vector<16xf32>
    %245 = vector.multi_reduction <add>, %240, %cst_114 [1] : vector<16x32xf32> to vector<16xf32>
    %246 = vector.shape_cast %245 : vector<16xf32> to vector<16x1xf32>
    %cst_115 = arith.constant 3.200000e+01 : f32
    %247 = vector.broadcast %cst_115 : f32 to vector<16x1xf32>
    %248 = arith.divf %246, %247 : vector<16x1xf32>
    %249 = vector.broadcast %248 : vector<16x1xf32> to vector<16x32xf32>
    %250 = arith.subf %240, %249 : vector<16x32xf32>
    %251 = arith.mulf %250, %250 : vector<16x32xf32>
    %cst_116 = arith.constant dense<0.000000e+00> : vector<16xf32>
    %252 = vector.multi_reduction <add>, %251, %cst_116 [1] : vector<16x32xf32> to vector<16xf32>
    %253 = vector.shape_cast %252 : vector<16xf32> to vector<16x1xf32>
    %cst_117 = arith.constant 3.200000e+01 : f32
    %254 = vector.broadcast %cst_117 : f32 to vector<16x1xf32>
    %255 = arith.divf %253, %254 : vector<16x1xf32>
    %256 = vector.broadcast %248 : vector<16x1xf32> to vector<16x32xf32>
    %257 = arith.subf %240, %256 : vector<16x32xf32>
    %cst_118 = arith.constant 9.99999974E-6 : f32
    %258 = vector.broadcast %cst_118 : f32 to vector<16x1xf32>
    %259 = arith.addf %255, %258 : vector<16x1xf32>
    %260 = math.rsqrt %259 : vector<16x1xf32>
    %261 = vector.broadcast %260 : vector<16x1xf32> to vector<16x32xf32>
    %262 = arith.mulf %257, %261 : vector<16x32xf32>
    %263 = vector.broadcast %242 : vector<1x32xf32> to vector<16x32xf32>
    %264 = arith.mulf %262, %263 : vector<16x32xf32>
    %265 = vector.broadcast %244 : vector<1x32xf32> to vector<16x32xf32>
    %266 = arith.addf %264, %265 : vector<16x32xf32>
    %c0_119 = arith.constant 0 : index
    %c0_120 = arith.constant 0 : index
    %c0_121 = arith.constant 0 : index
    %267 = vector.load %arg9[%c0_119, %c0_120, %c0_121] : memref<2x32x64xf32, #tpu.memory_space<vmem>>, vector<1x32x64xf32>
    %268 = vector.shape_cast %267 : vector<1x32x64xf32> to vector<32x64xf32>
    %cst_122 = arith.constant dense<0.000000e+00> : vector<16x64xf32>
    %269 = tpu.matmul %266, %268, %cst_122 {dimension_numbers = #tpu.dot_dimension_numbers<[1], [0], [0], [1], [0, 0, 1, 1], [], []>} : vector<16x32xf32>, vector<32x64xf32>, vector<16x64xf32> -> vector<16x64xf32>
    %c0_123 = arith.constant 0 : index
    %c0_124 = arith.constant 0 : index
    %c0_125 = arith.constant 0 : index
    %270 = vector.load %arg10[%c0_123, %c0_124, %c0_125] : memref<2x1x64xf32, #tpu.memory_space<vmem>>, vector<1x1x64xf32>
    %271 = vector.shape_cast %270 : vector<1x1x64xf32> to vector<1x64xf32>
    %272 = vector.broadcast %271 : vector<1x64xf32> to vector<16x64xf32>
    %273 = arith.addf %269, %272 : vector<16x64xf32>
    %cst_126 = arith.constant 0.000000e+00 : f32
    %274 = vector.broadcast %cst_126 : f32 to vector<16x64xf32>
    %275 = arith.maximumf %273, %274 : vector<16x64xf32>
    %c0_127 = arith.constant 0 : index
    %c0_128 = arith.constant 0 : index
    %c0_129 = arith.constant 0 : index
    %276 = vector.load %arg11[%c0_127, %c0_128, %c0_129] : memref<2x64x32xf32, #tpu.memory_space<vmem>>, vector<1x64x32xf32>
    %277 = vector.shape_cast %276 : vector<1x64x32xf32> to vector<64x32xf32>
    %cst_130 = arith.constant dense<0.000000e+00> : vector<16x32xf32>
    %278 = tpu.matmul %275, %277, %cst_130 {dimension_numbers = #tpu.dot_dimension_numbers<[1], [0], [0], [1], [0, 0, 1, 1], [], []>} : vector<16x64xf32>, vector<64x32xf32>, vector<16x32xf32> -> vector<16x32xf32>
    %c0_131 = arith.constant 0 : index
    %c0_132 = arith.constant 0 : index
    %c0_133 = arith.constant 0 : index
    %279 = vector.load %arg12[%c0_131, %c0_132, %c0_133] : memref<2x1x32xf32, #tpu.memory_space<vmem>>, vector<1x1x32xf32>
    %280 = vector.shape_cast %279 : vector<1x1x32xf32> to vector<1x32xf32>
    %281 = vector.broadcast %280 : vector<1x32xf32> to vector<16x32xf32>
    %282 = arith.addf %278, %281 : vector<16x32xf32>
    %283 = arith.addf %240, %282 : vector<16x32xf32>
    %c1_134 = arith.constant 1 : index
    %c0_135 = arith.constant 0 : index
    %c0_136 = arith.constant 0 : index
    %c0_137 = arith.constant 0 : index
    %284 = vector.load %arg4[%c1_134, %c0_135, %c0_136, %c0_137] : memref<2x4x1x32xf32, #tpu.memory_space<vmem>>, vector<1x1x1x32xf32>
    %285 = vector.shape_cast %284 : vector<1x1x1x32xf32> to vector<1x32xf32>
    %c1_138 = arith.constant 1 : index
    %c1_139 = arith.constant 1 : index
    %c0_140 = arith.constant 0 : index
    %c0_141 = arith.constant 0 : index
    %286 = vector.load %arg4[%c1_138, %c1_139, %c0_140, %c0_141] : memref<2x4x1x32xf32, #tpu.memory_space<vmem>>, vector<1x1x1x32xf32>
    %287 = vector.shape_cast %286 : vector<1x1x1x32xf32> to vector<1x32xf32>
    %cst_142 = arith.constant dense<0.000000e+00> : vector<16xf32>
    %288 = vector.multi_reduction <add>, %283, %cst_142 [1] : vector<16x32xf32> to vector<16xf32>
    %289 = vector.shape_cast %288 : vector<16xf32> to vector<16x1xf32>
    %cst_143 = arith.constant 3.200000e+01 : f32
    %290 = vector.broadcast %cst_143 : f32 to vector<16x1xf32>
    %291 = arith.divf %289, %290 : vector<16x1xf32>
    %292 = vector.broadcast %291 : vector<16x1xf32> to vector<16x32xf32>
    %293 = arith.subf %283, %292 : vector<16x32xf32>
    %294 = arith.mulf %293, %293 : vector<16x32xf32>
    %cst_144 = arith.constant dense<0.000000e+00> : vector<16xf32>
    %295 = vector.multi_reduction <add>, %294, %cst_144 [1] : vector<16x32xf32> to vector<16xf32>
    %296 = vector.shape_cast %295 : vector<16xf32> to vector<16x1xf32>
    %cst_145 = arith.constant 3.200000e+01 : f32
    %297 = vector.broadcast %cst_145 : f32 to vector<16x1xf32>
    %298 = arith.divf %296, %297 : vector<16x1xf32>
    %299 = vector.broadcast %291 : vector<16x1xf32> to vector<16x32xf32>
    %300 = arith.subf %283, %299 : vector<16x32xf32>
    %cst_146 = arith.constant 9.99999974E-6 : f32
    %301 = vector.broadcast %cst_146 : f32 to vector<16x1xf32>
    %302 = arith.addf %298, %301 : vector<16x1xf32>
    %303 = math.rsqrt %302 : vector<16x1xf32>
    %304 = vector.broadcast %303 : vector<16x1xf32> to vector<16x32xf32>
    %305 = arith.mulf %300, %304 : vector<16x32xf32>
    %306 = vector.broadcast %285 : vector<1x32xf32> to vector<16x32xf32>
    %307 = arith.mulf %305, %306 : vector<16x32xf32>
    %308 = vector.broadcast %287 : vector<1x32xf32> to vector<16x32xf32>
    %309 = arith.addf %307, %308 : vector<16x32xf32>
    %c1_147 = arith.constant 1 : index
    %c0_148 = arith.constant 0 : index
    %c0_149 = arith.constant 0 : index
    %c0_150 = arith.constant 0 : index
    %310 = vector.load %arg5[%c1_147, %c0_148, %c0_149, %c0_150] : memref<2x3x32x32xf32, #tpu.memory_space<vmem>>, vector<1x1x32x32xf32>
    %311 = vector.shape_cast %310 : vector<1x1x32x32xf32> to vector<32x32xf32>
    %cst_151 = arith.constant dense<0.000000e+00> : vector<16x32xf32>
    %312 = tpu.matmul %309, %311, %cst_151 {dimension_numbers = #tpu.dot_dimension_numbers<[1], [0], [0], [1], [0, 0, 1, 1], [], []>} : vector<16x32xf32>, vector<32x32xf32>, vector<16x32xf32> -> vector<16x32xf32>
    %c1_152 = arith.constant 1 : index
    %c0_153 = arith.constant 0 : index
    %c0_154 = arith.constant 0 : index
    %c0_155 = arith.constant 0 : index
    %313 = vector.load %arg6[%c1_152, %c0_153, %c0_154, %c0_155] : memref<2x3x1x32xf32, #tpu.memory_space<vmem>>, vector<1x1x1x32xf32>
    %314 = vector.shape_cast %313 : vector<1x1x1x32xf32> to vector<1x32xf32>
    %315 = vector.broadcast %314 : vector<1x32xf32> to vector<16x32xf32>
    %316 = arith.addf %312, %315 : vector<16x32xf32>
    %c1_156 = arith.constant 1 : index
    %c1_157 = arith.constant 1 : index
    %c0_158 = arith.constant 0 : index
    %c0_159 = arith.constant 0 : index
    %317 = vector.load %arg5[%c1_156, %c1_157, %c0_158, %c0_159] : memref<2x3x32x32xf32, #tpu.memory_space<vmem>>, vector<1x1x32x32xf32>
    %318 = vector.shape_cast %317 : vector<1x1x32x32xf32> to vector<32x32xf32>
    %cst_160 = arith.constant dense<0.000000e+00> : vector<16x32xf32>
    %319 = tpu.matmul %309, %318, %cst_160 {dimension_numbers = #tpu.dot_dimension_numbers<[1], [0], [0], [1], [0, 0, 1, 1], [], []>} : vector<16x32xf32>, vector<32x32xf32>, vector<16x32xf32> -> vector<16x32xf32>
    %c1_161 = arith.constant 1 : index
    %c1_162 = arith.constant 1 : index
    %c0_163 = arith.constant 0 : index
    %c0_164 = arith.constant 0 : index
    %320 = vector.load %arg6[%c1_161, %c1_162, %c0_163, %c0_164] : memref<2x3x1x32xf32, #tpu.memory_space<vmem>>, vector<1x1x1x32xf32>
    %321 = vector.shape_cast %320 : vector<1x1x1x32xf32> to vector<1x32xf32>
    %322 = vector.broadcast %321 : vector<1x32xf32> to vector<16x32xf32>
    %323 = arith.addf %319, %322 : vector<16x32xf32>
    %c1_165 = arith.constant 1 : index
    %c2_166 = arith.constant 2 : index
    %c0_167 = arith.constant 0 : index
    %c0_168 = arith.constant 0 : index
    %324 = vector.load %arg5[%c1_165, %c2_166, %c0_167, %c0_168] : memref<2x3x32x32xf32, #tpu.memory_space<vmem>>, vector<1x1x32x32xf32>
    %325 = vector.shape_cast %324 : vector<1x1x32x32xf32> to vector<32x32xf32>
    %cst_169 = arith.constant dense<0.000000e+00> : vector<16x32xf32>
    %326 = tpu.matmul %309, %325, %cst_169 {dimension_numbers = #tpu.dot_dimension_numbers<[1], [0], [0], [1], [0, 0, 1, 1], [], []>} : vector<16x32xf32>, vector<32x32xf32>, vector<16x32xf32> -> vector<16x32xf32>
    %c1_170 = arith.constant 1 : index
    %c2_171 = arith.constant 2 : index
    %c0_172 = arith.constant 0 : index
    %c0_173 = arith.constant 0 : index
    %327 = vector.load %arg6[%c1_170, %c2_171, %c0_172, %c0_173] : memref<2x3x1x32xf32, #tpu.memory_space<vmem>>, vector<1x1x1x32xf32>
    %328 = vector.shape_cast %327 : vector<1x1x1x32xf32> to vector<1x32xf32>
    %329 = vector.broadcast %328 : vector<1x32xf32> to vector<16x32xf32>
    %330 = arith.addf %326, %329 : vector<16x32xf32>
    %c1_174 = arith.constant 1 : index
    %c0_175 = arith.constant 0 : index
    %c0_176 = arith.constant 0 : index
    %331 = vector.load %arg7[%c1_174, %c0_175, %c0_176] : memref<2x32x32xf32, #tpu.memory_space<vmem>>, vector<1x32x32xf32>
    %332 = vector.shape_cast %331 : vector<1x32x32xf32> to vector<32x32xf32>
    %cst_177 = arith.constant 0.000000e+00 : f32
    %333 = vector.broadcast %cst_177 : f32 to vector<8x32xf32>
    %334 = vector.extract_strided_slice %316 {offsets = [0, 0], sizes = [8, 8], strides = [1, 1]} : vector<16x32xf32> to vector<8x8xf32>
    %335 = vector.extract_strided_slice %323 {offsets = [0, 0], sizes = [8, 8], strides = [1, 1]} : vector<16x32xf32> to vector<8x8xf32>
    %336 = vector.extract_strided_slice %330 {offsets = [0, 0], sizes = [8, 8], strides = [1, 1]} : vector<16x32xf32> to vector<8x8xf32>
    %337 = tpu.transpose %335, [1, 0] : vector<8x8xf32> -> vector<8x8xf32>
    %cst_178 = arith.constant dense<0.000000e+00> : vector<8x8xf32>
    %338 = tpu.matmul %334, %337, %cst_178 {dimension_numbers = #tpu.dot_dimension_numbers<[1], [0], [0], [1], [0, 0, 1, 1], [], []>} : vector<8x8xf32>, vector<8x8xf32>, vector<8x8xf32> -> vector<8x8xf32>
    %cst_179 = arith.constant 0.353553385 : f32
    %339 = vector.broadcast %cst_179 : f32 to vector<8x8xf32>
    %340 = arith.mulf %338, %339 : vector<8x8xf32>
    %cst_180 = arith.constant -1.000000e+09 : f32
    %341 = vector.broadcast %cst_180 : f32 to vector<8x8xf32>
    %342 = arith.select %7, %341, %340 : vector<8x8xi1>, vector<8x8xf32>
    %cst_181 = arith.constant dense<0xFF800000> : vector<8xf32>
    %343 = vector.multi_reduction <maximumf>, %342, %cst_181 [1] : vector<8x8xf32> to vector<8xf32>
    %344 = vector.shape_cast %343 : vector<8xf32> to vector<8x1xf32>
    %345 = vector.broadcast %344 : vector<8x1xf32> to vector<8x8xf32>
    %346 = arith.subf %342, %345 : vector<8x8xf32>
    %347 = math.exp %346 : vector<8x8xf32>
    %cst_182 = arith.constant dense<0.000000e+00> : vector<8xf32>
    %348 = vector.multi_reduction <add>, %347, %cst_182 [1] : vector<8x8xf32> to vector<8xf32>
    %349 = vector.shape_cast %348 : vector<8xf32> to vector<8x1xf32>
    %350 = vector.broadcast %349 : vector<8x1xf32> to vector<8x8xf32>
    %351 = arith.divf %347, %350 : vector<8x8xf32>
    %cst_183 = arith.constant dense<0.000000e+00> : vector<8x8xf32>
    %352 = tpu.matmul %351, %336, %cst_183 {dimension_numbers = #tpu.dot_dimension_numbers<[1], [0], [0], [1], [0, 0, 1, 1], [], []>} : vector<8x8xf32>, vector<8x8xf32>, vector<8x8xf32> -> vector<8x8xf32>
    %353 = vector.extract_strided_slice %332 {offsets = [0, 0], sizes = [8, 32], strides = [1, 1]} : vector<32x32xf32> to vector<8x32xf32>
    %cst_184 = arith.constant dense<0.000000e+00> : vector<8x32xf32>
    %354 = tpu.matmul %352, %353, %cst_184 {dimension_numbers = #tpu.dot_dimension_numbers<[1], [0], [0], [1], [0, 0, 1, 1], [], []>} : vector<8x8xf32>, vector<8x32xf32>, vector<8x32xf32> -> vector<8x32xf32>
    %355 = arith.addf %333, %354 : vector<8x32xf32>
    %356 = vector.extract_strided_slice %316 {offsets = [0, 8], sizes = [8, 8], strides = [1, 1]} : vector<16x32xf32> to vector<8x8xf32>
    %357 = vector.extract_strided_slice %323 {offsets = [0, 8], sizes = [8, 8], strides = [1, 1]} : vector<16x32xf32> to vector<8x8xf32>
    %358 = vector.extract_strided_slice %330 {offsets = [0, 8], sizes = [8, 8], strides = [1, 1]} : vector<16x32xf32> to vector<8x8xf32>
    %359 = tpu.transpose %357, [1, 0] : vector<8x8xf32> -> vector<8x8xf32>
    %cst_185 = arith.constant dense<0.000000e+00> : vector<8x8xf32>
    %360 = tpu.matmul %356, %359, %cst_185 {dimension_numbers = #tpu.dot_dimension_numbers<[1], [0], [0], [1], [0, 0, 1, 1], [], []>} : vector<8x8xf32>, vector<8x8xf32>, vector<8x8xf32> -> vector<8x8xf32>
    %cst_186 = arith.constant 0.353553385 : f32
    %361 = vector.broadcast %cst_186 : f32 to vector<8x8xf32>
    %362 = arith.mulf %360, %361 : vector<8x8xf32>
    %cst_187 = arith.constant -1.000000e+09 : f32
    %363 = vector.broadcast %cst_187 : f32 to vector<8x8xf32>
    %364 = arith.select %7, %363, %362 : vector<8x8xi1>, vector<8x8xf32>
    %cst_188 = arith.constant dense<0xFF800000> : vector<8xf32>
    %365 = vector.multi_reduction <maximumf>, %364, %cst_188 [1] : vector<8x8xf32> to vector<8xf32>
    %366 = vector.shape_cast %365 : vector<8xf32> to vector<8x1xf32>
    %367 = vector.broadcast %366 : vector<8x1xf32> to vector<8x8xf32>
    %368 = arith.subf %364, %367 : vector<8x8xf32>
    %369 = math.exp %368 : vector<8x8xf32>
    %cst_189 = arith.constant dense<0.000000e+00> : vector<8xf32>
    %370 = vector.multi_reduction <add>, %369, %cst_189 [1] : vector<8x8xf32> to vector<8xf32>
    %371 = vector.shape_cast %370 : vector<8xf32> to vector<8x1xf32>
    %372 = vector.broadcast %371 : vector<8x1xf32> to vector<8x8xf32>
    %373 = arith.divf %369, %372 : vector<8x8xf32>
    %cst_190 = arith.constant dense<0.000000e+00> : vector<8x8xf32>
    %374 = tpu.matmul %373, %358, %cst_190 {dimension_numbers = #tpu.dot_dimension_numbers<[1], [0], [0], [1], [0, 0, 1, 1], [], []>} : vector<8x8xf32>, vector<8x8xf32>, vector<8x8xf32> -> vector<8x8xf32>
    %375 = vector.extract_strided_slice %332 {offsets = [8, 0], sizes = [8, 32], strides = [1, 1]} : vector<32x32xf32> to vector<8x32xf32>
    %cst_191 = arith.constant dense<0.000000e+00> : vector<8x32xf32>
    %376 = tpu.matmul %374, %375, %cst_191 {dimension_numbers = #tpu.dot_dimension_numbers<[1], [0], [0], [1], [0, 0, 1, 1], [], []>} : vector<8x8xf32>, vector<8x32xf32>, vector<8x32xf32> -> vector<8x32xf32>
    %377 = arith.addf %355, %376 : vector<8x32xf32>
    %378 = vector.extract_strided_slice %316 {offsets = [0, 16], sizes = [8, 8], strides = [1, 1]} : vector<16x32xf32> to vector<8x8xf32>
    %379 = vector.extract_strided_slice %323 {offsets = [0, 16], sizes = [8, 8], strides = [1, 1]} : vector<16x32xf32> to vector<8x8xf32>
    %380 = vector.extract_strided_slice %330 {offsets = [0, 16], sizes = [8, 8], strides = [1, 1]} : vector<16x32xf32> to vector<8x8xf32>
    %381 = tpu.transpose %379, [1, 0] : vector<8x8xf32> -> vector<8x8xf32>
    %cst_192 = arith.constant dense<0.000000e+00> : vector<8x8xf32>
    %382 = tpu.matmul %378, %381, %cst_192 {dimension_numbers = #tpu.dot_dimension_numbers<[1], [0], [0], [1], [0, 0, 1, 1], [], []>} : vector<8x8xf32>, vector<8x8xf32>, vector<8x8xf32> -> vector<8x8xf32>
    %cst_193 = arith.constant 0.353553385 : f32
    %383 = vector.broadcast %cst_193 : f32 to vector<8x8xf32>
    %384 = arith.mulf %382, %383 : vector<8x8xf32>
    %cst_194 = arith.constant -1.000000e+09 : f32
    %385 = vector.broadcast %cst_194 : f32 to vector<8x8xf32>
    %386 = arith.select %7, %385, %384 : vector<8x8xi1>, vector<8x8xf32>
    %cst_195 = arith.constant dense<0xFF800000> : vector<8xf32>
    %387 = vector.multi_reduction <maximumf>, %386, %cst_195 [1] : vector<8x8xf32> to vector<8xf32>
    %388 = vector.shape_cast %387 : vector<8xf32> to vector<8x1xf32>
    %389 = vector.broadcast %388 : vector<8x1xf32> to vector<8x8xf32>
    %390 = arith.subf %386, %389 : vector<8x8xf32>
    %391 = math.exp %390 : vector<8x8xf32>
    %cst_196 = arith.constant dense<0.000000e+00> : vector<8xf32>
    %392 = vector.multi_reduction <add>, %391, %cst_196 [1] : vector<8x8xf32> to vector<8xf32>
    %393 = vector.shape_cast %392 : vector<8xf32> to vector<8x1xf32>
    %394 = vector.broadcast %393 : vector<8x1xf32> to vector<8x8xf32>
    %395 = arith.divf %391, %394 : vector<8x8xf32>
    %cst_197 = arith.constant dense<0.000000e+00> : vector<8x8xf32>
    %396 = tpu.matmul %395, %380, %cst_197 {dimension_numbers = #tpu.dot_dimension_numbers<[1], [0], [0], [1], [0, 0, 1, 1], [], []>} : vector<8x8xf32>, vector<8x8xf32>, vector<8x8xf32> -> vector<8x8xf32>
    %397 = vector.extract_strided_slice %332 {offsets = [16, 0], sizes = [8, 32], strides = [1, 1]} : vector<32x32xf32> to vector<8x32xf32>
    %cst_198 = arith.constant dense<0.000000e+00> : vector<8x32xf32>
    %398 = tpu.matmul %396, %397, %cst_198 {dimension_numbers = #tpu.dot_dimension_numbers<[1], [0], [0], [1], [0, 0, 1, 1], [], []>} : vector<8x8xf32>, vector<8x32xf32>, vector<8x32xf32> -> vector<8x32xf32>
    %399 = arith.addf %377, %398 : vector<8x32xf32>
    %400 = vector.extract_strided_slice %316 {offsets = [0, 24], sizes = [8, 8], strides = [1, 1]} : vector<16x32xf32> to vector<8x8xf32>
    %401 = vector.extract_strided_slice %323 {offsets = [0, 24], sizes = [8, 8], strides = [1, 1]} : vector<16x32xf32> to vector<8x8xf32>
    %402 = vector.extract_strided_slice %330 {offsets = [0, 24], sizes = [8, 8], strides = [1, 1]} : vector<16x32xf32> to vector<8x8xf32>
    %403 = tpu.transpose %401, [1, 0] : vector<8x8xf32> -> vector<8x8xf32>
    %cst_199 = arith.constant dense<0.000000e+00> : vector<8x8xf32>
    %404 = tpu.matmul %400, %403, %cst_199 {dimension_numbers = #tpu.dot_dimension_numbers<[1], [0], [0], [1], [0, 0, 1, 1], [], []>} : vector<8x8xf32>, vector<8x8xf32>, vector<8x8xf32> -> vector<8x8xf32>
    %cst_200 = arith.constant 0.353553385 : f32
    %405 = vector.broadcast %cst_200 : f32 to vector<8x8xf32>
    %406 = arith.mulf %404, %405 : vector<8x8xf32>
    %cst_201 = arith.constant -1.000000e+09 : f32
    %407 = vector.broadcast %cst_201 : f32 to vector<8x8xf32>
    %408 = arith.select %7, %407, %406 : vector<8x8xi1>, vector<8x8xf32>
    %cst_202 = arith.constant dense<0xFF800000> : vector<8xf32>
    %409 = vector.multi_reduction <maximumf>, %408, %cst_202 [1] : vector<8x8xf32> to vector<8xf32>
    %410 = vector.shape_cast %409 : vector<8xf32> to vector<8x1xf32>
    %411 = vector.broadcast %410 : vector<8x1xf32> to vector<8x8xf32>
    %412 = arith.subf %408, %411 : vector<8x8xf32>
    %413 = math.exp %412 : vector<8x8xf32>
    %cst_203 = arith.constant dense<0.000000e+00> : vector<8xf32>
    %414 = vector.multi_reduction <add>, %413, %cst_203 [1] : vector<8x8xf32> to vector<8xf32>
    %415 = vector.shape_cast %414 : vector<8xf32> to vector<8x1xf32>
    %416 = vector.broadcast %415 : vector<8x1xf32> to vector<8x8xf32>
    %417 = arith.divf %413, %416 : vector<8x8xf32>
    %cst_204 = arith.constant dense<0.000000e+00> : vector<8x8xf32>
    %418 = tpu.matmul %417, %402, %cst_204 {dimension_numbers = #tpu.dot_dimension_numbers<[1], [0], [0], [1], [0, 0, 1, 1], [], []>} : vector<8x8xf32>, vector<8x8xf32>, vector<8x8xf32> -> vector<8x8xf32>
    %419 = vector.extract_strided_slice %332 {offsets = [24, 0], sizes = [8, 32], strides = [1, 1]} : vector<32x32xf32> to vector<8x32xf32>
    %cst_205 = arith.constant dense<0.000000e+00> : vector<8x32xf32>
    %420 = tpu.matmul %418, %419, %cst_205 {dimension_numbers = #tpu.dot_dimension_numbers<[1], [0], [0], [1], [0, 0, 1, 1], [], []>} : vector<8x8xf32>, vector<8x32xf32>, vector<8x32xf32> -> vector<8x32xf32>
    %421 = arith.addf %399, %420 : vector<8x32xf32>
    %cst_206 = arith.constant 0.000000e+00 : f32
    %422 = vector.broadcast %cst_206 : f32 to vector<8x32xf32>
    %423 = vector.extract_strided_slice %316 {offsets = [8, 0], sizes = [8, 8], strides = [1, 1]} : vector<16x32xf32> to vector<8x8xf32>
    %424 = vector.extract_strided_slice %323 {offsets = [8, 0], sizes = [8, 8], strides = [1, 1]} : vector<16x32xf32> to vector<8x8xf32>
    %425 = vector.extract_strided_slice %330 {offsets = [8, 0], sizes = [8, 8], strides = [1, 1]} : vector<16x32xf32> to vector<8x8xf32>
    %426 = tpu.transpose %424, [1, 0] : vector<8x8xf32> -> vector<8x8xf32>
    %cst_207 = arith.constant dense<0.000000e+00> : vector<8x8xf32>
    %427 = tpu.matmul %423, %426, %cst_207 {dimension_numbers = #tpu.dot_dimension_numbers<[1], [0], [0], [1], [0, 0, 1, 1], [], []>} : vector<8x8xf32>, vector<8x8xf32>, vector<8x8xf32> -> vector<8x8xf32>
    %cst_208 = arith.constant 0.353553385 : f32
    %428 = vector.broadcast %cst_208 : f32 to vector<8x8xf32>
    %429 = arith.mulf %427, %428 : vector<8x8xf32>
    %cst_209 = arith.constant -1.000000e+09 : f32
    %430 = vector.broadcast %cst_209 : f32 to vector<8x8xf32>
    %431 = arith.select %7, %430, %429 : vector<8x8xi1>, vector<8x8xf32>
    %cst_210 = arith.constant dense<0xFF800000> : vector<8xf32>
    %432 = vector.multi_reduction <maximumf>, %431, %cst_210 [1] : vector<8x8xf32> to vector<8xf32>
    %433 = vector.shape_cast %432 : vector<8xf32> to vector<8x1xf32>
    %434 = vector.broadcast %433 : vector<8x1xf32> to vector<8x8xf32>
    %435 = arith.subf %431, %434 : vector<8x8xf32>
    %436 = math.exp %435 : vector<8x8xf32>
    %cst_211 = arith.constant dense<0.000000e+00> : vector<8xf32>
    %437 = vector.multi_reduction <add>, %436, %cst_211 [1] : vector<8x8xf32> to vector<8xf32>
    %438 = vector.shape_cast %437 : vector<8xf32> to vector<8x1xf32>
    %439 = vector.broadcast %438 : vector<8x1xf32> to vector<8x8xf32>
    %440 = arith.divf %436, %439 : vector<8x8xf32>
    %cst_212 = arith.constant dense<0.000000e+00> : vector<8x8xf32>
    %441 = tpu.matmul %440, %425, %cst_212 {dimension_numbers = #tpu.dot_dimension_numbers<[1], [0], [0], [1], [0, 0, 1, 1], [], []>} : vector<8x8xf32>, vector<8x8xf32>, vector<8x8xf32> -> vector<8x8xf32>
    %442 = vector.extract_strided_slice %332 {offsets = [0, 0], sizes = [8, 32], strides = [1, 1]} : vector<32x32xf32> to vector<8x32xf32>
    %cst_213 = arith.constant dense<0.000000e+00> : vector<8x32xf32>
    %443 = tpu.matmul %441, %442, %cst_213 {dimension_numbers = #tpu.dot_dimension_numbers<[1], [0], [0], [1], [0, 0, 1, 1], [], []>} : vector<8x8xf32>, vector<8x32xf32>, vector<8x32xf32> -> vector<8x32xf32>
    %444 = arith.addf %422, %443 : vector<8x32xf32>
    %445 = vector.extract_strided_slice %316 {offsets = [8, 8], sizes = [8, 8], strides = [1, 1]} : vector<16x32xf32> to vector<8x8xf32>
    %446 = vector.extract_strided_slice %323 {offsets = [8, 8], sizes = [8, 8], strides = [1, 1]} : vector<16x32xf32> to vector<8x8xf32>
    %447 = vector.extract_strided_slice %330 {offsets = [8, 8], sizes = [8, 8], strides = [1, 1]} : vector<16x32xf32> to vector<8x8xf32>
    %448 = tpu.transpose %446, [1, 0] : vector<8x8xf32> -> vector<8x8xf32>
    %cst_214 = arith.constant dense<0.000000e+00> : vector<8x8xf32>
    %449 = tpu.matmul %445, %448, %cst_214 {dimension_numbers = #tpu.dot_dimension_numbers<[1], [0], [0], [1], [0, 0, 1, 1], [], []>} : vector<8x8xf32>, vector<8x8xf32>, vector<8x8xf32> -> vector<8x8xf32>
    %cst_215 = arith.constant 0.353553385 : f32
    %450 = vector.broadcast %cst_215 : f32 to vector<8x8xf32>
    %451 = arith.mulf %449, %450 : vector<8x8xf32>
    %cst_216 = arith.constant -1.000000e+09 : f32
    %452 = vector.broadcast %cst_216 : f32 to vector<8x8xf32>
    %453 = arith.select %7, %452, %451 : vector<8x8xi1>, vector<8x8xf32>
    %cst_217 = arith.constant dense<0xFF800000> : vector<8xf32>
    %454 = vector.multi_reduction <maximumf>, %453, %cst_217 [1] : vector<8x8xf32> to vector<8xf32>
    %455 = vector.shape_cast %454 : vector<8xf32> to vector<8x1xf32>
    %456 = vector.broadcast %455 : vector<8x1xf32> to vector<8x8xf32>
    %457 = arith.subf %453, %456 : vector<8x8xf32>
    %458 = math.exp %457 : vector<8x8xf32>
    %cst_218 = arith.constant dense<0.000000e+00> : vector<8xf32>
    %459 = vector.multi_reduction <add>, %458, %cst_218 [1] : vector<8x8xf32> to vector<8xf32>
    %460 = vector.shape_cast %459 : vector<8xf32> to vector<8x1xf32>
    %461 = vector.broadcast %460 : vector<8x1xf32> to vector<8x8xf32>
    %462 = arith.divf %458, %461 : vector<8x8xf32>
    %cst_219 = arith.constant dense<0.000000e+00> : vector<8x8xf32>
    %463 = tpu.matmul %462, %447, %cst_219 {dimension_numbers = #tpu.dot_dimension_numbers<[1], [0], [0], [1], [0, 0, 1, 1], [], []>} : vector<8x8xf32>, vector<8x8xf32>, vector<8x8xf32> -> vector<8x8xf32>
    %464 = vector.extract_strided_slice %332 {offsets = [8, 0], sizes = [8, 32], strides = [1, 1]} : vector<32x32xf32> to vector<8x32xf32>
    %cst_220 = arith.constant dense<0.000000e+00> : vector<8x32xf32>
    %465 = tpu.matmul %463, %464, %cst_220 {dimension_numbers = #tpu.dot_dimension_numbers<[1], [0], [0], [1], [0, 0, 1, 1], [], []>} : vector<8x8xf32>, vector<8x32xf32>, vector<8x32xf32> -> vector<8x32xf32>
    %466 = arith.addf %444, %465 : vector<8x32xf32>
    %467 = vector.extract_strided_slice %316 {offsets = [8, 16], sizes = [8, 8], strides = [1, 1]} : vector<16x32xf32> to vector<8x8xf32>
    %468 = vector.extract_strided_slice %323 {offsets = [8, 16], sizes = [8, 8], strides = [1, 1]} : vector<16x32xf32> to vector<8x8xf32>
    %469 = vector.extract_strided_slice %330 {offsets = [8, 16], sizes = [8, 8], strides = [1, 1]} : vector<16x32xf32> to vector<8x8xf32>
    %470 = tpu.transpose %468, [1, 0] : vector<8x8xf32> -> vector<8x8xf32>
    %cst_221 = arith.constant dense<0.000000e+00> : vector<8x8xf32>
    %471 = tpu.matmul %467, %470, %cst_221 {dimension_numbers = #tpu.dot_dimension_numbers<[1], [0], [0], [1], [0, 0, 1, 1], [], []>} : vector<8x8xf32>, vector<8x8xf32>, vector<8x8xf32> -> vector<8x8xf32>
    %cst_222 = arith.constant 0.353553385 : f32
    %472 = vector.broadcast %cst_222 : f32 to vector<8x8xf32>
    %473 = arith.mulf %471, %472 : vector<8x8xf32>
    %cst_223 = arith.constant -1.000000e+09 : f32
    %474 = vector.broadcast %cst_223 : f32 to vector<8x8xf32>
    %475 = arith.select %7, %474, %473 : vector<8x8xi1>, vector<8x8xf32>
    %cst_224 = arith.constant dense<0xFF800000> : vector<8xf32>
    %476 = vector.multi_reduction <maximumf>, %475, %cst_224 [1] : vector<8x8xf32> to vector<8xf32>
    %477 = vector.shape_cast %476 : vector<8xf32> to vector<8x1xf32>
    %478 = vector.broadcast %477 : vector<8x1xf32> to vector<8x8xf32>
    %479 = arith.subf %475, %478 : vector<8x8xf32>
    %480 = math.exp %479 : vector<8x8xf32>
    %cst_225 = arith.constant dense<0.000000e+00> : vector<8xf32>
    %481 = vector.multi_reduction <add>, %480, %cst_225 [1] : vector<8x8xf32> to vector<8xf32>
    %482 = vector.shape_cast %481 : vector<8xf32> to vector<8x1xf32>
    %483 = vector.broadcast %482 : vector<8x1xf32> to vector<8x8xf32>
    %484 = arith.divf %480, %483 : vector<8x8xf32>
    %cst_226 = arith.constant dense<0.000000e+00> : vector<8x8xf32>
    %485 = tpu.matmul %484, %469, %cst_226 {dimension_numbers = #tpu.dot_dimension_numbers<[1], [0], [0], [1], [0, 0, 1, 1], [], []>} : vector<8x8xf32>, vector<8x8xf32>, vector<8x8xf32> -> vector<8x8xf32>
    %486 = vector.extract_strided_slice %332 {offsets = [16, 0], sizes = [8, 32], strides = [1, 1]} : vector<32x32xf32> to vector<8x32xf32>
    %cst_227 = arith.constant dense<0.000000e+00> : vector<8x32xf32>
    %487 = tpu.matmul %485, %486, %cst_227 {dimension_numbers = #tpu.dot_dimension_numbers<[1], [0], [0], [1], [0, 0, 1, 1], [], []>} : vector<8x8xf32>, vector<8x32xf32>, vector<8x32xf32> -> vector<8x32xf32>
    %488 = arith.addf %466, %487 : vector<8x32xf32>
    %489 = vector.extract_strided_slice %316 {offsets = [8, 24], sizes = [8, 8], strides = [1, 1]} : vector<16x32xf32> to vector<8x8xf32>
    %490 = vector.extract_strided_slice %323 {offsets = [8, 24], sizes = [8, 8], strides = [1, 1]} : vector<16x32xf32> to vector<8x8xf32>
    %491 = vector.extract_strided_slice %330 {offsets = [8, 24], sizes = [8, 8], strides = [1, 1]} : vector<16x32xf32> to vector<8x8xf32>
    %492 = tpu.transpose %490, [1, 0] : vector<8x8xf32> -> vector<8x8xf32>
    %cst_228 = arith.constant dense<0.000000e+00> : vector<8x8xf32>
    %493 = tpu.matmul %489, %492, %cst_228 {dimension_numbers = #tpu.dot_dimension_numbers<[1], [0], [0], [1], [0, 0, 1, 1], [], []>} : vector<8x8xf32>, vector<8x8xf32>, vector<8x8xf32> -> vector<8x8xf32>
    %cst_229 = arith.constant 0.353553385 : f32
    %494 = vector.broadcast %cst_229 : f32 to vector<8x8xf32>
    %495 = arith.mulf %493, %494 : vector<8x8xf32>
    %cst_230 = arith.constant -1.000000e+09 : f32
    %496 = vector.broadcast %cst_230 : f32 to vector<8x8xf32>
    %497 = arith.select %7, %496, %495 : vector<8x8xi1>, vector<8x8xf32>
    %cst_231 = arith.constant dense<0xFF800000> : vector<8xf32>
    %498 = vector.multi_reduction <maximumf>, %497, %cst_231 [1] : vector<8x8xf32> to vector<8xf32>
    %499 = vector.shape_cast %498 : vector<8xf32> to vector<8x1xf32>
    %500 = vector.broadcast %499 : vector<8x1xf32> to vector<8x8xf32>
    %501 = arith.subf %497, %500 : vector<8x8xf32>
    %502 = math.exp %501 : vector<8x8xf32>
    %cst_232 = arith.constant dense<0.000000e+00> : vector<8xf32>
    %503 = vector.multi_reduction <add>, %502, %cst_232 [1] : vector<8x8xf32> to vector<8xf32>
    %504 = vector.shape_cast %503 : vector<8xf32> to vector<8x1xf32>
    %505 = vector.broadcast %504 : vector<8x1xf32> to vector<8x8xf32>
    %506 = arith.divf %502, %505 : vector<8x8xf32>
    %cst_233 = arith.constant dense<0.000000e+00> : vector<8x8xf32>
    %507 = tpu.matmul %506, %491, %cst_233 {dimension_numbers = #tpu.dot_dimension_numbers<[1], [0], [0], [1], [0, 0, 1, 1], [], []>} : vector<8x8xf32>, vector<8x8xf32>, vector<8x8xf32> -> vector<8x8xf32>
    %508 = vector.extract_strided_slice %332 {offsets = [24, 0], sizes = [8, 32], strides = [1, 1]} : vector<32x32xf32> to vector<8x32xf32>
    %cst_234 = arith.constant dense<0.000000e+00> : vector<8x32xf32>
    %509 = tpu.matmul %507, %508, %cst_234 {dimension_numbers = #tpu.dot_dimension_numbers<[1], [0], [0], [1], [0, 0, 1, 1], [], []>} : vector<8x8xf32>, vector<8x32xf32>, vector<8x32xf32> -> vector<8x32xf32>
    %510 = arith.addf %488, %509 : vector<8x32xf32>
    %511 = tpu.concatenate %421, %510 in 0 : vector<8x32xf32>, vector<8x32xf32> -> vector<16x32xf32>
    %512 = arith.addf %283, %511 : vector<16x32xf32>
    %c1_235 = arith.constant 1 : index
    %c0_236 = arith.constant 0 : index
    %c0_237 = arith.constant 0 : index
    %513 = vector.load %arg8[%c1_235, %c0_236, %c0_237] : memref<2x1x32xf32, #tpu.memory_space<vmem>>, vector<1x1x32xf32>
    %514 = vector.shape_cast %513 : vector<1x1x32xf32> to vector<1x32xf32>
    %515 = vector.broadcast %514 : vector<1x32xf32> to vector<16x32xf32>
    %516 = arith.addf %512, %515 : vector<16x32xf32>
    %c1_238 = arith.constant 1 : index
    %c2_239 = arith.constant 2 : index
    %c0_240 = arith.constant 0 : index
    %c0_241 = arith.constant 0 : index
    %517 = vector.load %arg4[%c1_238, %c2_239, %c0_240, %c0_241] : memref<2x4x1x32xf32, #tpu.memory_space<vmem>>, vector<1x1x1x32xf32>
    %518 = vector.shape_cast %517 : vector<1x1x1x32xf32> to vector<1x32xf32>
    %c1_242 = arith.constant 1 : index
    %c3_243 = arith.constant 3 : index
    %c0_244 = arith.constant 0 : index
    %c0_245 = arith.constant 0 : index
    %519 = vector.load %arg4[%c1_242, %c3_243, %c0_244, %c0_245] : memref<2x4x1x32xf32, #tpu.memory_space<vmem>>, vector<1x1x1x32xf32>
    %520 = vector.shape_cast %519 : vector<1x1x1x32xf32> to vector<1x32xf32>
    %cst_246 = arith.constant dense<0.000000e+00> : vector<16xf32>
    %521 = vector.multi_reduction <add>, %516, %cst_246 [1] : vector<16x32xf32> to vector<16xf32>
    %522 = vector.shape_cast %521 : vector<16xf32> to vector<16x1xf32>
    %cst_247 = arith.constant 3.200000e+01 : f32
    %523 = vector.broadcast %cst_247 : f32 to vector<16x1xf32>
    %524 = arith.divf %522, %523 : vector<16x1xf32>
    %525 = vector.broadcast %524 : vector<16x1xf32> to vector<16x32xf32>
    %526 = arith.subf %516, %525 : vector<16x32xf32>
    %527 = arith.mulf %526, %526 : vector<16x32xf32>
    %cst_248 = arith.constant dense<0.000000e+00> : vector<16xf32>
    %528 = vector.multi_reduction <add>, %527, %cst_248 [1] : vector<16x32xf32> to vector<16xf32>
    %529 = vector.shape_cast %528 : vector<16xf32> to vector<16x1xf32>
    %cst_249 = arith.constant 3.200000e+01 : f32
    %530 = vector.broadcast %cst_249 : f32 to vector<16x1xf32>
    %531 = arith.divf %529, %530 : vector<16x1xf32>
    %532 = vector.broadcast %524 : vector<16x1xf32> to vector<16x32xf32>
    %533 = arith.subf %516, %532 : vector<16x32xf32>
    %cst_250 = arith.constant 9.99999974E-6 : f32
    %534 = vector.broadcast %cst_250 : f32 to vector<16x1xf32>
    %535 = arith.addf %531, %534 : vector<16x1xf32>
    %536 = math.rsqrt %535 : vector<16x1xf32>
    %537 = vector.broadcast %536 : vector<16x1xf32> to vector<16x32xf32>
    %538 = arith.mulf %533, %537 : vector<16x32xf32>
    %539 = vector.broadcast %518 : vector<1x32xf32> to vector<16x32xf32>
    %540 = arith.mulf %538, %539 : vector<16x32xf32>
    %541 = vector.broadcast %520 : vector<1x32xf32> to vector<16x32xf32>
    %542 = arith.addf %540, %541 : vector<16x32xf32>
    %c1_251 = arith.constant 1 : index
    %c0_252 = arith.constant 0 : index
    %c0_253 = arith.constant 0 : index
    %543 = vector.load %arg9[%c1_251, %c0_252, %c0_253] : memref<2x32x64xf32, #tpu.memory_space<vmem>>, vector<1x32x64xf32>
    %544 = vector.shape_cast %543 : vector<1x32x64xf32> to vector<32x64xf32>
    %cst_254 = arith.constant dense<0.000000e+00> : vector<16x64xf32>
    %545 = tpu.matmul %542, %544, %cst_254 {dimension_numbers = #tpu.dot_dimension_numbers<[1], [0], [0], [1], [0, 0, 1, 1], [], []>} : vector<16x32xf32>, vector<32x64xf32>, vector<16x64xf32> -> vector<16x64xf32>
    %c1_255 = arith.constant 1 : index
    %c0_256 = arith.constant 0 : index
    %c0_257 = arith.constant 0 : index
    %546 = vector.load %arg10[%c1_255, %c0_256, %c0_257] : memref<2x1x64xf32, #tpu.memory_space<vmem>>, vector<1x1x64xf32>
    %547 = vector.shape_cast %546 : vector<1x1x64xf32> to vector<1x64xf32>
    %548 = vector.broadcast %547 : vector<1x64xf32> to vector<16x64xf32>
    %549 = arith.addf %545, %548 : vector<16x64xf32>
    %cst_258 = arith.constant 0.000000e+00 : f32
    %550 = vector.broadcast %cst_258 : f32 to vector<16x64xf32>
    %551 = arith.maximumf %549, %550 : vector<16x64xf32>
    %c1_259 = arith.constant 1 : index
    %c0_260 = arith.constant 0 : index
    %c0_261 = arith.constant 0 : index
    %552 = vector.load %arg11[%c1_259, %c0_260, %c0_261] : memref<2x64x32xf32, #tpu.memory_space<vmem>>, vector<1x64x32xf32>
    %553 = vector.shape_cast %552 : vector<1x64x32xf32> to vector<64x32xf32>
    %cst_262 = arith.constant dense<0.000000e+00> : vector<16x32xf32>
    %554 = tpu.matmul %551, %553, %cst_262 {dimension_numbers = #tpu.dot_dimension_numbers<[1], [0], [0], [1], [0, 0, 1, 1], [], []>} : vector<16x64xf32>, vector<64x32xf32>, vector<16x32xf32> -> vector<16x32xf32>
    %c1_263 = arith.constant 1 : index
    %c0_264 = arith.constant 0 : index
    %c0_265 = arith.constant 0 : index
    %555 = vector.load %arg12[%c1_263, %c0_264, %c0_265] : memref<2x1x32xf32, #tpu.memory_space<vmem>>, vector<1x1x32xf32>
    %556 = vector.shape_cast %555 : vector<1x1x32xf32> to vector<1x32xf32>
    %557 = vector.broadcast %556 : vector<1x32xf32> to vector<16x32xf32>
    %558 = arith.addf %554, %557 : vector<16x32xf32>
    %559 = arith.addf %516, %558 : vector<16x32xf32>
    %c0_266 = arith.constant 0 : index
    %c0_267 = arith.constant 0 : index
    %560 = vector.load %arg13[%c0_266, %c0_267] : memref<32x128xf32, #tpu.memory_space<vmem>>, vector<32x128xf32>
    %cst_268 = arith.constant dense<0.000000e+00> : vector<16x128xf32>
    %561 = tpu.matmul %559, %560, %cst_268 {dimension_numbers = #tpu.dot_dimension_numbers<[1], [0], [0], [1], [0, 0, 1, 1], [], []>} : vector<16x32xf32>, vector<32x128xf32>, vector<16x128xf32> -> vector<16x128xf32>
    %c0_269 = arith.constant 0 : index
    %c0_270 = arith.constant 0 : index
    %562 = vector.load %arg14[%c0_269, %c0_270] : memref<1x128xf32, #tpu.memory_space<vmem>>, vector<1x128xf32>
    %563 = vector.broadcast %562 : vector<1x128xf32> to vector<16x128xf32>
    %564 = arith.addf %561, %563 : vector<16x128xf32>
    %565 = vector.extract_strided_slice %564 {offsets = [0, 0], sizes = [16, 16], strides = [1, 1]} : vector<16x128xf32> to vector<16x16xf32>
    %566 = tpu.iota {dimensions = array<i32: 0>} : vector<16x16xi32>
    %567 = tpu.iota {dimensions = array<i32: 1>} : vector<16x16xi32>
    %c8_i32 = arith.constant 8 : i32
    %c0_i32 = arith.constant 0 : i32
    %568 = arith.cmpi eq, %c8_i32, %c0_i32 : i32
    %c1_i32 = arith.constant 1 : i32
    %569 = arith.select %568, %c1_i32, %c8_i32 : i32
    %570 = vector.broadcast %569 : i32 to vector<16x16xi32>
    %571 = arith.remsi %566, %570 : vector<16x16xi32>
    %c0_i32_271 = arith.constant 0 : i32
    %572 = vector.broadcast %c0_i32_271 : i32 to vector<16x16xi32>
    %573 = arith.cmpi ne, %571, %572 : vector<16x16xi32>
    %c0_i32_272 = arith.constant 0 : i32
    %574 = vector.broadcast %c0_i32_272 : i32 to vector<16x16xi32>
    %575 = arith.cmpi slt, %571, %574 : vector<16x16xi32>
    %c0_i32_273 = arith.constant 0 : i32
    %576 = arith.cmpi slt, %569, %c0_i32_273 : i32
    %577 = vector.broadcast %576 : i1 to vector<16x16xi1>
    %578 = vector.broadcast %577 : vector<16x16xi1> to vector<16x16xi1>
    %579 = arith.xori %575, %578 : vector<16x16xi1>
    %580 = arith.andi %579, %573 : vector<16x16xi1>
    %581 = vector.broadcast %569 : i32 to vector<16x16xi32>
    %582 = arith.addi %571, %581 : vector<16x16xi32>
    %583 = arith.select %580, %582, %571 : vector<16x16xi1>, vector<16x16xi32>
    %c-2_i32 = arith.constant -2 : i32
    %584 = vector.broadcast %c-2_i32 : i32 to vector<16x16xi32>
    %585 = arith.addi %566, %584 : vector<16x16xi32>
    %586 = arith.cmpi eq, %567, %585 : vector<16x16xi32>
    %c-2_i32_274 = arith.constant -2 : i32
    %587 = vector.broadcast %c-2_i32_274 : i32 to vector<16x16xi32>
    %588 = arith.addi %583, %587 : vector<16x16xi32>
    %c0_i32_275 = arith.constant 0 : i32
    %589 = vector.broadcast %c0_i32_275 : i32 to vector<16x16xi32>
    %590 = arith.cmpi sge, %588, %589 : vector<16x16xi32>
    %591 = arith.andi %586, %590 : vector<16x16xi1>
    %c-2_i32_276 = arith.constant -2 : i32
    %592 = vector.broadcast %c-2_i32_276 : i32 to vector<16x16xi32>
    %593 = arith.addi %583, %592 : vector<16x16xi32>
    %c8_i32_277 = arith.constant 8 : i32
    %594 = vector.broadcast %c8_i32_277 : i32 to vector<16x16xi32>
    %595 = arith.cmpi slt, %593, %594 : vector<16x16xi32>
    %596 = arith.andi %591, %595 : vector<16x16xi1>
    %597 = arith.extui %596 : vector<16x16xi1> to vector<16x16xi32>
    %598 = arith.sitofp %597 : vector<16x16xi32> to vector<16x16xf32>
    %c-1_i32 = arith.constant -1 : i32
    %599 = vector.broadcast %c-1_i32 : i32 to vector<16x16xi32>
    %600 = arith.addi %566, %599 : vector<16x16xi32>
    %601 = arith.cmpi eq, %567, %600 : vector<16x16xi32>
    %c-1_i32_278 = arith.constant -1 : i32
    %602 = vector.broadcast %c-1_i32_278 : i32 to vector<16x16xi32>
    %603 = arith.addi %583, %602 : vector<16x16xi32>
    %c0_i32_279 = arith.constant 0 : i32
    %604 = vector.broadcast %c0_i32_279 : i32 to vector<16x16xi32>
    %605 = arith.cmpi sge, %603, %604 : vector<16x16xi32>
    %606 = arith.andi %601, %605 : vector<16x16xi1>
    %c-1_i32_280 = arith.constant -1 : i32
    %607 = vector.broadcast %c-1_i32_280 : i32 to vector<16x16xi32>
    %608 = arith.addi %583, %607 : vector<16x16xi32>
    %c8_i32_281 = arith.constant 8 : i32
    %609 = vector.broadcast %c8_i32_281 : i32 to vector<16x16xi32>
    %610 = arith.cmpi slt, %608, %609 : vector<16x16xi32>
    %611 = arith.andi %606, %610 : vector<16x16xi1>
    %612 = arith.extui %611 : vector<16x16xi1> to vector<16x16xi32>
    %613 = arith.sitofp %612 : vector<16x16xi32> to vector<16x16xf32>
    %c0_i32_282 = arith.constant 0 : i32
    %614 = vector.broadcast %c0_i32_282 : i32 to vector<16x16xi32>
    %615 = arith.addi %566, %614 : vector<16x16xi32>
    %616 = arith.cmpi eq, %567, %615 : vector<16x16xi32>
    %c0_i32_283 = arith.constant 0 : i32
    %617 = vector.broadcast %c0_i32_283 : i32 to vector<16x16xi32>
    %618 = arith.addi %583, %617 : vector<16x16xi32>
    %c0_i32_284 = arith.constant 0 : i32
    %619 = vector.broadcast %c0_i32_284 : i32 to vector<16x16xi32>
    %620 = arith.cmpi sge, %618, %619 : vector<16x16xi32>
    %621 = arith.andi %616, %620 : vector<16x16xi1>
    %c0_i32_285 = arith.constant 0 : i32
    %622 = vector.broadcast %c0_i32_285 : i32 to vector<16x16xi32>
    %623 = arith.addi %583, %622 : vector<16x16xi32>
    %c8_i32_286 = arith.constant 8 : i32
    %624 = vector.broadcast %c8_i32_286 : i32 to vector<16x16xi32>
    %625 = arith.cmpi slt, %623, %624 : vector<16x16xi32>
    %626 = arith.andi %621, %625 : vector<16x16xi1>
    %627 = arith.extui %626 : vector<16x16xi1> to vector<16x16xi32>
    %628 = arith.sitofp %627 : vector<16x16xi32> to vector<16x16xf32>
    %c1_i32_287 = arith.constant 1 : i32
    %629 = vector.broadcast %c1_i32_287 : i32 to vector<16x16xi32>
    %630 = arith.addi %566, %629 : vector<16x16xi32>
    %631 = arith.cmpi eq, %567, %630 : vector<16x16xi32>
    %c1_i32_288 = arith.constant 1 : i32
    %632 = vector.broadcast %c1_i32_288 : i32 to vector<16x16xi32>
    %633 = arith.addi %583, %632 : vector<16x16xi32>
    %c0_i32_289 = arith.constant 0 : i32
    %634 = vector.broadcast %c0_i32_289 : i32 to vector<16x16xi32>
    %635 = arith.cmpi sge, %633, %634 : vector<16x16xi32>
    %636 = arith.andi %631, %635 : vector<16x16xi1>
    %c1_i32_290 = arith.constant 1 : i32
    %637 = vector.broadcast %c1_i32_290 : i32 to vector<16x16xi32>
    %638 = arith.addi %583, %637 : vector<16x16xi32>
    %c8_i32_291 = arith.constant 8 : i32
    %639 = vector.broadcast %c8_i32_291 : i32 to vector<16x16xi32>
    %640 = arith.cmpi slt, %638, %639 : vector<16x16xi32>
    %641 = arith.andi %636, %640 : vector<16x16xi1>
    %642 = arith.extui %641 : vector<16x16xi1> to vector<16x16xi32>
    %643 = arith.sitofp %642 : vector<16x16xi32> to vector<16x16xf32>
    %c2_i32 = arith.constant 2 : i32
    %644 = vector.broadcast %c2_i32 : i32 to vector<16x16xi32>
    %645 = arith.addi %566, %644 : vector<16x16xi32>
    %646 = arith.cmpi eq, %567, %645 : vector<16x16xi32>
    %c2_i32_292 = arith.constant 2 : i32
    %647 = vector.broadcast %c2_i32_292 : i32 to vector<16x16xi32>
    %648 = arith.addi %583, %647 : vector<16x16xi32>
    %c0_i32_293 = arith.constant 0 : i32
    %649 = vector.broadcast %c0_i32_293 : i32 to vector<16x16xi32>
    %650 = arith.cmpi sge, %648, %649 : vector<16x16xi32>
    %651 = arith.andi %646, %650 : vector<16x16xi1>
    %c2_i32_294 = arith.constant 2 : i32
    %652 = vector.broadcast %c2_i32_294 : i32 to vector<16x16xi32>
    %653 = arith.addi %583, %652 : vector<16x16xi32>
    %c8_i32_295 = arith.constant 8 : i32
    %654 = vector.broadcast %c8_i32_295 : i32 to vector<16x16xi32>
    %655 = arith.cmpi slt, %653, %654 : vector<16x16xi32>
    %656 = arith.andi %651, %655 : vector<16x16xi1>
    %657 = arith.extui %656 : vector<16x16xi1> to vector<16x16xi32>
    %658 = arith.sitofp %657 : vector<16x16xi32> to vector<16x16xf32>
    %cst_296 = arith.constant dense<0.000000e+00> : vector<16x16xf32>
    %659 = tpu.matmul %598, %565, %cst_296 {dimension_numbers = #tpu.dot_dimension_numbers<[1], [0], [0], [1], [0, 0, 1, 1], [], []>} : vector<16x16xf32>, vector<16x16xf32>, vector<16x16xf32> -> vector<16x16xf32>
    %c0_297 = arith.constant 0 : index
    %c0_298 = arith.constant 0 : index
    %c0_299 = arith.constant 0 : index
    %660 = vector.load %arg15[%c0_297, %c0_298, %c0_299] : memref<5x16x32xf32, #tpu.memory_space<vmem>>, vector<1x16x32xf32>
    %661 = vector.shape_cast %660 : vector<1x16x32xf32> to vector<16x32xf32>
    %cst_300 = arith.constant dense<0.000000e+00> : vector<16x32xf32>
    %662 = tpu.matmul %659, %661, %cst_300 {dimension_numbers = #tpu.dot_dimension_numbers<[1], [0], [0], [1], [0, 0, 1, 1], [], []>} : vector<16x16xf32>, vector<16x32xf32>, vector<16x32xf32> -> vector<16x32xf32>
    %cst_301 = arith.constant dense<0.000000e+00> : vector<16x16xf32>
    %663 = tpu.matmul %613, %565, %cst_301 {dimension_numbers = #tpu.dot_dimension_numbers<[1], [0], [0], [1], [0, 0, 1, 1], [], []>} : vector<16x16xf32>, vector<16x16xf32>, vector<16x16xf32> -> vector<16x16xf32>
    %c1_302 = arith.constant 1 : index
    %c0_303 = arith.constant 0 : index
    %c0_304 = arith.constant 0 : index
    %664 = vector.load %arg15[%c1_302, %c0_303, %c0_304] : memref<5x16x32xf32, #tpu.memory_space<vmem>>, vector<1x16x32xf32>
    %665 = vector.shape_cast %664 : vector<1x16x32xf32> to vector<16x32xf32>
    %cst_305 = arith.constant dense<0.000000e+00> : vector<16x32xf32>
    %666 = tpu.matmul %663, %665, %cst_305 {dimension_numbers = #tpu.dot_dimension_numbers<[1], [0], [0], [1], [0, 0, 1, 1], [], []>} : vector<16x16xf32>, vector<16x32xf32>, vector<16x32xf32> -> vector<16x32xf32>
    %667 = arith.addf %662, %666 : vector<16x32xf32>
    %cst_306 = arith.constant dense<0.000000e+00> : vector<16x16xf32>
    %668 = tpu.matmul %628, %565, %cst_306 {dimension_numbers = #tpu.dot_dimension_numbers<[1], [0], [0], [1], [0, 0, 1, 1], [], []>} : vector<16x16xf32>, vector<16x16xf32>, vector<16x16xf32> -> vector<16x16xf32>
    %c2_307 = arith.constant 2 : index
    %c0_308 = arith.constant 0 : index
    %c0_309 = arith.constant 0 : index
    %669 = vector.load %arg15[%c2_307, %c0_308, %c0_309] : memref<5x16x32xf32, #tpu.memory_space<vmem>>, vector<1x16x32xf32>
    %670 = vector.shape_cast %669 : vector<1x16x32xf32> to vector<16x32xf32>
    %cst_310 = arith.constant dense<0.000000e+00> : vector<16x32xf32>
    %671 = tpu.matmul %668, %670, %cst_310 {dimension_numbers = #tpu.dot_dimension_numbers<[1], [0], [0], [1], [0, 0, 1, 1], [], []>} : vector<16x16xf32>, vector<16x32xf32>, vector<16x32xf32> -> vector<16x32xf32>
    %672 = arith.addf %667, %671 : vector<16x32xf32>
    %cst_311 = arith.constant dense<0.000000e+00> : vector<16x16xf32>
    %673 = tpu.matmul %643, %565, %cst_311 {dimension_numbers = #tpu.dot_dimension_numbers<[1], [0], [0], [1], [0, 0, 1, 1], [], []>} : vector<16x16xf32>, vector<16x16xf32>, vector<16x16xf32> -> vector<16x16xf32>
    %c3_312 = arith.constant 3 : index
    %c0_313 = arith.constant 0 : index
    %c0_314 = arith.constant 0 : index
    %674 = vector.load %arg15[%c3_312, %c0_313, %c0_314] : memref<5x16x32xf32, #tpu.memory_space<vmem>>, vector<1x16x32xf32>
    %675 = vector.shape_cast %674 : vector<1x16x32xf32> to vector<16x32xf32>
    %cst_315 = arith.constant dense<0.000000e+00> : vector<16x32xf32>
    %676 = tpu.matmul %673, %675, %cst_315 {dimension_numbers = #tpu.dot_dimension_numbers<[1], [0], [0], [1], [0, 0, 1, 1], [], []>} : vector<16x16xf32>, vector<16x32xf32>, vector<16x32xf32> -> vector<16x32xf32>
    %677 = arith.addf %672, %676 : vector<16x32xf32>
    %cst_316 = arith.constant dense<0.000000e+00> : vector<16x16xf32>
    %678 = tpu.matmul %658, %565, %cst_316 {dimension_numbers = #tpu.dot_dimension_numbers<[1], [0], [0], [1], [0, 0, 1, 1], [], []>} : vector<16x16xf32>, vector<16x16xf32>, vector<16x16xf32> -> vector<16x16xf32>
    %c4 = arith.constant 4 : index
    %c0_317 = arith.constant 0 : index
    %c0_318 = arith.constant 0 : index
    %679 = vector.load %arg15[%c4, %c0_317, %c0_318] : memref<5x16x32xf32, #tpu.memory_space<vmem>>, vector<1x16x32xf32>
    %680 = vector.shape_cast %679 : vector<1x16x32xf32> to vector<16x32xf32>
    %cst_319 = arith.constant dense<0.000000e+00> : vector<16x32xf32>
    %681 = tpu.matmul %678, %680, %cst_319 {dimension_numbers = #tpu.dot_dimension_numbers<[1], [0], [0], [1], [0, 0, 1, 1], [], []>} : vector<16x16xf32>, vector<16x32xf32>, vector<16x32xf32> -> vector<16x32xf32>
    %682 = arith.addf %677, %681 : vector<16x32xf32>
    %c0_320 = arith.constant 0 : index
    %c0_321 = arith.constant 0 : index
    %683 = vector.load %arg16[%c0_320, %c0_321] : memref<1x32xf32, #tpu.memory_space<vmem>>, vector<1x32xf32>
    %684 = vector.broadcast %683 : vector<1x32xf32> to vector<16x32xf32>
    %685 = arith.addf %682, %684 : vector<16x32xf32>
    %686 = math.tanh %685 : vector<16x32xf32>
    %cst_322 = arith.constant dense<0.000000e+00> : vector<16x32xf32>
    %687 = tpu.matmul %598, %686, %cst_322 {dimension_numbers = #tpu.dot_dimension_numbers<[1], [0], [0], [1], [0, 0, 1, 1], [], []>} : vector<16x16xf32>, vector<16x32xf32>, vector<16x32xf32> -> vector<16x32xf32>
    %c0_323 = arith.constant 0 : index
    %c0_324 = arith.constant 0 : index
    %c0_325 = arith.constant 0 : index
    %688 = vector.load %arg17[%c0_323, %c0_324, %c0_325] : memref<5x32x128xf32, #tpu.memory_space<vmem>>, vector<1x32x128xf32>
    %689 = vector.shape_cast %688 : vector<1x32x128xf32> to vector<32x128xf32>
    %cst_326 = arith.constant dense<0.000000e+00> : vector<16x128xf32>
    %690 = tpu.matmul %687, %689, %cst_326 {dimension_numbers = #tpu.dot_dimension_numbers<[1], [0], [0], [1], [0, 0, 1, 1], [], []>} : vector<16x32xf32>, vector<32x128xf32>, vector<16x128xf32> -> vector<16x128xf32>
    %cst_327 = arith.constant dense<0.000000e+00> : vector<16x32xf32>
    %691 = tpu.matmul %613, %686, %cst_327 {dimension_numbers = #tpu.dot_dimension_numbers<[1], [0], [0], [1], [0, 0, 1, 1], [], []>} : vector<16x16xf32>, vector<16x32xf32>, vector<16x32xf32> -> vector<16x32xf32>
    %c1_328 = arith.constant 1 : index
    %c0_329 = arith.constant 0 : index
    %c0_330 = arith.constant 0 : index
    %692 = vector.load %arg17[%c1_328, %c0_329, %c0_330] : memref<5x32x128xf32, #tpu.memory_space<vmem>>, vector<1x32x128xf32>
    %693 = vector.shape_cast %692 : vector<1x32x128xf32> to vector<32x128xf32>
    %cst_331 = arith.constant dense<0.000000e+00> : vector<16x128xf32>
    %694 = tpu.matmul %691, %693, %cst_331 {dimension_numbers = #tpu.dot_dimension_numbers<[1], [0], [0], [1], [0, 0, 1, 1], [], []>} : vector<16x32xf32>, vector<32x128xf32>, vector<16x128xf32> -> vector<16x128xf32>
    %695 = arith.addf %690, %694 : vector<16x128xf32>
    %cst_332 = arith.constant dense<0.000000e+00> : vector<16x32xf32>
    %696 = tpu.matmul %628, %686, %cst_332 {dimension_numbers = #tpu.dot_dimension_numbers<[1], [0], [0], [1], [0, 0, 1, 1], [], []>} : vector<16x16xf32>, vector<16x32xf32>, vector<16x32xf32> -> vector<16x32xf32>
    %c2_333 = arith.constant 2 : index
    %c0_334 = arith.constant 0 : index
    %c0_335 = arith.constant 0 : index
    %697 = vector.load %arg17[%c2_333, %c0_334, %c0_335] : memref<5x32x128xf32, #tpu.memory_space<vmem>>, vector<1x32x128xf32>
    %698 = vector.shape_cast %697 : vector<1x32x128xf32> to vector<32x128xf32>
    %cst_336 = arith.constant dense<0.000000e+00> : vector<16x128xf32>
    %699 = tpu.matmul %696, %698, %cst_336 {dimension_numbers = #tpu.dot_dimension_numbers<[1], [0], [0], [1], [0, 0, 1, 1], [], []>} : vector<16x32xf32>, vector<32x128xf32>, vector<16x128xf32> -> vector<16x128xf32>
    %700 = arith.addf %695, %699 : vector<16x128xf32>
    %cst_337 = arith.constant dense<0.000000e+00> : vector<16x32xf32>
    %701 = tpu.matmul %643, %686, %cst_337 {dimension_numbers = #tpu.dot_dimension_numbers<[1], [0], [0], [1], [0, 0, 1, 1], [], []>} : vector<16x16xf32>, vector<16x32xf32>, vector<16x32xf32> -> vector<16x32xf32>
    %c3_338 = arith.constant 3 : index
    %c0_339 = arith.constant 0 : index
    %c0_340 = arith.constant 0 : index
    %702 = vector.load %arg17[%c3_338, %c0_339, %c0_340] : memref<5x32x128xf32, #tpu.memory_space<vmem>>, vector<1x32x128xf32>
    %703 = vector.shape_cast %702 : vector<1x32x128xf32> to vector<32x128xf32>
    %cst_341 = arith.constant dense<0.000000e+00> : vector<16x128xf32>
    %704 = tpu.matmul %701, %703, %cst_341 {dimension_numbers = #tpu.dot_dimension_numbers<[1], [0], [0], [1], [0, 0, 1, 1], [], []>} : vector<16x32xf32>, vector<32x128xf32>, vector<16x128xf32> -> vector<16x128xf32>
    %705 = arith.addf %700, %704 : vector<16x128xf32>
    %cst_342 = arith.constant dense<0.000000e+00> : vector<16x32xf32>
    %706 = tpu.matmul %658, %686, %cst_342 {dimension_numbers = #tpu.dot_dimension_numbers<[1], [0], [0], [1], [0, 0, 1, 1], [], []>} : vector<16x16xf32>, vector<16x32xf32>, vector<16x32xf32> -> vector<16x32xf32>
    %c4_343 = arith.constant 4 : index
    %c0_344 = arith.constant 0 : index
    %c0_345 = arith.constant 0 : index
    %707 = vector.load %arg17[%c4_343, %c0_344, %c0_345] : memref<5x32x128xf32, #tpu.memory_space<vmem>>, vector<1x32x128xf32>
    %708 = vector.shape_cast %707 : vector<1x32x128xf32> to vector<32x128xf32>
    %cst_346 = arith.constant dense<0.000000e+00> : vector<16x128xf32>
    %709 = tpu.matmul %706, %708, %cst_346 {dimension_numbers = #tpu.dot_dimension_numbers<[1], [0], [0], [1], [0, 0, 1, 1], [], []>} : vector<16x32xf32>, vector<32x128xf32>, vector<16x128xf32> -> vector<16x128xf32>
    %710 = arith.addf %705, %709 : vector<16x128xf32>
    %c0_347 = arith.constant 0 : index
    %c0_348 = arith.constant 0 : index
    %711 = vector.load %arg18[%c0_347, %c0_348] : memref<1x128xf32, #tpu.memory_space<vmem>>, vector<1x128xf32>
    %712 = vector.broadcast %711 : vector<1x128xf32> to vector<16x128xf32>
    %713 = arith.addf %710, %712 : vector<16x128xf32>
    %714 = arith.addf %564, %713 : vector<16x128xf32>
    %c0_349 = arith.constant 0 : index
    %c0_350 = arith.constant 0 : index
    %715 = vector.load %arg19[%c0_349, %c0_350] : memref<16x128xf32, #tpu.memory_space<vmem>>, vector<16x128xf32>
    tpu.vector_store %arg19[%c0_349, %c0_350], %714 {strides = array<i32>} : memref<16x128xf32, #tpu.memory_space<vmem>>, vector<16x128xf32>,
    return
  }
  func.func @transform_0(%arg0: i32) -> (i32, i32) {
    %c0_i32 = arith.constant 0 : i32
    %c0_i32_0 = arith.constant 0 : i32
    %c0_i32_1 = arith.constant 0 : i32
    return %c0_i32, %c0_i32_0 : i32, i32
  }
  func.func @transform_1(%arg0: i32) -> (i32, i32) {
    %c0_i32 = arith.constant 0 : i32
    %c0_i32_0 = arith.constant 0 : i32
    %c0_i32_1 = arith.constant 0 : i32
    return %c0_i32, %c0_i32_0 : i32, i32
  }
  func.func @transform_2(%arg0: i32) -> (i32, i32) {
    %c0_i32 = arith.constant 0 : i32
    %c0_i32_0 = arith.constant 0 : i32
    %c0_i32_1 = arith.constant 0 : i32
    return %c0_i32, %c0_i32_0 : i32, i32
  }
  func.func @transform_3(%arg0: i32) -> (i32, i32, i32, i32) {
    %c0_i32 = arith.constant 0 : i32
    %c0_i32_0 = arith.constant 0 : i32
    %c0_i32_1 = arith.constant 0 : i32
    %c0_i32_2 = arith.constant 0 : i32
    %c0_i32_3 = arith.constant 0 : i32
    return %c0_i32, %c0_i32_0, %c0_i32_1, %c0_i32_2 : i32, i32, i32, i32
  }
  func.func @transform_4(%arg0: i32) -> (i32, i32, i32, i32) {
    %c0_i32 = arith.constant 0 : i32
    %c0_i32_0 = arith.constant 0 : i32
    %c0_i32_1 = arith.constant 0 : i32
    %c0_i32_2 = arith.constant 0 : i32
    %c0_i32_3 = arith.constant 0 : i32
    return %c0_i32, %c0_i32_0, %c0_i32_1, %c0_i32_2 : i32, i32, i32, i32
  }
  func.func @transform_5(%arg0: i32) -> (i32, i32, i32, i32) {
    %c0_i32 = arith.constant 0 : i32
    %c0_i32_0 = arith.constant 0 : i32
    %c0_i32_1 = arith.constant 0 : i32
    %c0_i32_2 = arith.constant 0 : i32
    %c0_i32_3 = arith.constant 0 : i32
    return %c0_i32, %c0_i32_0, %c0_i32_1, %c0_i32_2 : i32, i32, i32, i32
  }
  func.func @transform_6(%arg0: i32) -> (i32, i32, i32) {
    %c0_i32 = arith.constant 0 : i32
    %c0_i32_0 = arith.constant 0 : i32
    %c0_i32_1 = arith.constant 0 : i32
    %c0_i32_2 = arith.constant 0 : i32
    return %c0_i32, %c0_i32_0, %c0_i32_1 : i32, i32, i32
  }
  func.func @transform_7(%arg0: i32) -> (i32, i32, i32) {
    %c0_i32 = arith.constant 0 : i32
    %c0_i32_0 = arith.constant 0 : i32
    %c0_i32_1 = arith.constant 0 : i32
    %c0_i32_2 = arith.constant 0 : i32
    return %c0_i32, %c0_i32_0, %c0_i32_1 : i32, i32, i32
  }
  func.func @transform_8(%arg0: i32) -> (i32, i32, i32) {
    %c0_i32 = arith.constant 0 : i32
    %c0_i32_0 = arith.constant 0 : i32
    %c0_i32_1 = arith.constant 0 : i32
    %c0_i32_2 = arith.constant 0 : i32
    return %c0_i32, %c0_i32_0, %c0_i32_1 : i32, i32, i32
  }
  func.func @transform_9(%arg0: i32) -> (i32, i32, i32) {
    %c0_i32 = arith.constant 0 : i32
    %c0_i32_0 = arith.constant 0 : i32
    %c0_i32_1 = arith.constant 0 : i32
    %c0_i32_2 = arith.constant 0 : i32
    return %c0_i32, %c0_i32_0, %c0_i32_1 : i32, i32, i32
  }
  func.func @transform_10(%arg0: i32) -> (i32, i32, i32) {
    %c0_i32 = arith.constant 0 : i32
    %c0_i32_0 = arith.constant 0 : i32
    %c0_i32_1 = arith.constant 0 : i32
    %c0_i32_2 = arith.constant 0 : i32
    return %c0_i32, %c0_i32_0, %c0_i32_1 : i32, i32, i32
  }
  func.func @transform_11(%arg0: i32) -> (i32, i32, i32) {
    %c0_i32 = arith.constant 0 : i32
    %c0_i32_0 = arith.constant 0 : i32
    %c0_i32_1 = arith.constant 0 : i32
    %c0_i32_2 = arith.constant 0 : i32
    return %c0_i32, %c0_i32_0, %c0_i32_1 : i32, i32, i32
  }
  func.func @transform_12(%arg0: i32) -> (i32, i32) {
    %c0_i32 = arith.constant 0 : i32
    %c0_i32_0 = arith.constant 0 : i32
    %c0_i32_1 = arith.constant 0 : i32
    return %c0_i32, %c0_i32_0 : i32, i32
  }
  func.func @transform_13(%arg0: i32) -> (i32, i32) {
    %c0_i32 = arith.constant 0 : i32
    %c0_i32_0 = arith.constant 0 : i32
    %c0_i32_1 = arith.constant 0 : i32
    return %c0_i32, %c0_i32_0 : i32, i32
  }
  func.func @transform_14(%arg0: i32) -> (i32, i32, i32) {
    %c0_i32 = arith.constant 0 : i32
    %c0_i32_0 = arith.constant 0 : i32
    %c0_i32_1 = arith.constant 0 : i32
    %c0_i32_2 = arith.constant 0 : i32
    return %c0_i32, %c0_i32_0, %c0_i32_1 : i32, i32, i32
  }
  func.func @transform_15(%arg0: i32) -> (i32, i32) {
    %c0_i32 = arith.constant 0 : i32
    %c0_i32_0 = arith.constant 0 : i32
    %c0_i32_1 = arith.constant 0 : i32
    return %c0_i32, %c0_i32_0 : i32, i32
  }
  func.func @transform_16(%arg0: i32) -> (i32, i32, i32) {
    %c0_i32 = arith.constant 0 : i32
    %c0_i32_0 = arith.constant 0 : i32
    %c0_i32_1 = arith.constant 0 : i32
    %c0_i32_2 = arith.constant 0 : i32
    return %c0_i32, %c0_i32_0, %c0_i32_1 : i32, i32, i32
  }
  func.func @transform_17(%arg0: i32) -> (i32, i32) {
    %c0_i32 = arith.constant 0 : i32
    %c0_i32_0 = arith.constant 0 : i32
    %c0_i32_1 = arith.constant 0 : i32
    return %c0_i32, %c0_i32_0 : i32, i32
  }
  func.func @transform_18(%arg0: i32) -> (i32, i32) {
    %c0_i32 = arith.constant 0 : i32
    %c0_i32_0 = arith.constant 0 : i32
    %c0_i32_1 = arith.constant 0 : i32
    return %c0_i32, %c0_i32_0 : i32, i32
  }
}

</mosaic_0001>

<bundles_post_ra>
// kernel: tpu_custom_call.1
= control target key start
LH: loop header
LB: loop body
LE: loop exit
PB: predicated region body
PF: predicated region fallthrough
CT: control target
= control target key end

     0   :  { %s9475_s0 = inlined_call_operand.hbm [shape: f32[16,16], index: 0, kind: input, shape index: {}]   ;;  %s9476_s1 = inlined_call_operand.hbm [shape: f32[16,32], index: 1, kind: input, shape index: {}]   ;;  %s9477_s2 = inlined_call_operand.hbm [shape: f32[16,32], index: 2, kind: input, shape index: {}]   ;;  %s9478_s3 = inlined_call_operand.hbm [shape: f32[2,4,1,32], index: 3, kind: input, shape index: {}]   ;;  %s9479_s4 = inlined_call_operand.vmem [shape: f32[2,3,32,32], index: 4, kind: input, shape index: {}]   ;;  %s9480_s5 = inlined_call_operand.vmem [shape: f32[2,3,1,32], index: 5, kind: input, shape index: {}]   ;;  %s9481_s6 = inlined_call_operand.hbm [shape: f32[2,32,32], index: 6, kind: input, shape index: {}]   ;;  %s9482_s7 = inlined_call_operand.vmem [shape: f32[2,1,32], index: 7, kind: input, shape index: {}]   ;;  %s9483_s8 = inlined_call_operand.hbm [shape: f32[2,32,64], index: 8, kind: input, shape index: {}]   ;;  %s9484_s9 = inlined_call_operand.vmem [shape: f32[2,1,64], index: 9, kind: input, shape index: {}]   ;;  %s9485_s10 = inlined_call_operand.vmem [shape: f32[2,64,32], index: 10, kind: input, shape index: {}]   ;;  %s9486_s11 = inlined_call_operand.vmem [shape: f32[2,1,32], index: 11, kind: input, shape index: {}]   ;;  %s9487_s12 = inlined_call_operand.hbm [shape: f32[32,128], index: 12, kind: input, shape index: {}]   ;;  %s9488_s13 = inlined_call_operand.vmem [shape: f32[1,128], index: 13, kind: input, shape index: {}]   ;;  %s9489_s14 = inlined_call_operand.hbm [shape: f32[5,16,32], index: 14, kind: input, shape index: {}]   ;;  %s9490_s15 = inlined_call_operand.vmem [shape: f32[1,32], index: 15, kind: input, shape index: {}]   ;;  %s9491_s16 = inlined_call_operand.hbm [shape: f32[5,32,128], index: 16, kind: input, shape index: {}]   ;;  %s9492_s17 = inlined_call_operand.vmem [shape: f32[1,128], index: 17, kind: input, shape index: {}]   ;;  %s9493_s18 = inlined_call_operand.hbm [shape: f32[16,128], index: 18, kind: output, shape index: {}]  }
   0x1   :  { %9494 = sst [smem:[#allocation24_spill]] %s9475_s0 }
   0x2   :  { %9495 = sst [smem:[#allocation25_spill]] %s9476_s1 }
   0x3   :  { %9496 = sst [smem:[#allocation26_spill]] %s9477_s2 }
   0x4   :  { %9497 = sst [smem:[#allocation27_spill]] %s9493_s18 }
   0x5   :  { %23 = vsyncpa [#allocation3], 0 }
   0x6   :  { %24 = vsyncpa [#allocation6], 0 }
   0x7   :  { %25 = vsyncpa [#allocation9], 0 }
   0x8   :  { %26 = vsyncpa [#allocation12], 0 }
   0x9   :  { %27 = vsyncpa [#allocation15], 0 }
   0xa   :  { %28 = vsyncpa [#allocation4], 0  ;;  %s8460_s27 = smov [#allocation5]   ;;  %s8461_s29 = smov [#allocation8]  }
   0xb   :  { %s46_s28 = sshll.u32 %s8460_s27, 4  ;;  %s70_s30 = sshll.u32 %s8461_s29, 4  ;;  %s47_s28 = int_to_ptr.vmem [resolvable:$true] %s46_s28  ;;  %s71_s30 = int_to_ptr.vmem [resolvable:$true] %s70_s30 }
   0xc   :  { %s8256_s0 = scalar_lea.vmem %s47_s28, 256  ;;  %p8261_p1 = scmp.lt.s32.totalorder %s47_s28, %s47_s28 }
   0xd   :  { %p8257_p0 = scmp.ne.s32.totalorder %s47_s28, %s8256_s0  ;;  %p8262_p2 = scmp.lt.s32.totalorder %s8256_s0, %s8256_s0 }
   0xf   :  { %p8263_p3 = por %p8262_p2, %p8261_p1 }
  0x11   :  { %p8264_p4 = pnand %p8263_p3, %p8257_p0 }
  0x13   :  { %8267 = shalt.err (!%p8264_p4)
}
  0x14   :  { %s8462_s19 = smov 128   ;;  %s8463_s1 = smov 8  }
  0x15   :  { %s9498_s22 = sld [smem:[#allocation25_spill]]  ;;  %s8276_s2 = scalar_lea.vmem %s71_s30, 128 }
  0x16   :  { %p8277_p5 = scmp.ne.s32.totalorder %s71_s30, %s8276_s2  ;;  %p8281_p6 = scmp.lt.s32.totalorder %s71_s30, %s71_s30 }
  0x17   :  { %p8282_p7 = scmp.lt.s32.totalorder %s8276_s2, %s8276_s2 }
  0x19   :  { %p8283_p8 = por %p8282_p7, %p8281_p6 }
  0x1b   :  { %52 = dma.hbm_to_vmem [thread:$0]  %s9498_s22, 256, %s47_s28, [#allocation6], %s8462_s19, %s8462_s19, %s8463_s1  }
  0x1c   :  { %p8284_p9 = pnand %p8283_p8, %p8277_p5 }
  0x1e   :  { %8287 = shalt.err (!%p8284_p9)
}
  0x1f   :  { %s8464_s23 = smov 16   ;;  %s8465_s24 = smov 1  }
  0x20   :  { %76 = dma.hbm_to_vmem [thread:$0]  %s9478_s3, 128, %s71_s30, [#allocation9], %s8464_s23, %s8464_s23, %s8465_s24  }
  0x21   :  { %s8466_s27 = smov [#allocation11]   ;;  %s8467_s0 = smov [#allocation14]  }
  0x22   :  { %s100_s29 = sshll.u32 %s8466_s27, 4  ;;  %s132_s18 = sshll.u32 %s8467_s0, 4  ;;  %s101_s29 = int_to_ptr.vmem [resolvable:$true] %s100_s29  ;;  %s133_s18 = int_to_ptr.vmem [resolvable:$true] %s132_s18 }
  0x23   :  { %s8296_s28 = scalar_lea.vmem %s101_s29, 1024  ;;  %p8301_p11 = scmp.lt.s32.totalorder %s101_s29, %s101_s29 }
  0x24   :  { %p8297_p10 = scmp.ne.s32.totalorder %s101_s29, %s8296_s28  ;;  %p8302_p12 = scmp.lt.s32.totalorder %s8296_s28, %s8296_s28 }
  0x26   :  { %p8303_p13 = por %p8302_p12, %p8301_p11 }
  0x28   :  { %p8304_p0 = pnand %p8303_p13, %p8297_p10 }
  0x2a   :  { %8307 = shalt.err (!%p8304_p0)
}
  0x2b   :  { %106 = dma.hbm_to_vmem [thread:$0]  %s9483_s8, 1024, %s101_s29, [#allocation12], %s8462_s19, %s8462_s19, %s8463_s1  }
  0x2c   :  { %s8316_s3 = scalar_lea.vmem %s133_s18, 1280  ;;  %p8321_p2 = scmp.lt.s32.totalorder %s133_s18, %s133_s18 }
  0x2d   :  { %p8317_p1 = scmp.ne.s32.totalorder %s133_s18, %s8316_s3  ;;  %p8322_p3 = scmp.lt.s32.totalorder %s8316_s3, %s8316_s3 }
  0x2f   :  { %p8323_p4 = por %p8322_p3, %p8321_p2 }
  0x31   :  { %p8324_p5 = pnand %p8323_p4, %p8317_p1 }
  0x33   :  { %8327 = shalt.err (!%p8324_p5)
}
  0x34   :  { %138 = dma.hbm_to_vmem [thread:$0]  %s9489_s14, 1280, %s133_s18, [#allocation15], %s8462_s19, %s8462_s19, %s8463_s1  }
  0x35   :  { %s8468_s2 = smov [#allocation2]   ;;  %s8469_s24 = smov [#allocation7]  }
  0x36   :  { %s34_s23 = sshll.u32 %s8468_s2, 4  ;;  %s58_s25 = sshll.u32 %s8469_s24, 4  ;;  %s35_s23 = int_to_ptr.vmem [resolvable:$true] %s34_s23  ;;  %s59_s25 = int_to_ptr.vmem [resolvable:$true] %s58_s25 }
  0x37   :  { %s8336_s8 = scalar_lea.vmem %s35_s23, 256  ;;  %p8341_p7 = scmp.lt.s32.totalorder %s35_s23, %s35_s23 }
  0x38   :  { %p8337_p6 = scmp.ne.s32.totalorder %s35_s23, %s8336_s8  ;;  %p8342_p8 = scmp.lt.s32.totalorder %s8336_s8, %s8336_s8 }
  0x3a   :  { %p8343_p9 = por %p8342_p8, %p8341_p7 }
  0x3c   :  { %p8344_p10 = pnand %p8343_p9, %p8337_p6 }
  0x3e   :  { %8347 = shalt.err (!%p8344_p10)
}
  0x3f   :  { %s9499_s29 = sld [smem:[#allocation24_spill]]  ;;  %s8356_s14 = scalar_lea.vmem %s59_s25, 256 }
  0x40   :  { %p8357_p11 = scmp.ne.s32.totalorder %s59_s25, %s8356_s14  ;;  %p8361_p12 = scmp.lt.s32.totalorder %s59_s25, %s59_s25 }
  0x41   :  { %p8362_p13 = scmp.lt.s32.totalorder %s8356_s14, %s8356_s14 }
  0x43   :  { %p8363_p0 = por %p8362_p13, %p8361_p12 }
  0x45   :  { %40 = dma.hbm_to_vmem [thread:$0]  %s9499_s29, 256, %s35_s23, [#allocation3], %s8462_s19, %s8462_s19, %s8463_s1  }
  0x46   :  { %p8364_p1 = pnand %p8363_p0, %p8357_p11 }
  0x48   :  { %8367 = shalt.err (!%p8364_p1)
}
  0x49   :  { %s9500_s28 = sld [smem:[#allocation26_spill]]  ;;  %s8470_s20 = smov [#allocation10]  }
  0x4a   :  { %s86_s21 = sshll.u32 %s8470_s20, 4  ;;  %s8471_s3 = smov [#allocation13]   ;;  %s87_s21 = int_to_ptr.vmem [resolvable:$true] %s86_s21 }
  0x4b   :  { %s118_s30 = sshll.u32 %s8471_s3, 4  ;;  %s8376_s22 = scalar_lea.vmem %s87_s21, 1024  ;;  %s119_s30 = int_to_ptr.vmem [resolvable:$true] %s118_s30 }
  0x4c   :  { %p8377_p2 = scmp.ne.s32.totalorder %s87_s21, %s8376_s22  ;;  %p8381_p3 = scmp.lt.s32.totalorder %s87_s21, %s87_s21 }
  0x4d   :  { %p8382_p4 = scmp.lt.s32.totalorder %s8376_s22, %s8376_s22 }
  0x4f   :  { %64 = dma.hbm_to_vmem [thread:$0]  %s9500_s28, 256, %s59_s25, [#allocation6], %s8462_s19, %s8462_s19, %s8463_s1  }
  0x50   :  { %p8383_p5 = por %p8382_p4, %p8381_p3 }
  0x52   :  { %p8384_p6 = pnand %p8383_p5, %p8377_p2 }
  0x54   :  { %8387 = shalt.err (!%p8384_p6)
}
  0x55   :  { %92 = dma.hbm_to_vmem [thread:$0]  %s9481_s6, 1024, %s87_s21, [#allocation9], %s8462_s19, %s8462_s19, %s8463_s1  }
  0x56   :  { %s8396_s24 = scalar_lea.vmem %s119_s30, 512  ;;  %p8401_p8 = scmp.lt.s32.totalorder %s119_s30, %s119_s30 }
  0x57   :  { %p8397_p7 = scmp.ne.s32.totalorder %s119_s30, %s8396_s24  ;;  %p8402_p9 = scmp.lt.s32.totalorder %s8396_s24, %s8396_s24 }
  0x59   :  { %p8403_p10 = por %p8402_p9, %p8401_p8 }
  0x5b   :  { %p8404_p11 = pnand %p8403_p10, %p8397_p7 }
  0x5d   :  { %8407 = shalt.err (!%p8404_p11)
}
  0x5e   :  { %124 = dma.hbm_to_vmem [thread:$0]  %s9487_s12, 512, %s119_s30, [#allocation12], %s8462_s19, %s8462_s19, %s8463_s1  }
  0x5f   :  { %s8472_s26 = smov [#allocation16]  }
  0x60   :  { %s146_s27 = sshll.u32 %s8472_s26, 4  ;;  %s147_s27 = int_to_ptr.vmem [resolvable:$true] %s146_s27 }
  0x61   :  { %s8416_s29 = scalar_lea.vmem %s147_s27, 2560  ;;  %p8421_p13 = scmp.lt.s32.totalorder %s147_s27, %s147_s27 }
  0x62   :  { %p8417_p12 = scmp.ne.s32.totalorder %s147_s27, %s8416_s29  ;;  %p8422_p0 = scmp.lt.s32.totalorder %s8416_s29, %s8416_s29 }
  0x64   :  { %p8423_p1 = por %p8422_p0, %p8421_p13 }
  0x66   :  { %p8424_p2 = pnand %p8423_p1, %p8417_p12 }
  0x68   :  { %8427 = shalt.err (!%p8424_p2)
}
  0x69   :  { %152 = dma.hbm_to_vmem [thread:$0]  %s9491_s16, 2560, %s147_s27, [#allocation15], %s8462_s19, %s8462_s19, %s8463_s1  }
  0x6a   :  { %8448 = dma.done.wait [#allocation3], 256  }
  0x6b   :  { %8449 = vsyncadd [#allocation3], 4294967040 }
  0x6c   :  { %8450 = dma.done.wait [#allocation6], 512  }
  0x6d   :  { %8451 = vsyncadd [#allocation6], 4294966784 }
  0x6e   :  { %8452 = dma.done.wait [#allocation9], 1152  }
  0x6f   :  { %8453 = vsyncadd [#allocation9], 4294966144 }
  0x70   :  { %8454 = dma.done.wait [#allocation12], 1536  }
  0x71   :  { %8455 = vsyncadd [#allocation12], 4294965760 }
  0x72   :  { %8456 = dma.done.wait [#allocation15], 3840  }
  0x73   :  { %8457 = vsyncadd [#allocation15], 4294963456  ;;  %vm188_vm0 = vcmask 130048   ;;  %v185_v0 = vld [vmem:[#allocation7 + $0x8] sm:$0xff]  ;;  %v184_v1 = vld [vmem:[#allocation7] sm:$0xff]  ;;  %vm278_vm1 = vcmask 261120  }
  0x74   :  { %v182_v2 = vld [vmem:[#allocation2] sm:$0xff]  ;;  %7601 = vmatprep.subr.mxu1 %v185_v0  ;;  %v183_v3 = vld [vmem:[#allocation2 + $0x8] sm:$0xff]  ;;  %v186_v5 = vld [vmem:[#allocation5] sm:$0xff]  ;;  %v8473_v50 = vmov 0.0   ;;  %vm8474_vm2 = vmmov 0   ;;  %vm594_vm3 = vcmask 64512  }
  0x75   :  { %7605 = vmatprep.mubr.msk.f32.mxu1 %vm188_vm0, %v182_v2  ;;  %7602 = vmatpush3.msra.mxu1 %v185_v0  ;;  %v187_v6 = vld [vmem:[#allocation5 + $0x8] sm:$0xff]  ;;  %v324_v24 = vld [vmem:[%s9479_s4 + $0x10] sm:$0xff]  ;;  %v323_v26 = vld [vmem:[%s9479_s4 + $0x8] sm:$0xff]  ;;  %s8475_s30 = smov 120   ;;  %s8476_s23 = smov 112   ;;  %vm2677_vm5 = vcmask 523264  }
  0x76   :  { %7603 = vmatprep.subr.mxu1 %v184_v1  ;;  %v325_v22 = vld [vmem:[%s9479_s4 + $0x18] sm:$0xff]  ;;  %v7149_v25 = vld [vmem:[%s9479_s4 + $0x30] sm:$0xff]  ;;  %v7148_v27 = vld [vmem:[%s9479_s4 + $0x28] sm:$0xff]  ;;  %s8477_s24 = smov 104  }
  0x77   :  { %7604 = vmatpush3.msra.mxu1 %v184_v1  ;;  %v7150_v23 = vld [vmem:[%s9479_s4 + $0x38] sm:$0xff]  ;;  %v322_v28 = vld [vmem:[%s9479_s4] sm:$0xff]  ;;  %v7142_v38 = vld [vmem:[#allocation8] ss:$0 sm:$0xff] }
  0x78   :  { %7606 = vmatmul.mubr.msk.f32.vlgmr.msra.gmra.mxu1 %vm188_vm0, %v183_v3  ;;  %7608 = vmatprep.subr.mxu1 %v325_v22  ;;  %v7147_v29 = vld [vmem:[%s9479_s4 + $0x20] sm:$0xff]  ;;  %v7158_v30 = vld [vmem:[%s9479_s4 + $0x58] sm:$0xff]  ;;  %v7143_v40 = vld [vmem:[#allocation8 + $0x1] ss:$0 sm:$0xff] }
  0x79   :  { %7619 = vmatprep.subr.mxu0 %v7150_v23  ;;  %7609 = vmatpush3.msra.mxu1 %v325_v22  ;;  %v7157_v47 = vld [vmem:[%s9479_s4 + $0x50] sm:$0xff]  ;;  %v7156_v48 = vld [vmem:[%s9479_s4 + $0x48] sm:$0xff]  ;;  %v7155_v49 = vld [vmem:[%s9479_s4 + $0x40] sm:$0xff] }
  0x7a   :  { %7620 = vmatpush3.msra.mxu0 %v7150_v23  ;;  %7610 = vmatprep.subr.mxu1 %v324_v24  ;;  %v7144_v51 = vld [vmem:[%s9480_s5] ss:$0 sm:$0xff]  ;;  %v7152_v52 = vld [vmem:[%s9480_s5 + $0x1] ss:$0 sm:$0xff]  ;;  %v7160_v61 = vld [vmem:[%s9480_s5 + $0x2] ss:$0 sm:$0xff] }
  0x7b   :  { %7621 = vmatprep.subr.mxu0 %v7149_v25  ;;  %7611 = vmatpush3.msra.mxu1 %v324_v24 }
  0x7c   :  { %7622 = vmatpush3.msra.mxu0 %v7149_v25  ;;  %7612 = vmatprep.subr.mxu1 %v323_v26 }
  0x7d   :  { %7613 = vmatpush3.msra.mxu1 %v323_v26  ;;  %7623 = vmatprep.subr.mxu0 %v7148_v27 }
  0x7e   :  { %7614 = vmatprep.subr.mxu1 %v322_v28  ;;  %7624 = vmatpush3.msra.mxu0 %v7148_v27 }
  0x7f   :  { %7615 = vmatpush3.msra.mxu1 %v322_v28  ;;  %7625 = vmatprep.subr.mxu0 %v7147_v29 }
  0x80   :  { %7626 = vmatpush3.msra.mxu0 %v7147_v29  ;;  %7630 = vmatprep.subr.mxu1 %v7158_v30 }
  0x81   :  { %7641 = vmatprep.subr.mxu0 %v8473_v50 }
 0x138   :  { %v7607_v4 = vpop.f32.mrf.mxu1 }
 0x139   :  { %v8629_v9 = vadd.f32 %v7607_v4, %v187_v6  ;;  %v270_v4 = vlaneseq }
 0x13a   :  { %v261_v7 = vpop.f32.mrf.mxu1 }
 0x13b   :  { %v8627_v8 = vadd.f32 %v261_v7, %v186_v5  ;;  %v282_v11 = vsel %vm278_vm1, %v8629_v9, 0.0  ;;  %v8726_v5 = vshrl.u32 %v270_v4, 7  ;;  %v8728_v6 = vand.u32 127, %v270_v4 }
 0x13d   :  { %v279_v10 = vsel %vm278_vm1, %v8627_v8, 0.0  ;;  %vm8732_vm4 = vcmp.gt.s32.totalorder %v8728_v6, %v8726_v5 }
 0x13e   :  { %280 = vadd.xlane.f32.xlu0 %v279_v10 }
 0x142   :  { %283 = vadd.xlane.f32.xlu0 %v282_v11 }
 0x1c7   :  { %v281_v12 = vpop.xlane.xlu0 %280 }
 0x1c8   :  { %v286_v13 = vmul.f32 0.03125, %v281_v12 }
 0x1ca   :  { %v288_v14 = vsub.f32 %v8627_v8, %v286_v13 }
 0x1cb   :  { %v284_v15 = vpop.xlane.xlu0 %283 }
 0x1cc   :  { %v287_v16 = vmul.f32 0.03125, %v284_v15  ;;  %v290_v17 = vmul.f32 %v288_v14, %v288_v14 }
 0x1ce   :  { %v289_v18 = vsub.f32 %v8629_v9, %v287_v16  ;;  %v292_v19 = vsel %vm278_vm1, %v290_v17, 0.0 }
 0x1cf   :  { %293 = vadd.xlane.f32.xlu1 %v292_v19 }
 0x1d0   :  { %v291_v20 = vmul.f32 %v289_v18, %v289_v18 }
 0x1d2   :  { %v295_v21 = vsel %vm278_vm1, %v291_v20, 0.0 }
 0x1d3   :  { %296 = vadd.xlane.f32.xlu1 %v295_v21 }
 0x258   :  { %v294_v31 = vpop.xlane.xlu1 %293 }
 0x259   :  { %v298_v32 = vmul.f32 0.03125, %v294_v31 }
 0x25b   :  { %v300_v33 = vadd.f32 1e-05, %v298_v32 }
 0x25c   :  { %v297_v34 = vpop.xlane.xlu1 %296 }
 0x25d   :  { %8164 = vrsqrt.f32 %v300_v33  ;;  %v299_v35 = vmul.f32 0.03125, %v297_v34  ;;  %v8754_v34 = vld [vmem:[#allocation10 + $0x8] sm:$0xff] }
 0x25f   :  { %v301_v36 = vadd.f32 1e-05, %v299_v35 }
 0x261   :  { %8166 = vrsqrt.f32 %v301_v36 }
 0x26a   :  { %v8165_v37 = vpop.eup %8164 }
 0x26b   :  { %v304_v39 = vmul.f32 %v8165_v37, %v288_v14 }
 0x26d   :  { %v312_v41 = vmul.f32 %v7142_v38, %v304_v39 }
 0x26e   :  { %v8167_v42 = vpop.eup %8166 }
 0x26f   :  { %v305_v43 = vmul.f32 %v8167_v42, %v289_v18  ;;  %v320_v44 = vadd.f32 %v7143_v40, %v312_v41 }
 0x271   :  { %v313_v45 = vmul.f32 %v7142_v38, %v305_v43  ;;  %7616 = vmatprep.mubr.msk.f32.mxu1 %vm278_vm1, %v320_v44  ;;  %7627 = vmatprep.mubr.msk.f32.mxu0 %vm278_vm1, %v320_v44  ;;  %v8758_v38 = vld [vmem:[#allocation10] sm:$0xff] }
 0x273   :  { %v321_v46 = vadd.f32 %v7143_v40, %v313_v45 }
 0x275   :  { %7617 = vmatmul.mubr.msk.f32.vlgmr.msra.gmra.mxu1 %vm278_vm1, %v321_v46  ;;  %7628 = vmatmul.mubr.msk.f32.vlgmr.msra.gmra.mxu0 %vm278_vm1, %v321_v46 }
 0x276   :  { %7631 = vmatpush3.msra.mxu1 %v7158_v30  ;;  %7638 = vmatprep.mubr.msk.f32.mxu1 %vm278_vm1, %v320_v44 }
 0x277   :  { %7632 = vmatprep.subr.mxu1 %v7157_v47  ;;  %7643 = vmatprep.mubr.msk.f32.mxu0 %vm8474_vm2, %v8473_v50 }
 0x278   :  { %7633 = vmatpush3.msra.mxu1 %v7157_v47 }
 0x279   :  { %7634 = vmatprep.subr.mxu1 %v7156_v48 }
 0x27a   :  { %7635 = vmatpush3.msra.mxu1 %v7156_v48 }
 0x27b   :  { %7636 = vmatprep.subr.mxu1 %v7155_v49 }
 0x27c   :  { %7637 = vmatpush3.msra.mxu1 %v7155_v49 }
 0x27d   :  { %7639 = vmatmul.mubr.msk.f32.vlgmr.msra.gmra.mxu1 %vm278_vm1, %v321_v46  ;;  %7651 = vmatprep.subr.mxu1 %v8473_v50 }
 0x27e   :  { %7653 = vmatprep.mubr.msk.f32.mxu1 %vm8474_vm2, %v8473_v50 }
 0x335   :  { %v7618_v53 = vpop.f32.mrf.mxu1  ;;  %v7629_v54 = vpop.f32.mrf.mxu0 }
 0x336   :  { %v8693_v55 = vadd.f32 %v7618_v53, %v7144_v51  ;;  %v8695_v56 = vadd.f32 %v7629_v54, %v7152_v52 }
 0x337   :  { %v405_v57 = vpop.f32.mrf.mxu1  ;;  %v493_v58 = vpop.f32.mrf.mxu0 }
 0x338   :  { %v8697_v59 = vadd.f32 %v7144_v51, %v405_v57  ;;  %v8699_v60 = vadd.f32 %v7152_v52, %v493_v58 }
 0x33a   :  { %759 = vrot.lane.b32.xlu0 %v8699_v60, %s8475_s30  ;;  %7642 = vmatpush3.xpose.msk.msra.mxu0 %vm594_vm3, %v8699_v60 }
 0x33b   :  { %757 = vrot.lane.b32.xlu1 %v8697_v59, %s8475_s30  ;;  %7646 = vmatprep.subr.mxu0 %v8473_v50 }
 0x33d   :  { %v7640_v62 = vpop.f32.mrf.mxu1  ;;  %7644 = vmatmul.mubr.msk.f32.vlgmr.msra.gmra.mxu0 %vm594_vm3, %v8697_v59 }
 0x33e   :  { %v8713_v63 = vadd.f32 %v7640_v62, %v7160_v61  ;;  %7648 = vmatprep.mubr.msk.f32.mxu0 %vm8474_vm2, %v8473_v50 }
 0x33f   :  { %v581_v0 = vpop.f32.mrf.mxu1 }
 0x340   :  { %v8717_v1 = vadd.f32 %v7160_v61, %v581_v0 }
 0x342   :  { %7647 = vmatpush3.msra.mxu0 %v8717_v1 }
 0x343   :  { %7656 = vmatprep.subr.mxu0 %v8473_v50 }
 0x3ac   :  { %v760_v2 = vpop.permute.xlu0 %759 }
 0x3ad   :  { %7652 = vmatpush3.xpose.msk.msra.mxu1 %vm594_vm3, %v760_v2  ;;  %v758_v3 = vpop.permute.xlu1 %757 }
 0x3ae   :  { %7661 = vmatprep.subr.mxu1 %v8473_v50 }
 0x3b0   :  { %7654 = vmatmul.mubr.msk.f32.vlgmr.msra.gmra.mxu1 %vm594_vm3, %v758_v3 }
 0x3b1   :  { %7663 = vmatprep.mubr.msk.f32.mxu1 %vm8474_vm2, %v8473_v50  ;;  %7662 = vmatpush3.msra.mxu1 %v8754_v34 }
 0x3b2   :  { %7671 = vmatprep.subr.mxu1 %v8473_v50 }
 0x3fd   :  { %v667_v7 = vpop.f32.mrf.mxu0 }
 0x3fe   :  { %v671_v11 = vmul.f32 0.35355338, %v667_v7 }
 0x3ff   :  { %v7645_v12 = vpop.f32.mrf.mxu0 }
 0x400   :  { %v672_v13 = vsel %vm8732_vm4, -1e+09, %v671_v11  ;;  %v8795_v11 = vld [vmem:[#allocation10 + $0x10] sm:$0xff] }
 0x401   :  { %v673_v14 = vsel %vm594_vm3, %v672_v13, -inf }
 0x402   :  { %674 = vmax.xlane.f32.xlu1 %v673_v14 }
 0x470   :  { %v831_v15 = vpop.f32.mrf.mxu1 }
 0x471   :  { %v835_v16 = vmul.f32 0.35355338, %v831_v15 }
 0x472   :  { %v7655_v17 = vpop.f32.mrf.mxu1 }
 0x473   :  { %v836_v18 = vsel %vm8732_vm4, -1e+09, %v835_v16 }
 0x474   :  { %v837_v19 = vsel %vm594_vm3, %v836_v18, -inf }
 0x475   :  { %838 = vmax.xlane.f32.xlu0 %v837_v19 }
 0x48b   :  { %v675_v20 = vpop.xlane.xlu1 %674 }
 0x48c   :  { %v676_v21 = vsub.f32 %v672_v13, %v675_v20 }
 0x48e   :  { %v677_v22 = vmul.f32 1.442695, %v676_v21 }
 0x490   :  { %8168 = vpow2.f32 %v677_v22 }
 0x49d   :  { %v8169_v23 = vpop.eup %8168 }
 0x49e   :  { %v679_v24 = vsel %vm594_vm3, %v8169_v23, 0.0 }
 0x49f   :  { %680 = vadd.xlane.f32.xlu0 %v679_v24 }
 0x4b5   :  { %849 = vrot.lane.b32.xlu0 %v8717_v1, %s8475_s30 }
 0x4fe   :  { %v839_v25 = vpop.xlane.xlu0 %838 }
 0x4ff   :  { %v840_v26 = vsub.f32 %v836_v18, %v839_v25 }
 0x501   :  { %v841_v27 = vmul.f32 1.442695, %v840_v26 }
 0x503   :  { %8170 = vpow2.f32 %v841_v27 }
 0x510   :  { %v8171_v28 = vpop.eup %8170 }
 0x511   :  { %v843_v29 = vsel %vm594_vm3, %v8171_v28, 0.0 }
 0x512   :  { %844 = vadd.xlane.f32.xlu1 %v843_v29 }
 0x523   :  { %1073 = vrot.lane.b32.xlu1 %v8699_v60, %s8476_s23 }
 0x527   :  { %1071 = vrot.lane.b32.xlu1 %v8697_v59, %s8476_s23 }
 0x528   :  { %v681_v30 = vpop.xlane.xlu0 %680 }
 0x529   :  { %8172 = vrcp.f32 %v681_v30 }
 0x52c   :  { %v850_v33 = vpop.permute.xlu0 %849 }
 0x536   :  { %v8173_v31 = vpop.eup %8172 }
 0x537   :  { %v683_v32 = vmul.f32 %v8173_v31, %v8169_v23 }
 0x539   :  { %7649 = vmatmul.mubr.msk.f32.vlgmr.msra.gmra.mxu0 %vm594_vm3, %v683_v32 }
 0x53a   :  { %7657 = vmatpush3.msra.mxu0 %v850_v33  ;;  %7658 = vmatprep.mubr.msk.f32.mxu0 %vm8474_vm2, %v8473_v50 }
 0x53b   :  { %7666 = vmatprep.subr.mxu0 %v8473_v50 }
 0x59b   :  { %v845_v35 = vpop.xlane.xlu1 %844 }
 0x59c   :  { %8174 = vrcp.f32 %v845_v35 }
 0x59f   :  { %v1074_v41 = vpop.permute.xlu1 %1073 }
 0x5a3   :  { %v1072_v44 = vpop.permute.xlu1 %1071 }
 0x5a9   :  { %v8175_v36 = vpop.eup %8174 }
 0x5aa   :  { %v847_v37 = vmul.f32 %v8175_v36, %v8171_v28  ;;  %v8813_v28 = vld [vmem:[#allocation10 + $0x18] sm:$0xff] }
 0x5ac   :  { %7659 = vmatmul.mubr.msk.f32.vlgmr.msra.gmra.mxu0 %vm594_vm3, %v847_v37 }
 0x5ad   :  { %7667 = vmatpush3.msra.mxu0 %v8758_v38  ;;  %7668 = vmatprep.mubr.msk.f32.mxu0 %vm8474_vm2, %v8473_v50 }
 0x5ae   :  { %7676 = vmatprep.subr.mxu0 %v8473_v50 }
 0x5f9   :  { %v753_v39 = vpop.f32.mrf.mxu0 }
 0x5fa   :  { %7669 = vmatmul.mubr.msk.f32.vlgmr.msra.gmra.mxu0 %vm594_vm3, %v753_v39 }
 0x5fb   :  { %v7650_v40 = vpop.f32.mrf.mxu0  ;;  %7678 = vmatprep.mubr.msk.f32.mxu0 %vm8474_vm2, %v8473_v50 }
 0x66c   :  { %v921_v42 = vpop.f32.mrf.mxu0 }
 0x66d   :  { %7664 = vmatmul.mubr.msk.f32.vlgmr.msra.gmra.mxu1 %vm594_vm3, %v921_v42 }
 0x66e   :  { %7672 = vmatpush3.xpose.msk.msra.mxu1 %vm594_vm3, %v1074_v41  ;;  %v7660_v43 = vpop.f32.mrf.mxu0  ;;  %7673 = vmatprep.mubr.msk.f32.mxu1 %vm8474_vm2, %v8473_v50 }
 0x66f   :  { %7681 = vmatprep.subr.mxu1 %v8473_v50 }
 0x671   :  { %7674 = vmatmul.mubr.msk.f32.vlgmr.msra.gmra.mxu1 %vm594_vm3, %v1072_v44 }
 0x672   :  { %7683 = vmatprep.mubr.msk.f32.mxu1 %vm8474_vm2, %v8473_v50  ;;  %7682 = vmatpush3.msra.mxu1 %v8795_v11 }
 0x673   :  { %7691 = vmatprep.subr.mxu1 %v8473_v50 }
 0x6ba   :  { %v1067_v45 = vpop.f32.mrf.mxu0 }
 0x6bc   :  { %v7670_v46 = vpop.f32.mrf.mxu0 }
 0x72d   :  { %v994_v47 = vpop.f32.mrf.mxu1 }
 0x72e   :  { %v1068_v25 = vadd.f32 %v1067_v45, %v994_v47 }
 0x72f   :  { %v7665_v48 = vpop.f32.mrf.mxu1 }
 0x731   :  { %v1145_v49 = vpop.f32.mrf.mxu1 }
 0x732   :  { %v1149_v51 = vmul.f32 0.35355338, %v1145_v49 }
 0x733   :  { %v7675_v52 = vpop.f32.mrf.mxu1 }
 0x734   :  { %v1150_v53 = vsel %vm8732_vm4, -1e+09, %v1149_v51 }
 0x735   :  { %v1151_v54 = vsel %vm594_vm3, %v1150_v53, -inf }
 0x736   :  { %1152 = vmax.xlane.f32.xlu1 %v1151_v54 }
 0x747   :  { %1314 = vrot.lane.b32.xlu1 %v8699_v60, %s8477_s24 }
 0x74b   :  { %1312 = vrot.lane.b32.xlu1 %v8697_v59, %s8477_s24 }
 0x7bf   :  { %v1153_v57 = vpop.xlane.xlu1 %1152 }
 0x7c0   :  { %v1154_v58 = vsub.f32 %v1150_v53, %v1153_v57 }
 0x7c2   :  { %v1155_v61 = vmul.f32 1.442695, %v1154_v58 }
 0x7c3   :  { %v1315_v4 = vpop.permute.xlu1 %1314 }
 0x7c4   :  { %8176 = vpow2.f32 %v1155_v61 }
 0x7c7   :  { %v1313_v7 = vpop.permute.xlu1 %1312 }
 0x7d1   :  { %v8177_v62 = vpop.eup %8176 }
 0x7d2   :  { %v1157_v0 = vsel %vm594_vm3, %v8177_v62, 0.0 }
 0x7d3   :  { %1158 = vadd.xlane.f32.xlu0 %v1157_v0 }
 0x7e9   :  { %1162 = vrot.lane.b32.xlu0 %v8717_v1, %s8476_s23 }
 0x85c   :  { %v1159_v2 = vpop.xlane.xlu0 %1158 }
 0x85d   :  { %8178 = vrcp.f32 %v1159_v2 }
 0x860   :  { %v1163_v3 = vpop.permute.xlu0 %1162 }
 0x861   :  { %7677 = vmatpush3.msra.mxu0 %v1163_v3 }
 0x862   :  { %7686 = vmatprep.subr.mxu0 %v8473_v50 }
 0x86a   :  { %v8179_v60 = vpop.eup %8178 }
 0x86b   :  { %v1161_v59 = vmul.f32 %v8179_v60, %v8177_v62 }
 0x86d   :  { %7679 = vmatmul.mubr.msk.f32.vlgmr.msra.gmra.mxu0 %vm594_vm3, %v1161_v59 }
 0x86e   :  { %7687 = vmatpush3.xpose.msk.msra.mxu0 %vm594_vm3, %v1315_v4  ;;  %7688 = vmatprep.mubr.msk.f32.mxu0 %vm8474_vm2, %v8473_v50 }
 0x86f   :  { %7696 = vmatprep.subr.mxu0 %v8473_v50 }
 0x871   :  { %7689 = vmatmul.mubr.msk.f32.vlgmr.msra.gmra.mxu0 %vm594_vm3, %v1313_v7 }
 0x872   :  { %7698 = vmatprep.mubr.msk.f32.mxu0 %vm8474_vm2, %v8473_v50  ;;  %7697 = vmatpush3.msra.mxu0 %v8813_v28 }
 0x873   :  { %7706 = vmatprep.subr.mxu0 %v8473_v50 }
 0x92d   :  { %v1234_v12 = vpop.f32.mrf.mxu0 }
 0x92e   :  { %7684 = vmatmul.mubr.msk.f32.vlgmr.msra.gmra.mxu1 %vm594_vm3, %v1234_v12 }
 0x92f   :  { %v7680_v13 = vpop.f32.mrf.mxu0  ;;  %7693 = vmatprep.mubr.msk.f32.mxu1 %vm8474_vm2, %v8473_v50 }
 0x931   :  { %v1386_v14 = vpop.f32.mrf.mxu0 }
 0x932   :  { %v1390_v15 = vmul.f32 0.35355338, %v1386_v14 }
 0x933   :  { %v7690_v16 = vpop.f32.mrf.mxu0 }
 0x934   :  { %v1391_v17 = vsel %vm8732_vm4, -1e+09, %v1390_v15 }
 0x935   :  { %v1392_v18 = vsel %vm594_vm3, %v1391_v17, -inf }
 0x936   :  { %1393 = vmax.xlane.f32.xlu0 %v1392_v18 }
 0x94c   :  { %1403 = vrot.lane.b32.xlu0 %v8717_v1, %s8477_s24 }
 0x950   :  { %1715 = vrot.lane.b32.xlu0 %v8693_v55, %s8475_s30 }
 0x9bf   :  { %v1394_v19 = vpop.xlane.xlu0 %1393 }
 0x9c0   :  { %v1395_v20 = vsub.f32 %v1391_v17, %v1394_v19 }
 0x9c2   :  { %v1396_v21 = vmul.f32 1.442695, %v1395_v20 }
 0x9c3   :  { %v1404_v22 = vpop.permute.xlu0 %1403 }
 0x9c4   :  { %8180 = vpow2.f32 %v1396_v21  ;;  %7692 = vmatpush3.msra.mxu1 %v1404_v22 }
 0x9c5   :  { %7701 = vmatprep.subr.mxu1 %v8473_v50 }
 0x9c7   :  { %v1716_v33 = vpop.permute.xlu0 %1715 }
 0x9d1   :  { %v8181_v23 = vpop.eup %8180 }
 0x9d2   :  { %v1398_v24 = vsel %vm594_vm3, %v8181_v23, 0.0 }
 0x9d3   :  { %1399 = vadd.xlane.f32.xlu1 %v1398_v24 }
 0x9e4   :  { %1717 = vrot.lane.b32.xlu1 %v8695_v56, %s8475_s30 }
 0x9ee   :  { %v1307_v1 = vpop.f32.mrf.mxu1 }
 0x9ef   :  { %v1311_v26 = vadd.f32 %v1307_v1, %v1068_v25 }
 0x9f0   :  { %v7685_v27 = vpop.f32.mrf.mxu1 }
 0xa5c   :  { %v1400_v29 = vpop.xlane.xlu1 %1399 }
 0xa5d   :  { %8182 = vrcp.f32 %v1400_v29 }
 0xa60   :  { %v1718_v32 = vpop.permute.xlu1 %1717 }
 0xa6a   :  { %v8183_v30 = vpop.eup %8182 }
 0xa6b   :  { %v1402_v31 = vmul.f32 %v8183_v30, %v8181_v23 }
 0xa6d   :  { %7694 = vmatmul.mubr.msk.f32.vlgmr.msra.gmra.mxu1 %vm594_vm3, %v1402_v31 }
 0xa6e   :  { %7702 = vmatpush3.xpose.msk.msra.mxu1 %vm594_vm3, %v8695_v56  ;;  %7703 = vmatprep.mubr.msk.f32.mxu1 %vm8474_vm2, %v8473_v50 }
 0xa6f   :  { %7711 = vmatprep.subr.mxu1 %v8473_v50 }
 0xa71   :  { %7704 = vmatmul.mubr.msk.f32.vlgmr.msra.gmra.mxu1 %vm594_vm3, %v8693_v55 }
 0xa72   :  { %7712 = vmatpush3.xpose.msk.msra.mxu1 %vm594_vm3, %v1718_v32  ;;  %7713 = vmatprep.mubr.msk.f32.mxu1 %vm8474_vm2, %v8473_v50 }
 0xa73   :  { %7721 = vmatprep.subr.mxu1 %v8473_v50 }
 0xa75   :  { %7714 = vmatmul.mubr.msk.f32.vlgmr.msra.gmra.mxu1 %vm594_vm3, %v1716_v33 }
 0xa76   :  { %7722 = vmatpush3.msra.mxu1 %v8754_v34  ;;  %7723 = vmatprep.mubr.msk.f32.mxu1 %vm8474_vm2, %v8473_v50 }
 0xa77   :  { %7731 = vmatprep.subr.mxu1 %v8473_v50 }
 0xb2d   :  { %v1475_v35 = vpop.f32.mrf.mxu1 }
 0xb2e   :  { %7699 = vmatmul.mubr.msk.f32.vlgmr.msra.gmra.mxu0 %vm594_vm3, %v1475_v35 }
 0xb2f   :  { %7707 = vmatpush3.msra.mxu0 %v8713_v63  ;;  %v7695_v36 = vpop.f32.mrf.mxu1  ;;  %7708 = vmatprep.mubr.msk.f32.mxu0 %vm8474_vm2, %v8473_v50 }
 0xb30   :  { %7716 = vmatprep.subr.mxu0 %v8473_v50 }
 0xb31   :  { %v1625_v37 = vpop.f32.mrf.mxu1 }
 0xb32   :  { %v1629_v39 = vmul.f32 0.35355338, %v1625_v37 }
 0xb33   :  { %v7705_v40 = vpop.f32.mrf.mxu1 }
 0xb34   :  { %v1630_v34 = vsel %vm8732_vm4, -1e+09, %v1629_v39 }
 0xb35   :  { %v1789_v41 = vpop.f32.mrf.mxu1  ;;  %v1631_v42 = vsel %vm594_vm3, %v1630_v34, -inf }
 0xb36   :  { %v1793_v43 = vmul.f32 0.35355338, %v1789_v41  ;;  %1632 = vmax.xlane.f32.xlu1 %v1631_v42  ;;  %v7195_v42 = vld [vmem:[%s9482_s7] ss:$0 sm:$0xff] }
 0xb37   :  { %v7715_v44 = vpop.f32.mrf.mxu1 }
 0xb38   :  { %v1794_v45 = vsel %vm8732_vm4, -1e+09, %v1793_v43 }
 0xb39   :  { %v1795_v46 = vsel %vm594_vm3, %v1794_v45, -inf }
 0xb3a   :  { %1796 = vmax.xlane.f32.xlu0 %v1795_v46 }
 0xb47   :  { %1807 = vrot.lane.b32.xlu1 %v8713_v63, %s8475_s30 }
 0xb4b   :  { %2029 = vrot.lane.b32.xlu1 %v8693_v55, %s8476_s23 }
 0xbbf   :  { %v1633_v47 = vpop.xlane.xlu1 %1632 }
 0xbc0   :  { %v1634_v48 = vsub.f32 %v1630_v34, %v1633_v47 }
 0xbc2   :  { %v1635_v49 = vmul.f32 1.442695, %v1634_v48 }
 0xbc3   :  { %v1797_v51 = vpop.xlane.xlu0 %1796  ;;  %v1808_v7 = vpop.permute.xlu1 %1807 }
 0xbc4   :  { %8184 = vpow2.f32 %v1635_v49  ;;  %v1798_v52 = vsub.f32 %v1794_v45, %v1797_v51 }
 0xbc6   :  { %v1799_v53 = vmul.f32 1.442695, %v1798_v52 }
 0xbc8   :  { %8186 = vpow2.f32 %v1799_v53 }
 0xbd1   :  { %v8185_v54 = vpop.eup %8184 }
 0xbd2   :  { %v1637_v57 = vsel %vm594_vm3, %v8185_v54, 0.0 }
 0xbd3   :  { %1638 = vadd.xlane.f32.xlu0 %v1637_v57 }
 0xbd5   :  { %v8187_v58 = vpop.eup %8186 }
 0xbd6   :  { %v1801_v61 = vsel %vm594_vm3, %v8187_v58, 0.0 }
 0xbd7   :  { %1802 = vadd.xlane.f32.xlu0 %v1801_v61 }
 0xbed   :  { %2031 = vrot.lane.b32.xlu0 %v8695_v56, %s8476_s23 }
 0xbee   :  { %v1548_v62 = vpop.f32.mrf.mxu0 }
 0xbef   :  { %v8853_v0 = vadd.f32 %v1548_v62, %v1311_v26 }
 0xbf0   :  { %v7700_v2 = vpop.f32.mrf.mxu0 }
 0xbf1   :  { %v2511_v34 = vadd.f32 %v8853_v0, %v8627_v8 }
 0xbf3   :  { %v8907_v45 = vadd.f32 %v7195_v42, %v2511_v34 }
 0xbf5   :  { %v2526_v47 = vsel %vm278_vm1, %v8907_v45, 0.0 }
 0xc5c   :  { %v1639_v3 = vpop.xlane.xlu0 %1638 }
 0xc5d   :  { %8188 = vrcp.f32 %v1639_v3 }
 0xc60   :  { %v1803_v60 = vpop.xlane.xlu0 %1802 }
 0xc61   :  { %8190 = vrcp.f32 %v1803_v60 }
 0xc64   :  { %v2032_v17 = vpop.permute.xlu0 %2031 }
 0xc6a   :  { %v8189_v4 = vpop.eup %8188 }
 0xc6b   :  { %v1641_v59 = vmul.f32 %v8189_v4, %v8185_v54 }
 0xc6d   :  { %7709 = vmatmul.mubr.msk.f32.vlgmr.msra.gmra.mxu0 %vm594_vm3, %v1641_v59 }
 0xc6e   :  { %v8191_v12 = vpop.eup %8190  ;;  %7717 = vmatpush3.msra.mxu0 %v1808_v7  ;;  %7718 = vmatprep.mubr.msk.f32.mxu0 %vm8474_vm2, %v8473_v50 }
 0xc6f   :  { %v1805_v13 = vmul.f32 %v8191_v12, %v8187_v58  ;;  %7726 = vmatprep.subr.mxu0 %v8473_v50 }
 0xc71   :  { %7719 = vmatmul.mubr.msk.f32.vlgmr.msra.gmra.mxu0 %vm594_vm3, %v1805_v13 }
 0xc72   :  { %7727 = vmatpush3.msra.mxu0 %v8758_v38  ;;  %7728 = vmatprep.mubr.msk.f32.mxu0 %vm8474_vm2, %v8473_v50  ;;  %v2030_v38 = vpop.permute.xlu1 %2029 }
 0xc73   :  { %7736 = vmatprep.subr.mxu0 %v8473_v50 }
 0xd2d   :  { %v1711_v14 = vpop.f32.mrf.mxu0 }
 0xd2e   :  { %7729 = vmatmul.mubr.msk.f32.vlgmr.msra.gmra.mxu0 %vm594_vm3, %v1711_v14 }
 0xd2f   :  { %v7710_v15 = vpop.f32.mrf.mxu0  ;;  %7738 = vmatprep.mubr.msk.f32.mxu0 %vm8474_vm2, %v8473_v50 }
 0xd31   :  { %v1879_v16 = vpop.f32.mrf.mxu0 }
 0xd32   :  { %7724 = vmatmul.mubr.msk.f32.vlgmr.msra.gmra.mxu1 %vm594_vm3, %v1879_v16 }
 0xd33   :  { %7732 = vmatpush3.xpose.msk.msra.mxu1 %vm594_vm3, %v2032_v17  ;;  %v7720_v18 = vpop.f32.mrf.mxu0  ;;  %7733 = vmatprep.mubr.msk.f32.mxu1 %vm8474_vm2, %v8473_v50 }
 0xd34   :  { %7741 = vmatprep.subr.mxu1 %v8473_v50 }
 0xd36   :  { %7734 = vmatmul.mubr.msk.f32.vlgmr.msra.gmra.mxu1 %vm594_vm3, %v2030_v38 }
 0xd37   :  { %7742 = vmatpush3.msra.mxu1 %v8795_v11  ;;  %7743 = vmatprep.mubr.msk.f32.mxu1 %vm8474_vm2, %v8473_v50 }
 0xd38   :  { %7751 = vmatprep.subr.mxu1 %v8473_v50 }
 0xdee   :  { %v2025_v19 = vpop.f32.mrf.mxu0 }
 0xdf0   :  { %v7730_v20 = vpop.f32.mrf.mxu0 }
 0xdf2   :  { %v1952_v21 = vpop.f32.mrf.mxu1 }
 0xdf3   :  { %v2026_v22 = vadd.f32 %v2025_v19, %v1952_v21 }
 0xdf4   :  { %v7725_v23 = vpop.f32.mrf.mxu1 }
 0xdf6   :  { %v2103_v24 = vpop.f32.mrf.mxu1 }
 0xdf7   :  { %v2107_v25 = vmul.f32 0.35355338, %v2103_v24 }
 0xdf8   :  { %v7735_v1 = vpop.f32.mrf.mxu1 }
 0xdf9   :  { %v2108_v26 = vsel %vm8732_vm4, -1e+09, %v2107_v25  ;;  %v7196_v25 = vld [vmem:[#allocation8 + $0x2] ss:$0 sm:$0xff] }
 0xdfa   :  { %v2109_v27 = vsel %vm594_vm3, %v2108_v26, -inf }
 0xdfb   :  { %2110 = vmax.xlane.f32.xlu1 %v2109_v27 }
 0xe0c   :  { %2272 = vrot.lane.b32.xlu1 %v8695_v56, %s8477_s24 }
 0xe10   :  { %2270 = vrot.lane.b32.xlu1 %v8693_v55, %s8477_s24 }
 0xe84   :  { %v2111_v11 = vpop.xlane.xlu1 %2110 }
 0xe85   :  { %v2112_v29 = vsub.f32 %v2108_v26, %v2111_v11  ;;  %v7197_v26 = vld [vmem:[#allocation8 + $0x3] ss:$0 sm:$0xff] }
 0xe87   :  { %v2113_v30 = vmul.f32 1.442695, %v2112_v29  ;;  %v2571_v29 = vld [vmem:[#allocation11 + $0x18] sm:$0xff] }
 0xe88   :  { %v2273_v36 = vpop.permute.xlu1 %2272 }
 0xe89   :  { %8192 = vpow2.f32 %v2113_v30  ;;  %v2570_v30 = vld [vmem:[#allocation11 + $0x10] sm:$0xff] }
 0xe8c   :  { %v2271_v37 = vpop.permute.xlu1 %2270 }
 0xe96   :  { %v8193_v31 = vpop.eup %8192 }
 0xe97   :  { %v2115_v32 = vsel %vm594_vm3, %v8193_v31, 0.0 }
 0xe98   :  { %2116 = vadd.xlane.f32.xlu0 %v2115_v32  ;;  %v2568_v32 = vld [vmem:[#allocation11] sm:$0xff] }
 0xeae   :  { %2120 = vrot.lane.b32.xlu0 %v8713_v63, %s8476_s23 }
 0xf21   :  { %v2117_v33 = vpop.xlane.xlu0 %2116 }
 0xf22   :  { %8194 = vrcp.f32 %v2117_v33  ;;  %v2669_v33 = vld [vmem:[%s9485_s10 + $0x38] sm:$0xff] }
 0xf25   :  { %v2121_v35 = vpop.permute.xlu0 %2120 }
 0xf26   :  { %7737 = vmatpush3.msra.mxu0 %v2121_v35  ;;  %v2668_v35 = vld [vmem:[%s9485_s10 + $0x30] sm:$0xff] }
 0xf27   :  { %7746 = vmatprep.subr.mxu0 %v8473_v50 }
 0xf2f   :  { %v8195_v56 = vpop.eup %8194 }
 0xf30   :  { %v2119_v55 = vmul.f32 %v8195_v56, %v8193_v31  ;;  %v2569_v31 = vld [vmem:[#allocation11 + $0x8] sm:$0xff]  ;;  %v2667_v56 = vld [vmem:[%s9485_s10 + $0x28] sm:$0xff] }
 0xf32   :  { %7739 = vmatmul.mubr.msk.f32.vlgmr.msra.gmra.mxu0 %vm594_vm3, %v2119_v55 }
 0xf33   :  { %7747 = vmatpush3.xpose.msk.msra.mxu0 %vm594_vm3, %v2273_v36  ;;  %7748 = vmatprep.mubr.msk.f32.mxu0 %vm8474_vm2, %v8473_v50  ;;  %v2666_v36 = vld [vmem:[%s9485_s10 + $0x20] sm:$0xff] }
 0xf34   :  { %7756 = vmatprep.subr.mxu0 %v8473_v50 }
 0xf36   :  { %7749 = vmatmul.mubr.msk.f32.vlgmr.msra.gmra.mxu0 %vm594_vm3, %v2271_v37 }
 0xf37   :  { %7757 = vmatpush3.msra.mxu0 %v8813_v28  ;;  %7758 = vmatprep.mubr.msk.f32.mxu0 %vm8474_vm2, %v8473_v50 }
 0xf38   :  { %7772 = vmatprep.subr.mxu0 %v2669_v33 }
 0xff2   :  { %v2192_v39 = vpop.f32.mrf.mxu0 }
 0xff3   :  { %7744 = vmatmul.mubr.msk.f32.vlgmr.msra.gmra.mxu1 %vm594_vm3, %v2192_v39 }
 0xff4   :  { %v7740_v40 = vpop.f32.mrf.mxu0  ;;  %7753 = vmatprep.mubr.msk.f32.mxu1 %vm8474_vm2, %v8473_v50 }
 0xff6   :  { %v2344_v41 = vpop.f32.mrf.mxu0 }
 0xff7   :  { %v2348_v43 = vmul.f32 0.35355338, %v2344_v41 }
 0xff8   :  { %v7750_v28 = vpop.f32.mrf.mxu0 }
 0xff9   :  { %v2349_v44 = vsel %vm8732_vm4, -1e+09, %v2348_v43  ;;  %v2665_v43 = vld [vmem:[%s9485_s10 + $0x18] sm:$0xff]  ;;  %v2664_v28 = vld [vmem:[%s9485_s10 + $0x10] sm:$0xff] }
 0xffa   :  { %v2350_v46 = vsel %vm594_vm3, %v2349_v44, -inf }
 0xffb   :  { %2351 = vmax.xlane.f32.xlu1 %v2350_v46  ;;  %v2662_v46 = vld [vmem:[%s9485_s10] sm:$0xff] }
 0xfff   :  { %2527 = vadd.xlane.f32.xlu1 %v2526_v47  ;;  %v7198_v47 = vld [vmem:[%s9484_s9] ss:$0 sm:$0xff] }
0x1084   :  { %v2352_v8 = vpop.xlane.xlu1 %2351 }
0x1085   :  { %v2353_v48 = vsub.f32 %v2349_v44, %v2352_v8  ;;  %v2663_v44 = vld [vmem:[%s9485_s10 + $0x8] sm:$0xff] }
0x1087   :  { %v2354_v49 = vmul.f32 1.442695, %v2353_v48 }
0x1088   :  { %v2528_v60 = vpop.xlane.xlu1 %2527 }
0x1089   :  { %8196 = vpow2.f32 %v2354_v49  ;;  %v2532_v4 = vmul.f32 0.03125, %v2528_v60 }
0x108b   :  { %v2534_v12 = vsub.f32 %v8907_v45, %v2532_v4 }
0x108d   :  { %v2536_v16 = vmul.f32 %v2534_v12, %v2534_v12 }
0x108f   :  { %v2538_v17 = vsel %vm278_vm1, %v2536_v16, 0.0 }
0x1096   :  { %v8197_v51 = vpop.eup %8196 }
0x1097   :  { %v2356_v52 = vsel %vm594_vm3, %v8197_v51, 0.0 }
0x1098   :  { %2357 = vadd.xlane.f32.xlu0 %v2356_v52 }
0x10ae   :  { %2361 = vrot.lane.b32.xlu0 %v8713_v63, %s8477_s24 }
0x10b3   :  { %v2265_v53 = vpop.f32.mrf.mxu1 }
0x10b4   :  { %v2269_v54 = vadd.f32 %v2265_v53, %v2026_v22 }
0x10b5   :  { %v7745_v57 = vpop.f32.mrf.mxu1 }
0x1121   :  { %v2358_v58 = vpop.xlane.xlu0 %2357 }
0x1122   :  { %8198 = vrcp.f32 %v2358_v58 }
0x1125   :  { %v2362_v61 = vpop.permute.xlu0 %2361 }
0x1126   :  { %7752 = vmatpush3.msra.mxu1 %v2362_v61 }
0x1127   :  { %7761 = vmatprep.subr.mxu1 %v2571_v29 }
0x112f   :  { %v8199_v62 = vpop.eup %8198 }
0x1130   :  { %v2360_v0 = vmul.f32 %v8199_v62, %v8197_v51 }
0x1132   :  { %7754 = vmatmul.mubr.msk.f32.vlgmr.msra.gmra.mxu1 %vm594_vm3, %v2360_v0 }
0x1133   :  { %7762 = vmatpush3.msra.mxu1 %v2571_v29 }
0x1134   :  { %7763 = vmatprep.subr.mxu1 %v2570_v30 }
0x1135   :  { %7764 = vmatpush3.msra.mxu1 %v2570_v30  ;;  %v7204_v30 = vld [vmem:[#allocation8 + $0x4] ss:$0 sm:$0xff] }
0x1136   :  { %7765 = vmatprep.subr.mxu1 %v2569_v31 }
0x1137   :  { %7766 = vmatpush3.msra.mxu1 %v2569_v31 }
0x1138   :  { %7767 = vmatprep.subr.mxu1 %v2568_v32 }
0x1139   :  { %7768 = vmatpush3.msra.mxu1 %v2568_v32  ;;  %v7205_v32 = vld [vmem:[#allocation8 + $0x5] ss:$0 sm:$0xff] }
0x11f2   :  { %v2433_v2 = vpop.f32.mrf.mxu1 }
0x11f3   :  { %7759 = vmatmul.mubr.msk.f32.vlgmr.msra.gmra.mxu0 %vm594_vm3, %v2433_v2 }
0x11f4   :  { %v7755_v3 = vpop.f32.mrf.mxu1  ;;  %7773 = vmatpush3.msra.mxu0 %v2669_v33 }
0x11f5   :  { %7774 = vmatprep.subr.mxu0 %v2668_v35 }
0x11f6   :  { %7775 = vmatpush3.msra.mxu0 %v2668_v35 }
0x11f7   :  { %7776 = vmatprep.subr.mxu0 %v2667_v56 }
0x11f8   :  { %7777 = vmatpush3.msra.mxu0 %v2667_v56 }
0x11f9   :  { %7778 = vmatprep.subr.mxu0 %v2666_v36 }
0x11fa   :  { %7779 = vmatpush3.msra.mxu0 %v2666_v36 }
0x11fb   :  { %7780 = vmatprep.subr.mxu0 %v2665_v43 }
0x11fc   :  { %7781 = vmatpush3.msra.mxu0 %v2665_v43 }
0x11fd   :  { %7782 = vmatprep.subr.mxu0 %v2664_v28 }
0x11fe   :  { %7783 = vmatpush3.msra.mxu0 %v2664_v28 }
0x11ff   :  { %7784 = vmatprep.subr.mxu0 %v2663_v44 }
0x1200   :  { %7785 = vmatpush3.msra.mxu0 %v2663_v44 }
0x1201   :  { %7786 = vmatprep.subr.mxu0 %v2662_v46 }
0x1202   :  { %7787 = vmatpush3.msra.mxu0 %v2662_v46 }
0x12b3   :  { %v2506_v59 = vpop.f32.mrf.mxu0 }
0x12b4   :  { %v2510_v7 = vadd.f32 %v2506_v59, %v2269_v54  ;;  %v7201_v54 = vld [vmem:[%s9486_s11] ss:$0 sm:$0xff] }
0x12b5   :  { %v7760_v63 = vpop.f32.mrf.mxu0 }
0x12b6   :  { %v2512_v13 = vadd.f32 %v2510_v7, %v8629_v9 }
0x12b8   :  { %v8919_v14 = vadd.f32 %v7195_v42, %v2512_v13 }
0x12ba   :  { %v2529_v15 = vsel %vm278_vm1, %v8919_v14, 0.0 }
0x12bb   :  { %2530 = vadd.xlane.f32.xlu1 %v2529_v15 }
0x12bf   :  { %2539 = vadd.xlane.f32.xlu1 %v2538_v17  ;;  %v7209_v17 = vld [vmem:[%s9479_s4 + $0x78] sm:$0xff] }
0x12c0   :  { %7791 = vmatprep.subr.mxu1 %v7209_v17 }
0x1344   :  { %v2531_v18 = vpop.xlane.xlu1 %2530 }
0x1345   :  { %v2533_v38 = vmul.f32 0.03125, %v2531_v18  ;;  %v7225_v18 = vld [vmem:[%s9479_s4 + $0xb8] sm:$0xff] }
0x1346   :  { %7813 = vmatprep.subr.mxu0 %v7225_v18 }
0x1347   :  { %v2535_v19 = vsub.f32 %v8919_v14, %v2533_v38  ;;  %v7208_v38 = vld [vmem:[%s9479_s4 + $0x70] sm:$0xff] }
0x1348   :  { %v2540_v20 = vpop.xlane.xlu1 %2539 }
0x1349   :  { %v2544_v21 = vmul.f32 0.03125, %v2540_v20  ;;  %v2537_v22 = vmul.f32 %v2535_v19, %v2535_v19  ;;  %v7207_v20 = vld [vmem:[%s9479_s4 + $0x68] sm:$0xff] }
0x134b   :  { %v2546_v23 = vadd.f32 1e-05, %v2544_v21  ;;  %v2541_v9 = vsel %vm278_vm1, %v2537_v22, 0.0  ;;  %v7223_v21 = vld [vmem:[%s9479_s4 + $0xa8] sm:$0xff]  ;;  %v7206_v22 = vld [vmem:[%s9479_s4 + $0x60] sm:$0xff] }
0x134c   :  { %2542 = vadd.xlane.f32.xlu1 %v2541_v9  ;;  %v7217_v9 = vld [vmem:[%s9479_s4 + $0x98] sm:$0xff] }
0x134d   :  { %8200 = vrsqrt.f32 %v2546_v23  ;;  %v7222_v23 = vld [vmem:[%s9479_s4 + $0xa0] sm:$0xff] }
0x135a   :  { %v8201_v24 = vpop.eup %8200 }
0x135b   :  { %v2550_v1 = vmul.f32 %v8201_v24, %v2534_v12 }
0x135d   :  { %v2558_v27 = vmul.f32 %v7196_v25, %v2550_v1 }
0x135f   :  { %v2566_v11 = vadd.f32 %v7197_v26, %v2558_v27 }
0x1361   :  { %7769 = vmatprep.mubr.msk.f32.mxu1 %vm278_vm1, %v2566_v11 }
0x13d5   :  { %v2543_v55 = vpop.xlane.xlu1 %2542 }
0x13d6   :  { %v2545_v37 = vmul.f32 0.03125, %v2543_v55 }
0x13d8   :  { %v2547_v39 = vadd.f32 1e-05, %v2545_v37 }
0x13da   :  { %8202 = vrsqrt.f32 %v2547_v39  ;;  %v7216_v39 = vld [vmem:[%s9479_s4 + $0x90] sm:$0xff] }
0x13e7   :  { %v8203_v40 = vpop.eup %8202 }
0x13e8   :  { %v2551_v34 = vmul.f32 %v8203_v40, %v2535_v19  ;;  %v7224_v19 = vld [vmem:[%s9479_s4 + $0xb0] sm:$0xff]  ;;  %v7215_v40 = vld [vmem:[%s9479_s4 + $0x88] sm:$0xff] }
0x13ea   :  { %v2559_v41 = vmul.f32 %v7196_v25, %v2551_v34  ;;  %v7214_v34 = vld [vmem:[%s9479_s4 + $0x80] sm:$0xff] }
0x13ec   :  { %v2567_v42 = vadd.f32 %v7197_v26, %v2559_v41  ;;  %v7211_v41 = vld [vmem:[%s9480_s5 + $0x3] ss:$0 sm:$0xff] }
0x13ee   :  { %7770 = vmatmul.mubr.msk.f32.vlgmr.msra.gmra.mxu1 %vm278_vm1, %v2567_v42  ;;  %v7227_v42 = vld [vmem:[%s9480_s5 + $0x5] ss:$0 sm:$0xff] }
0x13ef   :  { %7792 = vmatpush3.msra.mxu1 %v7209_v17 }
0x13f0   :  { %7793 = vmatprep.subr.mxu1 %v7208_v38 }
0x13f1   :  { %7794 = vmatpush3.msra.mxu1 %v7208_v38 }
0x13f2   :  { %7795 = vmatprep.subr.mxu1 %v7207_v20 }
0x13f3   :  { %7796 = vmatpush3.msra.mxu1 %v7207_v20 }
0x13f4   :  { %7797 = vmatprep.subr.mxu1 %v7206_v22 }
0x13f5   :  { %7798 = vmatpush3.msra.mxu1 %v7206_v22 }
0x13f6   :  { %7802 = vmatprep.subr.mxu1 %v7217_v9 }
0x14ae   :  { %v7771_v8 = vpop.f32.mrf.mxu1 }
0x14af   :  { %v2657_v48 = vadd.f32 %v7771_v8, %v7198_v47 }
0x14b0   :  { %v2651_v49 = vpop.f32.mrf.mxu1 }
0x14b1   :  { %v2652_v51 = vadd.f32 %v7198_v47, %v2651_v49  ;;  %v2661_v53 = vmax.f32 %v2657_v48, 0.0  ;;  %v7219_v49 = vld [vmem:[%s9480_s5 + $0x4] ss:$0 sm:$0xff]  ;;  %s8478_s5 = smov [#allocation17]  }
0x14b3   :  { %v2660_v52 = vmax.f32 %v2652_v51, 0.0 }
0x14b5   :  { %7788 = vmatprep.mubr.msk.f32.mxu0 %vm2677_vm5, %v2660_v52 }
0x14b6   :  { %7789 = vmatmul.mubr.msk.f32.vlgmr.msra.gmra.mxu0 %vm2677_vm5, %v2661_v53 }
0x14b7   :  { %7814 = vmatpush3.msra.mxu0 %v7225_v18 }
0x14b8   :  { %7815 = vmatprep.subr.mxu0 %v7224_v19 }
0x14b9   :  { %7816 = vmatpush3.msra.mxu0 %v7224_v19 }
0x14ba   :  { %7817 = vmatprep.subr.mxu0 %v7223_v21 }
0x14bb   :  { %7818 = vmatpush3.msra.mxu0 %v7223_v21 }
0x14bc   :  { %7819 = vmatprep.subr.mxu0 %v7222_v23 }
0x14bd   :  { %7820 = vmatpush3.msra.mxu0 %v7222_v23 }
0x14be   :  { %7829 = vmatprep.subr.mxu0 %v8473_v50 }
0x1576   :  { %v7790_v57 = vpop.f32.mrf.mxu0 }
0x1577   :  { %v2756_v58 = vadd.f32 %v7790_v57, %v7201_v54 }
0x1578   :  { %v2750_v61 = vpop.f32.mrf.mxu0 }
0x1579   :  { %v8961_v62 = vadd.f32 %v2756_v58, %v8919_v14  ;;  %v2751_v0 = vadd.f32 %v7201_v54, %v2750_v61 }
0x157b   :  { %v8964_v2 = vadd.f32 %v2751_v0, %v8907_v45  ;;  %v2768_v3 = vsel %vm278_vm1, %v8961_v62, 0.0 }
0x157c   :  { %2769 = vadd.xlane.f32.xlu0 %v2768_v3 }
0x157d   :  { %v2765_v60 = vsel %vm278_vm1, %v8964_v2, 0.0 }
0x157e   :  { %2766 = vadd.xlane.f32.xlu1 %v2765_v60 }
0x1605   :  { %v2770_v4 = vpop.xlane.xlu0 %2769 }
0x1606   :  { %v2772_v59 = vmul.f32 0.03125, %v2770_v4 }
0x1607   :  { %v2767_v7 = vpop.xlane.xlu1 %2766 }
0x1608   :  { %v2771_v63 = vmul.f32 0.03125, %v2767_v7  ;;  %v2774_v12 = vsub.f32 %v8961_v62, %v2772_v59 }
0x160a   :  { %v2773_v13 = vsub.f32 %v8964_v2, %v2771_v63  ;;  %v2776_v15 = vmul.f32 %v2774_v12, %v2774_v12 }
0x160c   :  { %v2775_v14 = vmul.f32 %v2773_v13, %v2773_v13  ;;  %v2780_v16 = vsel %vm278_vm1, %v2776_v15, 0.0 }
0x160e   :  { %v2777_v45 = vsel %vm278_vm1, %v2775_v14, 0.0 }
0x160f   :  { %2778 = vadd.xlane.f32.xlu1 %v2777_v45 }
0x1613   :  { %2781 = vadd.xlane.f32.xlu1 %v2780_v16 }
0x1698   :  { %v2779_v24 = vpop.xlane.xlu1 %2778 }
0x1699   :  { %v2783_v25 = vmul.f32 0.03125, %v2779_v24 }
0x169b   :  { %v2785_v1 = vadd.f32 1e-05, %v2783_v25  ;;  %v9078_v25 = vld [vmem:[#allocation10 + $0x28] sm:$0xff] }
0x169c   :  { %v2782_v26 = vpop.xlane.xlu1 %2781 }
0x169d   :  { %8204 = vrsqrt.f32 %v2785_v1  ;;  %v2784_v27 = vmul.f32 0.03125, %v2782_v26 }
0x169f   :  { %v2786_v11 = vadd.f32 1e-05, %v2784_v27 }
0x16a1   :  { %8206 = vrsqrt.f32 %v2786_v11 }
0x16aa   :  { %v8205_v29 = vpop.eup %8204 }
0x16ab   :  { %v2789_v31 = vmul.f32 %v8205_v29, %v2773_v13  ;;  %v9083_v29 = vld [vmem:[#allocation10 + $0x20] sm:$0xff] }
0x16ad   :  { %v2797_v33 = vmul.f32 %v7204_v30, %v2789_v31 }
0x16ae   :  { %v8207_v35 = vpop.eup %8206 }
0x16af   :  { %v2790_v56 = vmul.f32 %v8207_v35, %v2774_v12  ;;  %v2805_v36 = vadd.f32 %v7205_v32, %v2797_v33 }
0x16b1   :  { %v2798_v55 = vmul.f32 %v7204_v30, %v2790_v56  ;;  %7799 = vmatprep.mubr.msk.f32.mxu1 %vm278_vm1, %v2805_v36  ;;  %7821 = vmatprep.mubr.msk.f32.mxu0 %vm278_vm1, %v2805_v36 }
0x16b3   :  { %v2806_v37 = vadd.f32 %v7205_v32, %v2798_v55 }
0x16b5   :  { %7800 = vmatmul.mubr.msk.f32.vlgmr.msra.gmra.mxu1 %vm278_vm1, %v2806_v37  ;;  %7822 = vmatmul.mubr.msk.f32.vlgmr.msra.gmra.mxu0 %vm278_vm1, %v2806_v37 }
0x16b6   :  { %7803 = vmatpush3.msra.mxu1 %v7217_v9  ;;  %7810 = vmatprep.mubr.msk.f32.mxu1 %vm278_vm1, %v2805_v36 }
0x16b7   :  { %7804 = vmatprep.subr.mxu1 %v7216_v39  ;;  %7831 = vmatprep.mubr.msk.f32.mxu0 %vm8474_vm2, %v8473_v50 }
0x16b8   :  { %7805 = vmatpush3.msra.mxu1 %v7216_v39 }
0x16b9   :  { %7806 = vmatprep.subr.mxu1 %v7215_v40 }
0x16ba   :  { %7807 = vmatpush3.msra.mxu1 %v7215_v40 }
0x16bb   :  { %7808 = vmatprep.subr.mxu1 %v7214_v34 }
0x16bc   :  { %7809 = vmatpush3.msra.mxu1 %v7214_v34 }
0x16bd   :  { %7811 = vmatmul.mubr.msk.f32.vlgmr.msra.gmra.mxu1 %vm278_vm1, %v2806_v37  ;;  %7824 = vmatprep.subr.mxu1 %v8473_v50 }
0x16be   :  { %7826 = vmatprep.mubr.msk.f32.mxu1 %vm8474_vm2, %v8473_v50 }
0x1775   :  { %v7801_v43 = vpop.f32.mrf.mxu1  ;;  %v7823_v28 = vpop.f32.mrf.mxu0 }
0x1776   :  { %v9028_v44 = vadd.f32 %v7801_v43, %v7211_v41  ;;  %v9030_v46 = vadd.f32 %v7823_v28, %v7227_v42 }
0x1777   :  { %v3068_v47 = vpop.f32.mrf.mxu0  ;;  %v2892_v48 = vpop.f32.mrf.mxu1 }
0x1778   :  { %v9032_v8 = vadd.f32 %v7227_v42, %v3068_v47  ;;  %v9047_v57 = vadd.f32 %v7211_v41, %v2892_v48 }
0x177a   :  { %7830 = vmatpush3.msra.mxu0 %v9032_v8 }
0x177b   :  { %7839 = vmatprep.subr.mxu0 %v8473_v50 }
0x177d   :  { %v7812_v51 = vpop.f32.mrf.mxu1 }
0x177e   :  { %v9039_v52 = vadd.f32 %v7812_v51, %v7219_v49 }
0x177f   :  { %v2980_v53 = vpop.f32.mrf.mxu1 }
0x1780   :  { %v9041_v54 = vadd.f32 %v7219_v49, %v2980_v53 }
0x1782   :  { %3246 = vrot.lane.b32.xlu1 %v9041_v54, %s8475_s30  ;;  %7825 = vmatpush3.xpose.msk.msra.mxu1 %vm594_vm3, %v9041_v54 }
0x1783   :  { %7834 = vmatprep.subr.mxu1 %v8473_v50 }
0x1785   :  { %7827 = vmatmul.mubr.msk.f32.vlgmr.msra.gmra.mxu1 %vm594_vm3, %v9047_v57 }
0x1786   :  { %3244 = vrot.lane.b32.xlu1 %v9047_v57, %s8475_s30  ;;  %7836 = vmatprep.mubr.msk.f32.mxu1 %vm8474_vm2, %v8473_v50 }
0x17f4   :  { %v3247_v58 = vpop.permute.xlu1 %3246 }
0x17f5   :  { %7835 = vmatpush3.xpose.msk.msra.mxu1 %vm594_vm3, %v3247_v58 }
0x17f6   :  { %7844 = vmatprep.subr.mxu1 %v8473_v50 }
0x17f8   :  { %v3245_v61 = vpop.permute.xlu1 %3244 }
0x17f9   :  { %7837 = vmatmul.mubr.msk.f32.vlgmr.msra.gmra.mxu1 %vm594_vm3, %v3245_v61 }
0x17fa   :  { %7846 = vmatprep.mubr.msk.f32.mxu1 %vm8474_vm2, %v8473_v50  ;;  %7845 = vmatpush3.msra.mxu1 %v9078_v25 }
0x17fb   :  { %7854 = vmatprep.subr.mxu1 %v8473_v50 }
0x1845   :  { %v3154_v0 = vpop.f32.mrf.mxu1 }
0x1846   :  { %v3158_v3 = vmul.f32 0.35355338, %v3154_v0 }
0x1847   :  { %v7828_v60 = vpop.f32.mrf.mxu1 }
0x1848   :  { %v3159_v4 = vsel %vm8732_vm4, -1e+09, %v3158_v3 }
0x1849   :  { %v3160_v59 = vsel %vm594_vm3, %v3159_v4, -inf }
0x184a   :  { %3161 = vmax.xlane.f32.xlu0 %v3160_v59 }
0x18b9   :  { %v3318_v7 = vpop.f32.mrf.mxu1 }
0x18ba   :  { %v3322_v63 = vmul.f32 0.35355338, %v3318_v7 }
0x18bb   :  { %v7838_v12 = vpop.f32.mrf.mxu1 }
0x18bc   :  { %v3323_v13 = vsel %vm8732_vm4, -1e+09, %v3322_v63 }
0x18bd   :  { %v3324_v14 = vsel %vm594_vm3, %v3323_v13, -inf }
0x18be   :  { %3325 = vmax.xlane.f32.xlu1 %v3324_v14 }
0x18cf   :  { %3558 = vrot.lane.b32.xlu1 %v9047_v57, %s8476_s23 }
0x18d3   :  { %v3162_v45 = vpop.xlane.xlu0 %3161 }
0x18d4   :  { %v3163_v15 = vsub.f32 %v3159_v4, %v3162_v45 }
0x18d6   :  { %v3164_v16 = vmul.f32 1.442695, %v3163_v15 }
0x18d8   :  { %8208 = vpow2.f32 %v3164_v16 }
0x18e5   :  { %v8209_v17 = vpop.eup %8208 }
0x18e6   :  { %v3166_v18 = vsel %vm594_vm3, %v8209_v17, 0.0 }
0x18e7   :  { %3167 = vadd.xlane.f32.xlu0 %v3166_v18 }
0x1947   :  { %v3326_v38 = vpop.xlane.xlu1 %3325 }
0x1948   :  { %v3327_v19 = vsub.f32 %v3323_v13, %v3326_v38 }
0x194a   :  { %v3328_v20 = vmul.f32 1.442695, %v3327_v19 }
0x194b   :  { %v3559_v56 = vpop.permute.xlu1 %3558 }
0x194c   :  { %8210 = vpow2.f32 %v3328_v20 }
0x1959   :  { %v8211_v21 = vpop.eup %8210 }
0x195a   :  { %v3330_v22 = vsel %vm594_vm3, %v8211_v21, 0.0 }
0x195b   :  { %3331 = vadd.xlane.f32.xlu0 %v3330_v22 }
0x1970   :  { %v3168_v23 = vpop.xlane.xlu0 %3167 }
0x1971   :  { %8212 = vrcp.f32 %v3168_v23  ;;  %3336 = vrot.lane.b32.xlu0 %v9032_v8, %s8475_s30 }
0x1975   :  { %3560 = vrot.lane.b32.xlu0 %v9041_v54, %s8476_s23 }
0x197e   :  { %v8213_v9 = vpop.eup %8212 }
0x197f   :  { %v3170_v24 = vmul.f32 %v8213_v9, %v8209_v17 }
0x1981   :  { %7832 = vmatmul.mubr.msk.f32.vlgmr.msra.gmra.mxu0 %vm594_vm3, %v3170_v24 }
0x1982   :  { %7841 = vmatprep.mubr.msk.f32.mxu0 %vm8474_vm2, %v8473_v50 }
0x19e4   :  { %v3332_v1 = vpop.xlane.xlu0 %3331 }
0x19e5   :  { %8214 = vrcp.f32 %v3332_v1 }
0x19e8   :  { %v3337_v26 = vpop.permute.xlu0 %3336 }
0x19e9   :  { %7840 = vmatpush3.msra.mxu0 %v3337_v26 }
0x19ea   :  { %7849 = vmatprep.subr.mxu0 %v8473_v50 }
0x19ec   :  { %v3561_v33 = vpop.permute.xlu0 %3560 }
0x19f2   :  { %v8215_v27 = vpop.eup %8214 }
0x19f3   :  { %v3334_v11 = vmul.f32 %v8215_v27, %v8211_v21  ;;  %v9138_v21 = vld [vmem:[#allocation10 + $0x38] sm:$0xff] }
0x19f5   :  { %7842 = vmatmul.mubr.msk.f32.vlgmr.msra.gmra.mxu0 %vm594_vm3, %v3334_v11 }
0x19f6   :  { %7850 = vmatpush3.msra.mxu0 %v9083_v29  ;;  %7851 = vmatprep.mubr.msk.f32.mxu0 %vm8474_vm2, %v8473_v50 }
0x19f7   :  { %7859 = vmatprep.subr.mxu0 %v8473_v50 }
0x1a41   :  { %v3240_v30 = vpop.f32.mrf.mxu0 }
0x1a42   :  { %7852 = vmatmul.mubr.msk.f32.vlgmr.msra.gmra.mxu0 %vm594_vm3, %v3240_v30 }
0x1a43   :  { %v7833_v31 = vpop.f32.mrf.mxu0  ;;  %7861 = vmatprep.mubr.msk.f32.mxu0 %vm8474_vm2, %v8473_v50 }
0x1ab5   :  { %v3408_v32 = vpop.f32.mrf.mxu0 }
0x1ab6   :  { %7847 = vmatmul.mubr.msk.f32.vlgmr.msra.gmra.mxu1 %vm594_vm3, %v3408_v32 }
0x1ab7   :  { %7855 = vmatpush3.xpose.msk.msra.mxu1 %vm594_vm3, %v3561_v33  ;;  %v7843_v35 = vpop.f32.mrf.mxu0  ;;  %7856 = vmatprep.mubr.msk.f32.mxu1 %vm8474_vm2, %v8473_v50 }
0x1ab8   :  { %7864 = vmatprep.subr.mxu1 %v8473_v50 }
0x1aba   :  { %7857 = vmatmul.mubr.msk.f32.vlgmr.msra.gmra.mxu1 %vm594_vm3, %v3559_v56 }
0x1abb   :  { %7866 = vmatprep.mubr.msk.f32.mxu1 %vm8474_vm2, %v8473_v50 }
0x1b02   :  { %v3554_v36 = vpop.f32.mrf.mxu0 }
0x1b04   :  { %v7853_v55 = vpop.f32.mrf.mxu0 }
0x1b76   :  { %v3481_v37 = vpop.f32.mrf.mxu1 }
0x1b77   :  { %v3555_v38 = vadd.f32 %v3554_v36, %v3481_v37 }
0x1b78   :  { %v7848_v39 = vpop.f32.mrf.mxu1 }
0x1b7a   :  { %v3632_v40 = vpop.f32.mrf.mxu1 }
0x1b7b   :  { %v3636_v34 = vmul.f32 0.35355338, %v3632_v40 }
0x1b7c   :  { %v7858_v41 = vpop.f32.mrf.mxu1 }
0x1b7d   :  { %v3637_v42 = vsel %vm8732_vm4, -1e+09, %v3636_v34 }
0x1b7e   :  { %v3638_v43 = vsel %vm594_vm3, %v3637_v42, -inf }
0x1b7f   :  { %3639 = vmax.xlane.f32.xlu0 %v3638_v43 }
0x1b95   :  { %3649 = vrot.lane.b32.xlu0 %v9032_v8, %s8476_s23 }
0x1b99   :  { %3799 = vrot.lane.b32.xlu0 %v9047_v57, %s8477_s24 }
0x1c08   :  { %v3640_v28 = vpop.xlane.xlu0 %3639 }
0x1c09   :  { %v3641_v47 = vsub.f32 %v3637_v42, %v3640_v28 }
0x1c0b   :  { %v3642_v48 = vmul.f32 1.442695, %v3641_v47 }
0x1c0c   :  { %v3650_v49 = vpop.permute.xlu0 %3649 }
0x1c0d   :  { %8216 = vpow2.f32 %v3642_v48  ;;  %7860 = vmatpush3.msra.mxu0 %v3650_v49 }
0x1c0e   :  { %7869 = vmatprep.subr.mxu0 %v8473_v50 }
0x1c10   :  { %v3800_v3 = vpop.permute.xlu0 %3799 }
0x1c1a   :  { %v8217_v51 = vpop.eup %8216 }
0x1c1b   :  { %v3644_v53 = vsel %vm594_vm3, %v8217_v51, 0.0 }
0x1c1c   :  { %3645 = vadd.xlane.f32.xlu1 %v3644_v53 }
0x1c2d   :  { %3801 = vrot.lane.b32.xlu1 %v9041_v54, %s8477_s24  ;;  %v9120_v54 = vld [vmem:[#allocation10 + $0x30] sm:$0xff] }
0x1c2e   :  { %7865 = vmatpush3.msra.mxu1 %v9120_v54 }
0x1c2f   :  { %7874 = vmatprep.subr.mxu1 %v8473_v50 }
0x1ca5   :  { %v3646_v58 = vpop.xlane.xlu1 %3645 }
0x1ca6   :  { %8218 = vrcp.f32 %v3646_v58 }
0x1ca9   :  { %v3802_v57 = vpop.permute.xlu1 %3801 }
0x1cb3   :  { %v8219_v61 = vpop.eup %8218 }
0x1cb4   :  { %v3648_v0 = vmul.f32 %v8219_v61, %v8217_v51 }
0x1cb6   :  { %7862 = vmatmul.mubr.msk.f32.vlgmr.msra.gmra.mxu0 %vm594_vm3, %v3648_v0 }
0x1cb7   :  { %7870 = vmatpush3.xpose.msk.msra.mxu0 %vm594_vm3, %v3802_v57  ;;  %7871 = vmatprep.mubr.msk.f32.mxu0 %vm8474_vm2, %v8473_v50 }
0x1cb8   :  { %7879 = vmatprep.subr.mxu0 %v8473_v50 }
0x1cba   :  { %7872 = vmatmul.mubr.msk.f32.vlgmr.msra.gmra.mxu0 %vm594_vm3, %v3800_v3 }
0x1cbb   :  { %7881 = vmatprep.mubr.msk.f32.mxu0 %vm8474_vm2, %v8473_v50  ;;  %7880 = vmatpush3.msra.mxu0 %v9138_v21 }
0x1cbc   :  { %7889 = vmatprep.subr.mxu0 %v8473_v50 }
0x1d76   :  { %v3721_v60 = vpop.f32.mrf.mxu0 }
0x1d77   :  { %7867 = vmatmul.mubr.msk.f32.vlgmr.msra.gmra.mxu1 %vm594_vm3, %v3721_v60 }
0x1d78   :  { %v7863_v4 = vpop.f32.mrf.mxu0  ;;  %7876 = vmatprep.mubr.msk.f32.mxu1 %vm8474_vm2, %v8473_v50 }
0x1d7a   :  { %v3873_v59 = vpop.f32.mrf.mxu0 }
0x1d7b   :  { %v3877_v7 = vmul.f32 0.35355338, %v3873_v59 }
0x1d7c   :  { %v7873_v63 = vpop.f32.mrf.mxu0 }
0x1d7d   :  { %v3878_v12 = vsel %vm8732_vm4, -1e+09, %v3877_v7 }
0x1d7e   :  { %v3879_v13 = vsel %vm594_vm3, %v3878_v12, -inf }
0x1d7f   :  { %3880 = vmax.xlane.f32.xlu0 %v3879_v13 }
0x1d95   :  { %3890 = vrot.lane.b32.xlu0 %v9032_v8, %s8477_s24 }
0x1d99   :  { %4202 = vrot.lane.b32.xlu0 %v9028_v44, %s8475_s30 }
0x1e08   :  { %v3881_v14 = vpop.xlane.xlu0 %3880 }
0x1e09   :  { %v3882_v45 = vsub.f32 %v3878_v12, %v3881_v14 }
0x1e0b   :  { %v3883_v15 = vmul.f32 1.442695, %v3882_v45 }
0x1e0c   :  { %v3891_v16 = vpop.permute.xlu0 %3890 }
0x1e0d   :  { %8220 = vpow2.f32 %v3883_v15  ;;  %7875 = vmatpush3.msra.mxu1 %v3891_v16 }
0x1e0e   :  { %7884 = vmatprep.subr.mxu1 %v8473_v50 }
0x1e10   :  { %v4203_v1 = vpop.permute.xlu0 %4202 }
0x1e1a   :  { %v8221_v17 = vpop.eup %8220 }
0x1e1b   :  { %v3885_v18 = vsel %vm594_vm3, %v8221_v17, 0.0 }
0x1e1c   :  { %3886 = vadd.xlane.f32.xlu1 %v3885_v18 }
0x1e2d   :  { %4204 = vrot.lane.b32.xlu1 %v9039_v52, %s8475_s30 }
0x1e37   :  { %v3794_v8 = vpop.f32.mrf.mxu1 }
0x1e38   :  { %v3798_v19 = vadd.f32 %v3794_v8, %v3555_v38 }
0x1e39   :  { %v7868_v20 = vpop.f32.mrf.mxu1 }
0x1ea5   :  { %v3887_v22 = vpop.xlane.xlu1 %3886 }
0x1ea6   :  { %8222 = vrcp.f32 %v3887_v22 }
0x1ea9   :  { %v4205_v24 = vpop.permute.xlu1 %4204 }
0x1eb3   :  { %v8223_v23 = vpop.eup %8222 }
0x1eb4   :  { %v3889_v9 = vmul.f32 %v8223_v23, %v8221_v17 }
0x1eb6   :  { %7877 = vmatmul.mubr.msk.f32.vlgmr.msra.gmra.mxu1 %vm594_vm3, %v3889_v9 }
0x1eb7   :  { %7885 = vmatpush3.xpose.msk.msra.mxu1 %vm594_vm3, %v9039_v52  ;;  %7886 = vmatprep.mubr.msk.f32.mxu1 %vm8474_vm2, %v8473_v50 }
0x1eb8   :  { %7894 = vmatprep.subr.mxu1 %v8473_v50 }
0x1eba   :  { %7887 = vmatmul.mubr.msk.f32.vlgmr.msra.gmra.mxu1 %vm594_vm3, %v9028_v44 }
0x1ebb   :  { %7895 = vmatpush3.xpose.msk.msra.mxu1 %vm594_vm3, %v4205_v24  ;;  %7896 = vmatprep.mubr.msk.f32.mxu1 %vm8474_vm2, %v8473_v50 }
0x1ebc   :  { %7904 = vmatprep.subr.mxu1 %v8473_v50 }
0x1ebe   :  { %7897 = vmatmul.mubr.msk.f32.vlgmr.msra.gmra.mxu1 %vm594_vm3, %v4203_v1 }
0x1ebf   :  { %7905 = vmatpush3.msra.mxu1 %v9078_v25  ;;  %7906 = vmatprep.mubr.msk.f32.mxu1 %vm8474_vm2, %v8473_v50 }
0x1ec0   :  { %7914 = vmatprep.subr.mxu1 %v8473_v50 }
0x1f76   :  { %v3962_v26 = vpop.f32.mrf.mxu1 }
0x1f77   :  { %7882 = vmatmul.mubr.msk.f32.vlgmr.msra.gmra.mxu0 %vm594_vm3, %v3962_v26 }
0x1f78   :  { %7890 = vmatpush3.msra.mxu0 %v9030_v46  ;;  %v7878_v27 = vpop.f32.mrf.mxu1  ;;  %7891 = vmatprep.mubr.msk.f32.mxu0 %vm8474_vm2, %v8473_v50 }
0x1f79   :  { %7899 = vmatprep.subr.mxu0 %v8473_v50 }
0x1f7a   :  { %v4112_v11 = vpop.f32.mrf.mxu1 }
0x1f7b   :  { %v4116_v30 = vmul.f32 0.35355338, %v4112_v11 }
0x1f7c   :  { %v7888_v31 = vpop.f32.mrf.mxu1 }
0x1f7d   :  { %v4117_v25 = vsel %vm8732_vm4, -1e+09, %v4116_v30 }
0x1f7e   :  { %v4276_v32 = vpop.f32.mrf.mxu1  ;;  %v4118_v33 = vsel %vm594_vm3, %v4117_v25, -inf }
0x1f7f   :  { %v4280_v35 = vmul.f32 0.35355338, %v4276_v32  ;;  %4119 = vmax.xlane.f32.xlu0 %v4118_v33  ;;  %v7263_v33 = vld [vmem:[%s9482_s7 + $0x1] ss:$0 sm:$0xff] }
0x1f80   :  { %v7898_v56 = vpop.f32.mrf.mxu1 }
0x1f81   :  { %v4281_v36 = vsel %vm8732_vm4, -1e+09, %v4280_v35 }
0x1f82   :  { %v4282_v55 = vsel %vm594_vm3, %v4281_v36, -inf }
0x1f83   :  { %4283 = vmax.xlane.f32.xlu1 %v4282_v55 }
0x1f94   :  { %4518 = vrot.lane.b32.xlu1 %v9039_v52, %s8476_s23 }
0x1f98   :  { %4516 = vrot.lane.b32.xlu1 %v9028_v44, %s8476_s23 }
0x2008   :  { %v4120_v37 = vpop.xlane.xlu0 %4119 }
0x2009   :  { %v4121_v39 = vsub.f32 %v4117_v25, %v4120_v37 }
0x200b   :  { %v4122_v40 = vmul.f32 1.442695, %v4121_v39 }
0x200c   :  { %v4284_v34 = vpop.xlane.xlu1 %4283 }
0x200d   :  { %8224 = vpow2.f32 %v4122_v40  ;;  %v4285_v41 = vsub.f32 %v4281_v36, %v4284_v34 }
0x200f   :  { %v4286_v42 = vmul.f32 1.442695, %v4285_v41 }
0x2010   :  { %v4519_v7 = vpop.permute.xlu1 %4518 }
0x2011   :  { %8226 = vpow2.f32 %v4286_v42 }
0x201a   :  { %v8225_v43 = vpop.eup %8224 }
0x201b   :  { %v4124_v28 = vsel %vm594_vm3, %v8225_v43, 0.0 }
0x201c   :  { %4125 = vadd.xlane.f32.xlu0 %v4124_v28 }
0x201e   :  { %v8227_v47 = vpop.eup %8226 }
0x201f   :  { %v4288_v48 = vsel %vm594_vm3, %v8227_v47, 0.0 }
0x2020   :  { %4289 = vadd.xlane.f32.xlu0 %v4288_v48 }
0x2036   :  { %4294 = vrot.lane.b32.xlu0 %v9030_v46, %s8475_s30  ;;  %s7124_s30 = sshll.u32 %s8478_s5, 4  ;;  %s7125_s30 = int_to_ptr.vmem [resolvable:$true] %s7124_s30 }
0x2037   :  { %v4035_v49 = vpop.f32.mrf.mxu0  ;;  %s8428_s7 = scalar_lea.vmem %s7125_s30, 256  ;;  %p8433_p4 = scmp.lt.s32.totalorder %s7125_s30, %s7125_s30 }
0x2038   :  { %v9178_v51 = vadd.f32 %v4035_v49, %v3798_v19  ;;  %p8429_p3 = scmp.ne.s32.totalorder %s7125_s30, %s8428_s7  ;;  %p8434_p5 = scmp.lt.s32.totalorder %s8428_s7, %s8428_s7 }
0x2039   :  { %v7883_v53 = vpop.f32.mrf.mxu0 }
0x203a   :  { %v4998_v25 = vadd.f32 %v9178_v51, %v8964_v2  ;;  %p8435_p6 = por %p8434_p5, %p8433_p4 }
0x203c   :  { %v9232_v36 = vadd.f32 %v7263_v33, %v4998_v25  ;;  %p8436_p7 = pnand %p8435_p6, %p8429_p3 }
0x203e   :  { %v5014_v37 = vsel %vm278_vm1, %v9232_v36, 0.0 }
0x20a5   :  { %v4126_v58 = vpop.xlane.xlu0 %4125 }
0x20a6   :  { %8228 = vrcp.f32 %v4126_v58 }
0x20a9   :  { %v4290_v61 = vpop.xlane.xlu0 %4289 }
0x20aa   :  { %8230 = vrcp.f32 %v4290_v61 }
0x20ad   :  { %v4295_v3 = vpop.permute.xlu0 %4294 }
0x20b3   :  { %v8229_v0 = vpop.eup %8228 }
0x20b4   :  { %v4128_v57 = vmul.f32 %v8229_v0, %v8225_v43 }
0x20b6   :  { %7892 = vmatmul.mubr.msk.f32.vlgmr.msra.gmra.mxu0 %vm594_vm3, %v4128_v57 }
0x20b7   :  { %v8231_v60 = vpop.eup %8230  ;;  %7900 = vmatpush3.msra.mxu0 %v4295_v3  ;;  %7901 = vmatprep.mubr.msk.f32.mxu0 %vm8474_vm2, %v8473_v50 }
0x20b8   :  { %v4292_v4 = vmul.f32 %v8231_v60, %v8227_v47  ;;  %7909 = vmatprep.subr.mxu0 %v8473_v50 }
0x20ba   :  { %7902 = vmatmul.mubr.msk.f32.vlgmr.msra.gmra.mxu0 %vm594_vm3, %v4292_v4 }
0x20bb   :  { %7910 = vmatpush3.msra.mxu0 %v9083_v29  ;;  %7911 = vmatprep.mubr.msk.f32.mxu0 %vm8474_vm2, %v8473_v50  ;;  %v4517_v29 = vpop.permute.xlu1 %4516 }
0x20bc   :  { %7919 = vmatprep.subr.mxu0 %v8473_v50 }
0x2176   :  { %v4198_v59 = vpop.f32.mrf.mxu0 }
0x2177   :  { %7912 = vmatmul.mubr.msk.f32.vlgmr.msra.gmra.mxu0 %vm594_vm3, %v4198_v59 }
0x2178   :  { %v7893_v63 = vpop.f32.mrf.mxu0  ;;  %7921 = vmatprep.mubr.msk.f32.mxu0 %vm8474_vm2, %v8473_v50 }
0x217a   :  { %v4366_v12 = vpop.f32.mrf.mxu0 }
0x217b   :  { %7907 = vmatmul.mubr.msk.f32.vlgmr.msra.gmra.mxu1 %vm594_vm3, %v4366_v12 }
0x217c   :  { %7915 = vmatpush3.xpose.msk.msra.mxu1 %vm594_vm3, %v4519_v7  ;;  %v7903_v13 = vpop.f32.mrf.mxu0  ;;  %7916 = vmatprep.mubr.msk.f32.mxu1 %vm8474_vm2, %v8473_v50 }
0x217d   :  { %7924 = vmatprep.subr.mxu1 %v8473_v50 }
0x217f   :  { %7917 = vmatmul.mubr.msk.f32.vlgmr.msra.gmra.mxu1 %vm594_vm3, %v4517_v29 }
0x2180   :  { %7925 = vmatpush3.msra.mxu1 %v9120_v54  ;;  %7926 = vmatprep.mubr.msk.f32.mxu1 %vm8474_vm2, %v8473_v50 }
0x2181   :  { %7934 = vmatprep.subr.mxu1 %v8473_v50 }
0x2237   :  { %v4512_v14 = vpop.f32.mrf.mxu0 }
0x2239   :  { %v7913_v45 = vpop.f32.mrf.mxu0 }
0x223b   :  { %v4439_v15 = vpop.f32.mrf.mxu1 }
0x223c   :  { %v4513_v16 = vadd.f32 %v4512_v14, %v4439_v15 }
0x223d   :  { %v7908_v17 = vpop.f32.mrf.mxu1 }
0x223f   :  { %v4590_v18 = vpop.f32.mrf.mxu1 }
0x2240   :  { %v4594_v38 = vmul.f32 0.35355338, %v4590_v18  ;;  %v7264_v18 = vld [vmem:[#allocation8 + $0x6] ss:$0 sm:$0xff] }
0x2241   :  { %v7918_v8 = vpop.f32.mrf.mxu1 }
0x2242   :  { %v4595_v19 = vsel %vm8732_vm4, -1e+09, %v4594_v38  ;;  %v7265_v8 = vld [vmem:[#allocation8 + $0x7] ss:$0 sm:$0xff] }
0x2243   :  { %v4596_v20 = vsel %vm594_vm3, %v4595_v19, -inf }
0x2244   :  { %4597 = vmax.xlane.f32.xlu0 %v4596_v20 }
0x225a   :  { %4607 = vrot.lane.b32.xlu0 %v9030_v46, %s8476_s23 }
0x225e   :  { %4757 = vrot.lane.b32.xlu0 %v9028_v44, %s8477_s24 }
0x22cd   :  { %v4598_v54 = vpop.xlane.xlu0 %4597 }
0x22ce   :  { %v4599_v22 = vsub.f32 %v4595_v19, %v4598_v54  ;;  %v5060_v54 = vld [vmem:[#allocation11 + $0x38] sm:$0xff] }
0x22d0   :  { %v4600_v23 = vmul.f32 1.442695, %v4599_v22  ;;  %v5059_v22 = vld [vmem:[#allocation11 + $0x30] sm:$0xff] }
0x22d1   :  { %v4608_v9 = vpop.permute.xlu0 %4607 }
0x22d2   :  { %8232 = vpow2.f32 %v4600_v23  ;;  %7920 = vmatpush3.msra.mxu0 %v4608_v9  ;;  %v5058_v23 = vld [vmem:[#allocation11 + $0x28] sm:$0xff]  ;;  %v5057_v9 = vld [vmem:[#allocation11 + $0x20] sm:$0xff] }
0x22d3   :  { %7929 = vmatprep.subr.mxu0 %v8473_v50 }
0x22d5   :  { %v4758_v30 = vpop.permute.xlu0 %4757 }
0x22df   :  { %v8233_v24 = vpop.eup %8232 }
0x22e0   :  { %v4602_v1 = vsel %vm594_vm3, %v8233_v24, 0.0 }
0x22e1   :  { %4603 = vadd.xlane.f32.xlu1 %v4602_v1  ;;  %v7276_v1 = vld [vmem:[%s9485_s10 + $0x70] sm:$0xff] }
0x22f2   :  { %4759 = vrot.lane.b32.xlu1 %v9039_v52, %s8477_s24 }
0x236a   :  { %v4604_v26 = vpop.xlane.xlu1 %4603 }
0x236b   :  { %8234 = vrcp.f32 %v4604_v26  ;;  %v7275_v26 = vld [vmem:[%s9485_s10 + $0x68] sm:$0xff] }
0x236e   :  { %v4760_v44 = vpop.permute.xlu1 %4759 }
0x2378   :  { %v8235_v27 = vpop.eup %8234 }
0x2379   :  { %v4606_v11 = vmul.f32 %v8235_v27, %v8233_v24  ;;  %v7277_v24 = vld [vmem:[%s9485_s10 + $0x78] sm:$0xff]  ;;  %v7274_v27 = vld [vmem:[%s9485_s10 + $0x60] sm:$0xff] }
0x237b   :  { %7922 = vmatmul.mubr.msk.f32.vlgmr.msra.gmra.mxu0 %vm594_vm3, %v4606_v11 }
0x237c   :  { %7930 = vmatpush3.xpose.msk.msra.mxu0 %vm594_vm3, %v4760_v44  ;;  %7931 = vmatprep.mubr.msk.f32.mxu0 %vm8474_vm2, %v8473_v50 }
0x237d   :  { %7939 = vmatprep.subr.mxu0 %v8473_v50 }
0x237f   :  { %7932 = vmatmul.mubr.msk.f32.vlgmr.msra.gmra.mxu0 %vm594_vm3, %v4758_v30 }
0x2380   :  { %7940 = vmatpush3.msra.mxu0 %v9138_v21  ;;  %7941 = vmatprep.mubr.msk.f32.mxu0 %vm8474_vm2, %v8473_v50 }
0x2381   :  { %7955 = vmatprep.subr.mxu0 %v7277_v24 }
0x243b   :  { %v4679_v52 = vpop.f32.mrf.mxu0 }
0x243c   :  { %7927 = vmatmul.mubr.msk.f32.vlgmr.msra.gmra.mxu1 %vm594_vm3, %v4679_v52 }
0x243d   :  { %v7923_v31 = vpop.f32.mrf.mxu0  ;;  %7936 = vmatprep.mubr.msk.f32.mxu1 %vm8474_vm2, %v8473_v50 }
0x243f   :  { %v4831_v32 = vpop.f32.mrf.mxu0 }
0x2440   :  { %v4835_v35 = vmul.f32 0.35355338, %v4831_v32 }
0x2441   :  { %v7933_v21 = vpop.f32.mrf.mxu0 }
0x2442   :  { %v4836_v56 = vsel %vm8732_vm4, -1e+09, %v4835_v35  ;;  %v7272_v35 = vld [vmem:[%s9485_s10 + $0x50] sm:$0xff]  ;;  %v7271_v21 = vld [vmem:[%s9485_s10 + $0x48] sm:$0xff]  ;;  %vm5405_vm4 = vcmp.eq.s32.totalorder %v8728_v6, %v8726_v5 }
0x2443   :  { %v4837_v55 = vsel %vm594_vm3, %v4836_v56, -inf }
0x2444   :  { %4838 = vmax.xlane.f32.xlu1 %v4837_v55  ;;  %v7267_v55 = vld [vmem:[%s9484_s9 + $0x1] ss:$0 sm:$0xff] }
0x2448   :  { %5015 = vadd.xlane.f32.xlu1 %v5014_v37 }
0x24cd   :  { %v4839_v2 = vpop.xlane.xlu1 %4838 }
0x24ce   :  { %v4840_v39 = vsub.f32 %v4836_v56, %v4839_v2  ;;  %v7270_v56 = vld [vmem:[%s9485_s10 + $0x40] sm:$0xff] }
0x24d0   :  { %v4841_v40 = vmul.f32 1.442695, %v4840_v39 }
0x24d1   :  { %v5016_v58 = vpop.xlane.xlu1 %5015 }
0x24d2   :  { %8236 = vpow2.f32 %v4841_v40  ;;  %v5020_v61 = vmul.f32 0.03125, %v5016_v58 }
0x24d4   :  { %v5022_v3 = vsub.f32 %v9232_v36, %v5020_v61 }
0x24d6   :  { %v5024_v7 = vmul.f32 %v5022_v3, %v5022_v3 }
0x24d8   :  { %v5026_v63 = vsel %vm278_vm1, %v5024_v7, 0.0 }
0x24df   :  { %v8237_v34 = vpop.eup %8236 }
0x24e0   :  { %v4843_v41 = vsel %vm594_vm3, %v8237_v34, 0.0 }
0x24e1   :  { %4844 = vadd.xlane.f32.xlu0 %v4843_v41 }
0x24f7   :  { %4848 = vrot.lane.b32.xlu0 %v9030_v46, %s8477_s24 }
0x24fc   :  { %v4752_v10 = vpop.f32.mrf.mxu1 }
0x24fd   :  { %v4756_v42 = vadd.f32 %v4752_v10, %v4513_v16  ;;  %v5255_v10 = vld [vmem:[#allocation13 + $0x18] sm:$0xff] }
0x24fe   :  { %v7928_v43 = vpop.f32.mrf.mxu1 }
0x24ff   :  { %v5253_v43 = vld [vmem:[#allocation13 + $0x8] sm:$0xff] }
0x256a   :  { %v4845_v28 = vpop.xlane.xlu0 %4844 }
0x256b   :  { %8238 = vrcp.f32 %v4845_v28  ;;  %v5252_v28 = vld [vmem:[#allocation13] sm:$0xff] }
0x256e   :  { %v4849_v47 = vpop.permute.xlu0 %4848 }
0x256f   :  { %7935 = vmatpush3.msra.mxu1 %v4849_v47  ;;  %v7279_v47 = vld [vmem:[%s9486_s11 + $0x1] ss:$0 sm:$0xff] }
0x2570   :  { %7944 = vmatprep.subr.mxu1 %v5060_v54 }
0x2578   :  { %v8239_v48 = vpop.eup %8238 }
0x2579   :  { %v4847_v49 = vmul.f32 %v8239_v48, %v8237_v34 }
0x257b   :  { %7937 = vmatmul.mubr.msk.f32.vlgmr.msra.gmra.mxu1 %vm594_vm3, %v4847_v49 }
0x257c   :  { %7945 = vmatpush3.msra.mxu1 %v5060_v54  ;;  %v5419_v54 = vadd.s32 1, %v8726_v5 }
0x257d   :  { %7946 = vmatprep.subr.mxu1 %v5059_v22 }
0x257e   :  { %7947 = vmatpush3.msra.mxu1 %v5059_v22 }
0x257f   :  { %7948 = vmatprep.subr.mxu1 %v5058_v23 }
0x2580   :  { %7949 = vmatpush3.msra.mxu1 %v5058_v23 }
0x2581   :  { %7950 = vmatprep.subr.mxu1 %v5057_v9 }
0x2582   :  { %7951 = vmatpush3.msra.mxu1 %v5057_v9 }
0x2583   :  { %7974 = vmatprep.subr.mxu1 %v5255_v10 }
0x263b   :  { %v4920_v51 = vpop.f32.mrf.mxu1 }
0x263c   :  { %7942 = vmatmul.mubr.msk.f32.vlgmr.msra.gmra.mxu0 %vm594_vm3, %v4920_v51 }
0x263d   :  { %v7938_v53 = vpop.f32.mrf.mxu1  ;;  %7956 = vmatpush3.msra.mxu0 %v7277_v24 }
0x263e   :  { %7957 = vmatprep.subr.mxu0 %v7276_v1 }
0x263f   :  { %7958 = vmatpush3.msra.mxu0 %v7276_v1 }
0x2640   :  { %7959 = vmatprep.subr.mxu0 %v7275_v26 }
0x2641   :  { %7960 = vmatpush3.msra.mxu0 %v7275_v26  ;;  %v5437_v26 = vadd.s32 2, %v8726_v5 }
0x2642   :  { %7961 = vmatprep.subr.mxu0 %v7274_v27 }
0x2643   :  { %7962 = vmatpush3.msra.mxu0 %v7274_v27 }
0x26fc   :  { %v4993_v0 = vpop.f32.mrf.mxu0 }
0x26fd   :  { %v4997_v57 = vadd.f32 %v4993_v0, %v4756_v42  ;;  %v5254_v42 = vld [vmem:[#allocation13 + $0x10] sm:$0xff]  ;;  %v9290_v0 = vand.u32 7, %v8726_v5 }
0x26fe   :  { %v7943_v46 = vpop.f32.mrf.mxu0 }
0x26ff   :  { %v4999_v60 = vadd.f32 %v4997_v57, %v8961_v62  ;;  %v5369_v57 = vadd.s32 4294967294, %v8726_v5  ;;  %v5373_v46 = vadd.s32 4294967294, %v9290_v0  ;;  %v5423_v22 = vadd.s32 1, %v9290_v0 }
0x2700   :  { %v5441_v27 = vadd.s32 2, %v9290_v0 }
0x2701   :  { %v9244_v4 = vadd.f32 %v7263_v33, %v4999_v60  ;;  %v7273_v33 = vld [vmem:[%s9485_s10 + $0x58] sm:$0xff]  ;;  %v5391_v60 = vadd.s32 4294967295, %v9290_v0  ;;  %vm5371_vm6 = vcmp.eq.s32.totalorder %v8728_v6, %v5369_v57  ;;  %vm5375_vm7 = vcmp.ge.s32.totalorder %v5373_v46, 0 }
0x2702   :  { %7963 = vmatprep.subr.mxu0 %v7273_v33  ;;  %vm5377_vm10 = vmand %vm5371_vm6, %vm5375_vm7  ;;  %vm5429_vm6 = vcmp.lt.s32.totalorder %v5423_v22, 8 }
0x2703   :  { %v5017_v59 = vsel %vm278_vm1, %v9244_v4, 0.0  ;;  %7964 = vmatpush3.msra.mxu0 %v7273_v33  ;;  %vm5393_vm9 = vcmp.ge.s32.totalorder %v5391_v60, 0  ;;  %v7315_v60 = vld [vmem:[%s9490_s15] ss:$0 sm:$0xff] }
0x2704   :  { %5018 = vadd.xlane.f32.xlu1 %v5017_v59  ;;  %7965 = vmatprep.subr.mxu0 %v7272_v35  ;;  %v9309_v59 = vadd.s32 8, %v8726_v5 }
0x2705   :  { %7966 = vmatpush3.msra.mxu0 %v7272_v35  ;;  %v5867_v35 = vld [vmem:[#allocation14 + $0x28] sm:$0xff] }
0x2706   :  { %7967 = vmatprep.subr.mxu0 %v7271_v21  ;;  %v5356_v7 = vand.u32 7, %v9309_v59  ;;  %v5420_v23 = vadd.s32 1, %v9309_v59  ;;  %vm5406_vm7 = vcmp.eq.s32.totalorder %v8728_v6, %v9309_v59 }
0x2707   :  { %7968 = vmatpush3.msra.mxu0 %v7271_v21  ;;  %v5866_v21 = vld [vmem:[#allocation14 + $0x20] sm:$0xff] }
0x2708   :  { %5027 = vadd.xlane.f32.xlu1 %v5026_v63  ;;  %7969 = vmatprep.subr.mxu0 %v7270_v56  ;;  %v5370_v63 = vadd.s32 4294967294, %v9309_v59  ;;  %v5424_v9 = vadd.s32 1, %v5356_v7 }
0x2709   :  { %7970 = vmatpush3.msra.mxu0 %v7270_v56  ;;  %v6034_v56 = vld [vmem:[#allocation14 + $0x38] sm:$0xff] }
0x270a   :  { %vm5372_vm12 = vcmp.eq.s32.totalorder %v8728_v6, %v5370_v63 }
0x278d   :  { %v5019_v12 = vpop.xlane.xlu1 %5018 }
0x278e   :  { %v5021_v13 = vmul.f32 0.03125, %v5019_v12  ;;  %v5374_v12 = vadd.s32 4294967294, %v5356_v7 }
0x2790   :  { %v5023_v29 = vsub.f32 %v9244_v4, %v5021_v13  ;;  %v5388_v13 = vadd.s32 4294967295, %v9309_v59  ;;  %vm5376_vm13 = vcmp.ge.s32.totalorder %v5374_v12, 0 }
0x2791   :  { %v5028_v14 = vpop.xlane.xlu1 %5027  ;;  %vm5378_vm2 = vmand %vm5372_vm12, %vm5376_vm13  ;;  %vm5447_vm12 = vcmp.lt.s32.totalorder %v5441_v27, 8  ;;  %v6859_v27 = vld [vmem:[#allocation16 + $0x78] sm:$0xff] }
0x2792   :  { %v5032_v45 = vmul.f32 0.03125, %v5028_v14  ;;  %v5025_v15 = vmul.f32 %v5023_v29, %v5023_v29  ;;  %v7282_v14 = vld [vmem:[%s9488_s13] ss:$0 sm:$0xff]  ;;  %vm5390_vm14 = vcmp.eq.s32.totalorder %v8728_v6, %v5388_v13 }
0x2794   :  { %v5034_v16 = vadd.f32 1e-05, %v5032_v45  ;;  %v5029_v62 = vsel %vm278_vm1, %v5025_v15, 0.0 }
0x2795   :  { %5030 = vadd.xlane.f32.xlu1 %v5029_v62 }
0x2796   :  { %8240 = vrsqrt.f32 %v5034_v16 }
0x27a3   :  { %v8241_v17 = vpop.eup %8240 }
0x27a4   :  { %v5038_v38 = vmul.f32 %v8241_v17, %v5022_v3  ;;  %v5387_v3 = vadd.s32 4294967295, %v8726_v5  ;;  %v9328_v17 = vsel %vm5378_vm2, 1.0, %v8473_v50  ;;  %v5438_v5 = vadd.s32 2, %v9309_v59 }
0x27a6   :  { %v5046_v19 = vmul.f32 %v7264_v18, %v5038_v38  ;;  %vm5389_vm8 = vcmp.eq.s32.totalorder %v8728_v6, %v5387_v3  ;;  %v5621_v38 = vld [vmem:[#allocation14 + $0x18] sm:$0xff] }
0x27a7   :  { %vm5395_vm11 = vmand %vm5389_vm8, %vm5393_vm9  ;;  %vm5422_vm9 = vcmp.eq.s32.totalorder %v8728_v6, %v5420_v23 }
0x27a8   :  { %v5054_v20 = vadd.f32 %v7265_v8, %v5046_v19  ;;  %v5537_v19 = vld [vmem:[#allocation14 + $0x8] sm:$0xff] }
0x27aa   :  { %7952 = vmatprep.mubr.msk.f32.mxu1 %vm278_vm1, %v5054_v20  ;;  %v5536_v20 = vld [vmem:[#allocation14] sm:$0xff] }
0x281e   :  { %v5031_v11 = vpop.xlane.xlu1 %5030 }
0x281f   :  { %v5033_v44 = vmul.f32 0.03125, %v5031_v11 }
0x2821   :  { %v5035_v30 = vadd.f32 1e-05, %v5033_v44 }
0x2823   :  { %8242 = vrsqrt.f32 %v5035_v30  ;;  %v9351_v30 = vsel %vm5405_vm4, 1.0, %v8473_v50 }
0x2830   :  { %v8243_v52 = vpop.eup %8242 }
0x2831   :  { %v5039_v31 = vmul.f32 %v8243_v52, %v5023_v29  ;;  %v5392_v29 = vadd.s32 4294967295, %v5356_v7  ;;  %v5442_v52 = vadd.s32 2, %v5356_v7 }
0x2833   :  { %v5047_v25 = vmul.f32 %v7264_v18, %v5039_v31  ;;  %vm5394_vm15 = vcmp.ge.s32.totalorder %v5392_v29, 0  ;;  %v9366_v31 = vsel %vm5406_vm7, 1.0, %v8473_v50  ;;  %vm5448_vm2 = vcmp.lt.s32.totalorder %v5442_v52, 8 }
0x2834   :  { %vm5396_vm3 = vmand %vm5390_vm14, %vm5394_vm15  ;;  %vm5440_vm15 = vcmp.eq.s32.totalorder %v8728_v6, %v5438_v5 }
0x2835   :  { %v5055_v32 = vadd.f32 %v7265_v8, %v5047_v25  ;;  %v9331_v18 = vsel %vm5396_vm3, 1.0, %v8473_v50  ;;  %v5620_v8 = vld [vmem:[#allocation14 + $0x10] sm:$0xff]  ;;  %vm5450_vm3 = vmand %vm5440_vm15, %vm5448_vm2 }
0x2837   :  { %7953 = vmatmul.mubr.msk.f32.vlgmr.msra.gmra.mxu1 %vm278_vm1, %v5055_v32 }
0x2838   :  { %7975 = vmatpush3.msra.mxu1 %v5255_v10  ;;  %v6200_v10 = vld [vmem:[#allocation14 + $0x40] sm:$0xff] }
0x2839   :  { %7976 = vmatprep.subr.mxu1 %v5254_v42 }
0x283a   :  { %7977 = vmatpush3.msra.mxu1 %v5254_v42 }
0x283b   :  { %7978 = vmatprep.subr.mxu1 %v5253_v43 }
0x283c   :  { %7979 = vmatpush3.msra.mxu1 %v5253_v43 }
0x283d   :  { %7980 = vmatprep.subr.mxu1 %v5252_v28 }
0x283e   :  { %7981 = vmatpush3.msra.mxu1 %v5252_v28 }
0x28f7   :  { %v7954_v37 = vpop.f32.mrf.mxu1 }
0x28f8   :  { %v5147_v2 = vadd.f32 %v7954_v37, %v7267_v55 }
0x28f9   :  { %v5141_v39 = vpop.f32.mrf.mxu1 }
0x28fa   :  { %v5142_v40 = vadd.f32 %v7267_v55, %v5141_v39  ;;  %v5151_v41 = vmax.f32 %v5147_v2, 0.0  ;;  %v6033_v39 = vld [vmem:[#allocation14 + $0x30] sm:$0xff] }
0x28fc   :  { %v5150_v34 = vmax.f32 %v5142_v40, 0.0 }
0x28fe   :  { %7971 = vmatprep.mubr.msk.f32.mxu0 %vm2677_vm5, %v5150_v34  ;;  %v6201_v34 = vld [vmem:[#allocation14 + $0x48] sm:$0xff] }
0x28ff   :  { %7972 = vmatmul.mubr.msk.f32.vlgmr.msra.gmra.mxu0 %vm2677_vm5, %v5151_v41  ;;  %vm5421_vm5 = vcmp.eq.s32.totalorder %v8728_v6, %v5419_v54 }
0x2900   :  { %vm5431_vm8 = vmand %vm5421_vm5, %vm5429_vm6 }
0x2901   :  { %v9370_v25 = vsel %vm5431_vm8, 1.0, %v8473_v50 }
0x29bf   :  { %v7973_v48 = vpop.f32.mrf.mxu0 }
0x29c0   :  { %v5247_v49 = vadd.f32 %v7973_v48, %v7279_v47 }
0x29c1   :  { %v5241_v51 = vpop.f32.mrf.mxu0 }
0x29c2   :  { %v5242_v53 = vadd.f32 %v7279_v47, %v5241_v51  ;;  %v5251_v61 = vadd.f32 %v5247_v49, %v9244_v4  ;;  %v9304_v4 = vsel %vm5395_vm11, 1.0, %v8473_v50  ;;  %vm5439_vm11 = vcmp.eq.s32.totalorder %v8728_v6, %v5437_v26  ;;  %v6693_v26 = vld [vmem:[#allocation16 + $0x40] sm:$0xff] }
0x29c3   :  { %7996 = vmatprep.mubr.msk.f32.mxu0 %vm188_vm0, %v9304_v4  ;;  %vm5449_vm14 = vmand %vm5439_vm11, %vm5447_vm12  ;;  %v9395_v6 = vsel %vm5450_vm3, 1.0, %v8473_v50 }
0x29c4   :  { %v5250_v58 = vadd.f32 %v5242_v53, %v9232_v36  ;;  %v9299_v36 = vsel %vm5377_vm10, 1.0, %v8473_v50  ;;  %vm5430_vm10 = vcmp.lt.s32.totalorder %v5424_v9, 8  ;;  %v9385_v33 = vsel %vm5449_vm14, 1.0, %v8473_v50 }
0x29c5   :  { %vm5432_vm13 = vmand %vm5422_vm9, %vm5430_vm10 }
0x29c6   :  { %7982 = vmatprep.mubr.msk.f32.mxu1 %vm278_vm1, %v5250_v58  ;;  %v9381_v32 = vsel %vm5432_vm13, 1.0, %v8473_v50 }
0x29c7   :  { %7983 = vmatmul.mubr.msk.f32.vlgmr.msra.gmra.mxu1 %vm278_vm1, %v5251_v61 }
0x29c8   :  { %7989 = vmatprep.mubr.msk.f32.mxu1 %vm188_vm0, %v9299_v36 }
0x2a87   :  { %v7984_v45 = vpop.f32.mrf.mxu1 }
0x2a88   :  { %v9319_v15 = vadd.f32 %v7984_v45, %v7282_v14  ;;  %v6374_v45 = vld [vmem:[#allocation16 + $0x18] sm:$0xff] }
0x2a89   :  { %v5335_v16 = vpop.f32.mrf.mxu1 }
0x2a8a   :  { %v9321_v62 = vadd.f32 %v7282_v14, %v5335_v16  ;;  %7985 = vmatprep.subr.mxu1 %v9319_v15  ;;  %7992 = vmatprep.subr.mxu0 %v9319_v15  ;;  %v6454_v14 = vld [vmem:[#allocation16 + $0x38] sm:$0xff]  ;;  %v6453_v16 = vld [vmem:[#allocation16 + $0x30] sm:$0xff] }
0x2a8b   :  { %7986 = vmatpush3.msra.mxu1 %v9319_v15  ;;  %7993 = vmatpush3.msra.mxu0 %v9319_v15 }
0x2a8c   :  { %7987 = vmatprep.subr.mxu1 %v9321_v62  ;;  %7994 = vmatprep.subr.mxu0 %v9321_v62 }
0x2a8d   :  { %7988 = vmatpush3.msra.mxu1 %v9321_v62  ;;  %7995 = vmatpush3.msra.mxu0 %v9321_v62 }
0x2a8e   :  { %7990 = vmatmul.mubr.msk.f32.vlgmr.msra.gmra.mxu1 %vm188_vm0, %v9328_v17  ;;  %7997 = vmatmul.mubr.msk.f32.vlgmr.msra.gmra.mxu0 %vm188_vm0, %v9331_v18 }
0x2a8f   :  { %7999 = vmatprep.subr.mxu1 %v5621_v38  ;;  %8006 = vmatprep.subr.mxu0 %v5537_v19 }
0x2a90   :  { %8000 = vmatpush3.msra.mxu1 %v5621_v38  ;;  %8007 = vmatpush3.msra.mxu0 %v5537_v19  ;;  %v6373_v38 = vld [vmem:[#allocation16 + $0x10] sm:$0xff]  ;;  %v6372_v19 = vld [vmem:[#allocation16 + $0x8] sm:$0xff] }
0x2a91   :  { %8001 = vmatprep.subr.mxu1 %v5620_v8  ;;  %8008 = vmatprep.subr.mxu0 %v5536_v20 }
0x2a92   :  { %8002 = vmatpush3.msra.mxu1 %v5620_v8  ;;  %8009 = vmatpush3.msra.mxu0 %v5536_v20  ;;  %v6452_v8 = vld [vmem:[#allocation16 + $0x28] sm:$0xff]  ;;  %v6451_v20 = vld [vmem:[#allocation16 + $0x20] sm:$0xff] }
0x2a93   :  { %8013 = vmatprep.subr.mxu1 %v9319_v15  ;;  %8020 = vmatprep.subr.mxu0 %v5867_v35 }
0x2b4e   :  { %v7991_v24 = vpop.f32.mrf.mxu1  ;;  %v7998_v1 = vpop.f32.mrf.mxu0 }
0x2b50   :  { %v5527_v11 = vpop.f32.mrf.mxu1  ;;  %v5610_v44 = vpop.f32.mrf.mxu0 }
0x2b51   :  { %8003 = vmatprep.mubr.msk.f32.mxu1 %vm188_vm0, %v5610_v44  ;;  %8010 = vmatprep.mubr.msk.f32.mxu0 %vm188_vm0, %v5527_v11  ;;  %v6858_v11 = vld [vmem:[#allocation16 + $0x70] sm:$0xff]  ;;  %v6857_v44 = vld [vmem:[#allocation16 + $0x68] sm:$0xff] }
0x2b52   :  { %8004 = vmatmul.mubr.msk.f32.vlgmr.msra.gmra.mxu1 %vm188_vm0, %v7998_v1  ;;  %8011 = vmatmul.mubr.msk.f32.vlgmr.msra.gmra.mxu0 %vm188_vm0, %v7991_v24  ;;  %v6695_v24 = vld [vmem:[#allocation16 + $0x50] sm:$0xff]  ;;  %v6694_v1 = vld [vmem:[#allocation16 + $0x48] sm:$0xff] }
0x2b53   :  { %8014 = vmatpush3.msra.mxu1 %v9319_v15  ;;  %8017 = vmatprep.mubr.msk.f32.mxu1 %vm188_vm0, %v9351_v30 }
0x2b54   :  { %8015 = vmatprep.subr.mxu1 %v9321_v62  ;;  %8021 = vmatpush3.msra.mxu0 %v5867_v35 }
0x2b55   :  { %8016 = vmatpush3.msra.mxu1 %v9321_v62  ;;  %8022 = vmatprep.subr.mxu0 %v5866_v21 }
0x2b56   :  { %8027 = vmatprep.subr.mxu1 %v9319_v15  ;;  %8018 = vmatmul.mubr.msk.f32.vlgmr.msra.gmra.mxu1 %vm188_vm0, %v9366_v31 }
0x2b57   :  { %8028 = vmatpush3.msra.mxu1 %v9319_v15  ;;  %8031 = vmatprep.mubr.msk.f32.mxu1 %vm188_vm0, %v9370_v25 }
0x2b58   :  { %8029 = vmatprep.subr.mxu1 %v9321_v62  ;;  %8023 = vmatpush3.msra.mxu0 %v5866_v21 }
0x2b59   :  { %8030 = vmatpush3.msra.mxu1 %v9321_v62  ;;  %8034 = vmatprep.subr.mxu0 %v6034_v56 }
0x2b5a   :  { %8041 = vmatprep.subr.mxu1 %v9319_v15  ;;  %8032 = vmatmul.mubr.msk.f32.vlgmr.msra.gmra.mxu1 %vm188_vm0, %v9381_v32 }
0x2b5b   :  { %8042 = vmatpush3.msra.mxu1 %v9319_v15  ;;  %8045 = vmatprep.mubr.msk.f32.mxu1 %vm188_vm0, %v9385_v33 }
0x2b5c   :  { %8043 = vmatprep.subr.mxu1 %v9321_v62 }
0x2b5d   :  { %8044 = vmatpush3.msra.mxu1 %v9321_v62 }
0x2b5e   :  { %8046 = vmatmul.mubr.msk.f32.vlgmr.msra.gmra.mxu1 %vm188_vm0, %v9395_v6 }
0x2b5f   :  { %8059 = vmatprep.mubr.msk.f32.mxu1 %vm188_vm0, %v9299_v36 }
0x2c12   :  { %v8005_v50 = vpop.f32.mrf.mxu1  ;;  %v8012_v28 = vpop.f32.mrf.mxu0 }
0x2c13   :  { %v5781_v51 = vadd.f32 %v8012_v28, %v8005_v50  ;;  %v7022_v50 = vld [vmem:[#allocation16 + $0x98] sm:$0xff] }
0x2c14   :  { %v5694_v55 = vpop.f32.mrf.mxu1  ;;  %v5775_v47 = vpop.f32.mrf.mxu0 }
0x2c15   :  { %v5776_v58 = vadd.f32 %v5775_v47, %v5694_v55  ;;  %v7021_v55 = vld [vmem:[#allocation16 + $0x90] sm:$0xff] }
0x2c16   :  { %v8019_v37 = vpop.f32.mrf.mxu1 }
0x2c18   :  { %v5856_v2 = vpop.f32.mrf.mxu1 }
0x2c19   :  { %8024 = vmatprep.mubr.msk.f32.mxu0 %vm188_vm0, %v5856_v2 }
0x2c1a   :  { %8025 = vmatmul.mubr.msk.f32.vlgmr.msra.gmra.mxu0 %vm188_vm0, %v8019_v37  ;;  %v8033_v40 = vpop.f32.mrf.mxu1  ;;  %v7020_v37 = vld [vmem:[#allocation16 + $0x88] sm:$0xff] }
0x2c1b   :  { %8035 = vmatpush3.msra.mxu0 %v6034_v56 }
0x2c1c   :  { %v6023_v41 = vpop.f32.mrf.mxu1  ;;  %8036 = vmatprep.subr.mxu0 %v6033_v39 }
0x2c1d   :  { %8037 = vmatpush3.msra.mxu0 %v6033_v39  ;;  %8038 = vmatprep.mubr.msk.f32.mxu0 %vm188_vm0, %v6023_v41 }
0x2c1e   :  { %8039 = vmatmul.mubr.msk.f32.vlgmr.msra.gmra.mxu0 %vm188_vm0, %v8033_v40  ;;  %v8047_v42 = vpop.f32.mrf.mxu1  ;;  %8048 = vmatprep.subr.mxu0 %v6201_v34 }
0x2c1f   :  { %8049 = vmatpush3.msra.mxu0 %v6201_v34 }
0x2c20   :  { %v6190_v43 = vpop.f32.mrf.mxu1  ;;  %8050 = vmatprep.subr.mxu0 %v6200_v10 }
0x2c21   :  { %8051 = vmatpush3.msra.mxu0 %v6200_v10  ;;  %8052 = vmatprep.mubr.msk.f32.mxu0 %vm188_vm0, %v6190_v43 }
0x2c22   :  { %8053 = vmatmul.mubr.msk.f32.vlgmr.msra.gmra.mxu0 %vm188_vm0, %v8047_v42 }
0x2c23   :  { %8066 = vmatprep.mubr.msk.f32.mxu0 %vm188_vm0, %v9304_v4 }
0x2cda   :  { %v8026_v48 = vpop.f32.mrf.mxu0 }
0x2cdb   :  { %v5950_v61 = vadd.f32 %v8026_v48, %v5781_v51 }
0x2cdc   :  { %v5940_v49 = vpop.f32.mrf.mxu0 }
0x2cdd   :  { %v5949_v57 = vadd.f32 %v5940_v49, %v5776_v58  ;;  %v7336_v49 = vld [vmem:[%s9492_s17] ss:$0 sm:$0xff] }
0x2cde   :  { %v8040_v53 = vpop.f32.mrf.mxu0 }
0x2cdf   :  { %v6117_v46 = vadd.f32 %v8040_v53, %v5950_v61 }
0x2ce0   :  { %v6107_v0 = vpop.f32.mrf.mxu0 }
0x2ce1   :  { %v6116_v36 = vadd.f32 %v6107_v0, %v5949_v57 }
0x2ce2   :  { %v8054_v3 = vpop.f32.mrf.mxu0 }
0x2ce3   :  { %v6284_v59 = vadd.f32 %v8054_v3, %v6117_v46 }
0x2ce4   :  { %v6274_v7 = vpop.f32.mrf.mxu0 }
0x2ce5   :  { %v6293_v4 = vadd.f32 %v7315_v60, %v6284_v59  ;;  %v6283_v63 = vadd.f32 %v6274_v7, %v6116_v36 }
0x2ce7   :  { %8244 = vtanh.f32 %v6293_v4  ;;  %v6292_v12 = vadd.f32 %v7315_v60, %v6283_v63 }
0x2ce9   :  { %8246 = vtanh.f32 %v6292_v12 }
0x2cf4   :  { %v9414_v13 = vpop.eup %8244 }
0x2cf5   :  { %8055 = vmatprep.subr.mxu1 %v9414_v13  ;;  %8062 = vmatprep.subr.mxu0 %v9414_v13 }
0x2cf6   :  { %v9418_v29 = vpop.eup %8246  ;;  %8056 = vmatpush3.msra.mxu1 %v9414_v13  ;;  %8063 = vmatpush3.msra.mxu0 %v9414_v13 }
0x2cf7   :  { %8057 = vmatprep.subr.mxu1 %v9418_v29  ;;  %8064 = vmatprep.subr.mxu0 %v9418_v29 }
0x2cf8   :  { %8058 = vmatpush3.msra.mxu1 %v9418_v29  ;;  %8065 = vmatpush3.msra.mxu0 %v9418_v29 }
0x2cf9   :  { %8060 = vmatmul.mubr.msk.f32.vlgmr.msra.gmra.mxu1 %vm188_vm0, %v9328_v17  ;;  %8067 = vmatmul.mubr.msk.f32.vlgmr.msra.gmra.mxu0 %vm188_vm0, %v9331_v18  ;;  %v6371_v17 = vld [vmem:[#allocation16] sm:$0xff]  ;;  %v6696_v18 = vld [vmem:[#allocation16 + $0x58] sm:$0xff] }
0x2cfa   :  { %8069 = vmatprep.subr.mxu1 %v6454_v14  ;;  %8080 = vmatprep.subr.mxu0 %v6374_v45 }
0x2cfb   :  { %8070 = vmatpush3.msra.mxu1 %v6454_v14  ;;  %8081 = vmatpush3.msra.mxu0 %v6374_v45 }
0x2cfc   :  { %8071 = vmatprep.subr.mxu1 %v6453_v16  ;;  %8082 = vmatprep.subr.mxu0 %v6373_v38 }
0x2cfd   :  { %8072 = vmatpush3.msra.mxu1 %v6453_v16  ;;  %8083 = vmatpush3.msra.mxu0 %v6373_v38 }
0x2cfe   :  { %8073 = vmatprep.subr.mxu1 %v6452_v8  ;;  %8084 = vmatprep.subr.mxu0 %v6372_v19 }
0x2cff   :  { %8074 = vmatpush3.msra.mxu1 %v6452_v8  ;;  %8085 = vmatpush3.msra.mxu0 %v6372_v19 }
0x2d00   :  { %8075 = vmatprep.subr.mxu1 %v6451_v20  ;;  %8086 = vmatprep.subr.mxu0 %v6371_v17 }
0x2d01   :  { %8076 = vmatpush3.msra.mxu1 %v6451_v20  ;;  %8087 = vmatpush3.msra.mxu0 %v6371_v17 }
0x2d02   :  { %8091 = vmatprep.subr.mxu1 %v9414_v13  ;;  %8098 = vmatprep.subr.mxu0 %v6696_v18 }
0x2db9   :  { %v8061_v54 = vpop.f32.mrf.mxu1  ;;  %v8068_v22 = vpop.f32.mrf.mxu0 }
0x2dbb   :  { %v6362_v23 = vpop.f32.mrf.mxu1  ;;  %v6441_v9 = vpop.f32.mrf.mxu0 }
0x2dbc   :  { %8077 = vmatprep.mubr.msk.f32.mxu1 %vm278_vm1, %v6441_v9  ;;  %8088 = vmatprep.mubr.msk.f32.mxu0 %vm278_vm1, %v6362_v23 }
0x2dbd   :  { %8078 = vmatmul.mubr.msk.f32.vlgmr.msra.gmra.mxu1 %vm278_vm1, %v8068_v22  ;;  %8089 = vmatmul.mubr.msk.f32.vlgmr.msra.gmra.mxu0 %vm278_vm1, %v8061_v54 }
0x2dbe   :  { %8092 = vmatpush3.msra.mxu1 %v9414_v13  ;;  %8099 = vmatpush3.msra.mxu0 %v6696_v18 }
0x2dbf   :  { %8093 = vmatprep.subr.mxu1 %v9418_v29  ;;  %8100 = vmatprep.subr.mxu0 %v6695_v24 }
0x2dc0   :  { %8094 = vmatpush3.msra.mxu1 %v9418_v29  ;;  %8101 = vmatpush3.msra.mxu0 %v6695_v24 }
0x2dc1   :  { %8095 = vmatprep.mubr.msk.f32.mxu1 %vm188_vm0, %v9351_v30  ;;  %8102 = vmatprep.subr.mxu0 %v6694_v1  ;;  %v6856_v30 = vld [vmem:[#allocation16 + $0x60] sm:$0xff] }
0x2dc2   :  { %8109 = vmatprep.subr.mxu1 %v9414_v13  ;;  %8096 = vmatmul.mubr.msk.f32.vlgmr.msra.gmra.mxu1 %vm188_vm0, %v9366_v31 }
0x2dc3   :  { %8103 = vmatpush3.msra.mxu0 %v6694_v1  ;;  %8110 = vmatpush3.msra.mxu1 %v9414_v13 }
0x2dc4   :  { %8104 = vmatprep.subr.mxu0 %v6693_v26  ;;  %8111 = vmatprep.subr.mxu1 %v9418_v29 }
0x2dc5   :  { %8105 = vmatpush3.msra.mxu0 %v6693_v26  ;;  %8112 = vmatpush3.msra.mxu1 %v9418_v29 }
0x2dc6   :  { %8113 = vmatprep.mubr.msk.f32.mxu1 %vm188_vm0, %v9370_v25  ;;  %8127 = vmatprep.subr.mxu0 %v9414_v13 }
0x2dc7   :  { %8114 = vmatmul.mubr.msk.f32.vlgmr.msra.gmra.mxu1 %vm188_vm0, %v9381_v32  ;;  %8116 = vmatprep.subr.mxu1 %v6859_v27 }
0x2dc8   :  { %8117 = vmatpush3.msra.mxu1 %v6859_v27 }
0x2dc9   :  { %8118 = vmatprep.subr.mxu1 %v6858_v11 }
0x2dca   :  { %8119 = vmatpush3.msra.mxu1 %v6858_v11 }
0x2dcb   :  { %8120 = vmatprep.subr.mxu1 %v6857_v44 }
0x2dcc   :  { %8121 = vmatpush3.msra.mxu1 %v6857_v44 }
0x2dcd   :  { %8122 = vmatprep.subr.mxu1 %v6856_v30 }
0x2dce   :  { %8123 = vmatpush3.msra.mxu1 %v6856_v30 }
0x2e7d   :  { %v8079_v5 = vpop.f32.mrf.mxu1  ;;  %v8090_v52 = vpop.f32.mrf.mxu0 }
0x2e7e   :  { %v6614_v31 = vadd.f32 %v8090_v52, %v8079_v5 }
0x2e7f   :  { %v6527_v25 = vpop.f32.mrf.mxu1  ;;  %v6608_v2 = vpop.f32.mrf.mxu0 }
0x2e80   :  { %v6609_v40 = vadd.f32 %v6608_v2, %v6527_v25 }
0x2e82   :  { %v8097_v35 = vpop.f32.mrf.mxu1 }
0x2e84   :  { %v6683_v21 = vpop.f32.mrf.mxu1 }
0x2e85   :  { %8106 = vmatprep.mubr.msk.f32.mxu0 %vm278_vm1, %v6683_v21 }
0x2e86   :  { %8107 = vmatmul.mubr.msk.f32.vlgmr.msra.gmra.mxu0 %vm278_vm1, %v8097_v35 }
0x2e87   :  { %v8115_v32 = vpop.f32.mrf.mxu1  ;;  %8128 = vmatpush3.msra.mxu0 %v9414_v13  ;;  %8131 = vmatprep.mubr.msk.f32.mxu0 %vm188_vm0, %v9385_v33  ;;  %v7019_v33 = vld [vmem:[#allocation16 + $0x80] sm:$0xff] }
0x2e88   :  { %8129 = vmatprep.subr.mxu0 %v9418_v29 }
0x2e89   :  { %v6846_v56 = vpop.f32.mrf.mxu1  ;;  %8130 = vmatpush3.msra.mxu0 %v9418_v29 }
0x2e8a   :  { %8124 = vmatprep.mubr.msk.f32.mxu1 %vm278_vm1, %v6846_v56  ;;  %8132 = vmatmul.mubr.msk.f32.vlgmr.msra.gmra.mxu0 %vm188_vm0, %v9395_v6 }
0x2e8b   :  { %8125 = vmatmul.mubr.msk.f32.vlgmr.msra.gmra.mxu1 %vm278_vm1, %v8115_v32  ;;  %8134 = vmatprep.subr.mxu0 %v7022_v50 }
0x2e8c   :  { %8135 = vmatpush3.msra.mxu0 %v7022_v50 }
0x2e8d   :  { %8136 = vmatprep.subr.mxu0 %v7021_v55 }
0x2e8e   :  { %8137 = vmatpush3.msra.mxu0 %v7021_v55 }
0x2e8f   :  { %8138 = vmatprep.subr.mxu0 %v7020_v37 }
0x2e90   :  { %8139 = vmatpush3.msra.mxu0 %v7020_v37 }
0x2e91   :  { %8140 = vmatprep.subr.mxu0 %v7019_v33 }
0x2e92   :  { %8141 = vmatpush3.msra.mxu0 %v7019_v33 }
0x2f46   :  { %v8108_v39 = vpop.f32.mrf.mxu0 }
0x2f47   :  { %v6779_v34 = vadd.f32 %v8108_v39, %v6614_v31 }
0x2f48   :  { %v6769_v41 = vpop.f32.mrf.mxu0 }
0x2f49   :  { %v6778_v6 = vadd.f32 %v6769_v41, %v6609_v40 }
0x2f4a   :  { %v8133_v10 = vpop.f32.mrf.mxu0 }
0x2f4b   :  { %v8126_v43 = vpop.f32.mrf.mxu1 }
0x2f4c   :  { %v7009_v42 = vpop.f32.mrf.mxu0  ;;  %v6942_v47 = vadd.f32 %v8126_v43, %v6779_v34 }
0x2f4d   :  { %8142 = vmatprep.mubr.msk.f32.mxu0 %vm278_vm1, %v7009_v42  ;;  %v6932_v28 = vpop.f32.mrf.mxu1 }
0x2f4e   :  { %8143 = vmatmul.mubr.msk.f32.vlgmr.msra.gmra.mxu0 %vm278_vm1, %v8133_v10  ;;  %v6941_v51 = vadd.f32 %v6932_v28, %v6778_v6 }
0x300e   :  { %v8144_v48 = vpop.f32.mrf.mxu0 }
0x300f   :  { %v7105_v53 = vadd.f32 %v8144_v48, %v6942_v47 }
0x3010   :  { %v7095_v58 = vpop.f32.mrf.mxu0 }
0x3011   :  { %v7114_v61 = vadd.f32 %v7336_v49, %v7105_v53  ;;  %v7104_v0 = vadd.f32 %v7095_v58, %v6941_v51 }
0x3013   :  { %v7116_v57 = vadd.f32 %v7114_v61, %v9319_v15  ;;  %v7113_v46 = vadd.f32 %v7336_v49, %v7104_v0 }
0x3015   :  { %7118 = vst [vmem:[#allocation17 + $0x8] sm:$0xff] %v7116_v57  ;;  %v7115_v3 = vadd.f32 %v7113_v46, %v9321_v62 }
0x3017   :  { %7117 = vst [vmem:[#allocation17] sm:$0xff] %v7115_v3 }
0x3018   :  { %8439 = shalt.err (!%p8436_p7)
}
0x3019   :  { %s9503_s24 = sld [smem:[#allocation27_spill]] }
0x301f   :  { %7130 = dma.vmem_to_hbm [thread:$0]  %s7125_s30, 256, %s9503_s24, [#allocation4], %s8462_s19, %s8462_s19, %s8463_s1  }
0x3020   :  { %8458 = dma.done.wait [#allocation4], 256  }
0x3021   :  { %8459 = vsyncadd [#allocation4], 4294967040 }
0x3022   :  { %7134 = vsyncpa [#allocation3], 1 }
0x3023   :  { %7135 = vsyncpa [#allocation6], 1 }
0x3024   :  { %7136 = vsyncpa [#allocation9], 1 }
0x3025   :  { %7137 = vsyncpa [#allocation12], 1 }
0x3026   :  { %7138 = vsyncpa [#allocation15], 1 }
0x3027   :  { %7139 = vsyncpa [#allocation4], 1 }

</bundles_post_ra>
